<compile_context>
chip_gen: v7x
topology: tpu7x:2x2x1
jax: 0.10.0
libtpu: 0.0.40
codegen_flags: <defaults>
</compile_context>

<pallas_src>
import functools

import jax
import jax.numpy as jnp
import numpy as np
from jax import lax
from jax.experimental import pallas as pl
from jax.experimental.pallas import tpu as pltpu

HEADS = ("fb", "object", "isHand", "multi_cls")
HEAD_DIMS = (2, 2, 2, 7)              # classifier widths per head
HEAD_WIDTH = 64                       # channels per head after conv1
C1 = len(HEADS) * HEAD_WIDTH          # 256 fused head channels
KPS_OUT = 42
SLAB = 128                            # padded output column height (55 used)


def _relu6(x):
    return jnp.minimum(jnp.maximum(x, 0.0), 6.0)


# ------------------------------------------------------------- fused kernel
def _fused_kernel(m2_ref, x3_ref, w1t_ref, b1_ref, w2a_ref, w2b_ref, b2_ref,
                  wct_ref, bc_ref, wk2t_ref, wk3t_ref, bk_ref,
                  out_ref, m3_acc, pool_acc,
                  *, hw3, thw, chunk, mask_tail):
    """Grid point = (image, HW tile of x3).  Everything is channels x pixels.

    Per HW tile (in pixel chunks): accumulate per-channel sum(x3) (kps mean)
    and per-channel sum(h1 + relu6(W2t@h1 + b2)) (heads' pre-pool features).
    On the last HW tile: finalize the means, run kps FC + sigmoid and the fused
    head classifiers, and store one (128, 1) slab (rows 0:42 kps, 42:55 heads).
    """
    hw_i = pl.program_id(1)
    n_hw = pl.num_programs(1)

    @pl.when(hw_i == 0)
    def _init():
        m3_acc[...] = jnp.zeros_like(m3_acc)
        pool_acc[...] = jnp.zeros_like(pool_acc)

    # Loop-invariant weight/bias loads, hoisted out of the chunk loop.
    w1t = w1t_ref[...]              # (256, 512) bf16 : 4x conv1x1(512->64), transposed
    w2a = w2a_ref[...]              # (128, 128) bf16 : heads 0-1 residual (block-diag)
    w2b = w2b_ref[...]              # (128, 128) bf16 : heads 2-3 residual (block-diag)
    b1 = b1_ref[...]                # (256, 1) f32
    b2 = b2_ref[...]                # (256, 1) f32

    def process_chunk(s):           # s: static, 128-aligned when chunking
        x3c = x3_ref[:, s:s + chunk]                       # (512, chunk), native dtype
        x3f = x3c.astype(jnp.float32)
        if mask_tail:
            lane = lax.broadcasted_iota(jnp.int32, (1, chunk), 1)
            valid = (hw_i * thw + s + lane) < hw3          # pixel-validity mask

        # kps branch: per-channel running pixel-sum of x3 (XLU lane reduce,
        # hides under the HBM-bound MXU stream).
        xs = jnp.where(valid, x3f, 0.0) if mask_tail else x3f
        m3_acc[...] += jnp.sum(xs, axis=-1, keepdims=True)

        # heads: 4x conv1x1(512->64) fused into one bf16 MXU matmul (f32 acc),
        # residual conv1x1(64->64) as two 128x128 block-diagonal matmuls.
        x3b = x3c.astype(jnp.bfloat16)
        h1 = _relu6(jnp.dot(w1t, x3b, preferred_element_type=jnp.float32) + b1)  # (256, chunk)
        h1b = h1.astype(jnp.bfloat16)
        h2_top = _relu6(jnp.dot(w2a, h1b[:128], preferred_element_type=jnp.float32) + b2[:128])
        h2_bot = _relu6(jnp.dot(w2b, h1b[128:], preferred_element_type=jnp.float32) + b2[128:])
        f_top = h1[:128] + h2_top
        f_bot = h1[128:] + h2_bot
        if mask_tail:
            f_top = jnp.where(valid, f_top, 0.0)           # padded pixels contribute 0
            f_bot = jnp.where(valid, f_bot, 0.0)
        pool_acc[0:128, :] += jnp.sum(f_top, axis=-1, keepdims=True)
        pool_acc[128:256, :] += jnp.sum(f_bot, axis=-1, keepdims=True)

    # Short static (unrolled) pixel-chunk loop: bounds live intermediates while
    # keeping the DMA tile (thw) large; starts are 128-aligned when chunk < thw.
    for s in range(0, thw, chunk):
        process_chunk(s)

    @pl.when(hw_i == n_hw - 1)
    def _finalize():
        inv_hw = jnp.float32(1.0 / hw3)                    # true HW even with masked tail
        m3 = m3_acc[...] * inv_hw                          # (512, 1)
        m2 = m2_ref[...]                                   # (256, 1) precomputed mean(x2)

        # concat([m2, m3]) @ Wk  ==  Wk2t @ m2 + Wk3t @ m3  (no concat needed)
        kz = (jnp.dot(wk2t_ref[...], m2, preferred_element_type=jnp.float32)
              + jnp.dot(wk3t_ref[...], m3, preferred_element_type=jnp.float32)
              + bk_ref[...])                               # (128, 1); rows 0:42 live
        kps = pl.reciprocal(1.0 + jnp.exp(-kz), approx=True)   # sigmoid, EUP reciprocal

        # heads: avg-pool -> (Dropout p=0.7 == identity in eval) -> fused classifier.
        pooled = pool_acc[...] * inv_hw                    # (256, 1)
        heads = _relu6(jnp.dot(wct_ref[...], pooled, preferred_element_type=jnp.float32)
                       + bc_ref[...])                      # (128, 1); rows 42:55 live

        row = lax.broadcasted_iota(jnp.int32, (SLAB, 1), 0)
        out_ref[...] = jnp.where(row < KPS_OUT, kps, heads).astype(out_ref.dtype)


# ---------------------------------------------------------------- tile picks
def _vmem_limit_bytes():
    """Per-generation scoped VMEM: ~96 MiB on v5e/v6e (128 MiB phys), ~48 MiB on v7x."""
    try:
        cap = int(pltpu.get_tpu_info().vmem_capacity_bytes)
    except Exception:
        cap = 64 << 20
    return max(32 << 20, min(cap * 3 // 4, 100 << 20))


def _pick_hw_tile(hw, c3, elem_bytes, vmem_limit, max_hw_tile):
    """Budget-driven x3 pixel tile.  Prefers an exact multiple-of-128 divisor;
    otherwise returns a 128-multiple and the kernel masks the tail."""
    budget = min(16 << 20, vmem_limit // 3)                # x3 double-buffer budget
    cap = max(128, (budget // (2 * c3 * elem_bytes)) // 128 * 128)
    if max_hw_tile is not None:
        cap = min(cap, max_hw_tile)
    if hw <= cap:
        return hw
    t = cap - (cap % 128)
    while t >= 128:
        if hw % t == 0:
            return t
        t -= 128
    return max(128, cap - (cap % 128))                     # masked tail


def _pick_chunk(thw, max_chunk):
    """Largest multiple-of-128 divisor of thw that is <= max_chunk (else thw)."""
    if thw <= max_chunk or thw % 128:
        return thw
    best = 1
    m = thw // 128
    for d in range(1, max_chunk // 128 + 1):
        if m % d == 0:
            best = d
    return 128 * best


# ------------------------------------------------------------------ wrapper
@functools.partial(jax.jit, static_argnames=("max_hw_tile", "max_chunk"))
def multitask_forward(x2_nchw, x3_nchw, fused, *, max_hw_tile=None, max_chunk=1024):
    bs, c2, _, _ = x2_nchw.shape
    _, c3, h3, w3 = x3_nchw.shape
    hw3 = h3 * w3
    assert c2 == 256 and c3 == 512, (c2, c3)

    # mean(x2) precomputed in plain JAX (roofline reduction) -> tiny kernel input.
    m2c = jnp.mean(x2_nchw.astype(jnp.float32), axis=(2, 3)).reshape(bs, c2, 1)

    # x3 stays NCHW: only a free reshape, no HBM relayout / transpose.
    x3r = x3_nchw.reshape(bs, c3, hw3)
    eb = x3r.dtype.itemsize

    vmem_limit = _vmem_limit_bytes()
    thw = _pick_hw_tile(hw3, c3, eb, vmem_limit, max_hw_tile)
    chunk = _pick_chunk(thw, max_chunk)
    n_hw = pl.cdiv(hw3, thw)
    mask_tail = (hw3 % thw) != 0

    kernel = functools.partial(_fused_kernel, hw3=hw3, thw=thw, chunk=chunk,
                               mask_tail=mask_tail)
    const = lambda b, h: (0, 0)

    slab = pl.pallas_call(
        kernel,
        out_shape=jax.ShapeDtypeStruct((bs, SLAB, 1), jnp.float32),
        grid_spec=pltpu.PrefetchScalarGridSpec(
            num_scalar_prefetch=0,
            grid=(bs, n_hw),
            in_specs=[
                pl.BlockSpec((None, c2, 1), lambda b, h: (b, 0, 0)),    # mean(x2) per image
                pl.BlockSpec((None, c3, thw), lambda b, h: (b, 0, h)),  # x3 streamed, NCHW
                pl.BlockSpec(fused["w1t"].shape, const),
                pl.BlockSpec(fused["b1"].shape, const),
                pl.BlockSpec(fused["w2a"].shape, const),
                pl.BlockSpec(fused["w2b"].shape, const),
                pl.BlockSpec(fused["b2"].shape, const),
                pl.BlockSpec(fused["wct"].shape, const),
                pl.BlockSpec(fused["bc"].shape, const),
                pl.BlockSpec(fused["wk2t"].shape, const),
                pl.BlockSpec(fused["wk3t"].shape, const),
                pl.BlockSpec(fused["bk"].shape, const),
            ],
            out_specs=pl.BlockSpec((None, SLAB, 1), lambda b, h: (b, 0, 0)),
            scratch_shapes=[
                pltpu.VMEM((c3, 1), jnp.float32),   # running sum(x3) per channel
                pltpu.VMEM((C1, 1), jnp.float32),   # running sum(h1 + h2) per head channel
            ],
        ),
        compiler_params=pltpu.CompilerParams(
            dimension_semantics=("parallel", "arbitrary"),   # batch across cores
            vmem_limit_bytes=vmem_limit,
        ),
    )(m2c, x3r, fused["w1t"], fused["b1"], fused["w2a"], fused["w2b"], fused["b2"],
      fused["wct"], fused["bc"], fused["wk2t"], fused["wk3t"], fused["bk"])

    s2 = slab[:, :, 0]
    outs = [s2[:, :KPS_OUT]]
    col = KPS_OUT
    for d in HEAD_DIMS:
        outs.append(s2[:, col:col + d])
        col += d
    return tuple(outs)


# ------------------------------------------------- params / packing / reference
def init_params(key):
    ks = list(jax.random.split(key, 2 + 6 * len(HEADS)))

    def w(k, shape, scale=0.05):
        return (scale * jax.random.normal(k, shape)).astype(jnp.float32)

    params = {"kps_w": w(ks[0], (768, 42)), "kps_b": w(ks[1], (1, 42))}
    i = 2
    for name, cout in zip(HEADS, HEAD_DIMS):
        params[name] = {
            "w1": w(ks[i + 0], (512, 64)), "b1": w(ks[i + 1], (1, 64)),
            "w2": w(ks[i + 2], (64, 64)),  "b2": w(ks[i + 3], (1, 64)),
            "wc": w(ks[i + 4], (64, cout)), "bc": w(ks[i + 5], (1, cout)),
        }
        i += 6
    return params


def prepare_params(params):
    """Pack per-head weights ONCE (outside jit, numpy) into wide, transposed,
    column-oriented operands; bf16 for the streamed matmuls, f32 elsewhere."""
    f32 = np.float32
    w1t = np.zeros((C1, 512), f32)
    b1 = np.zeros((C1, 1), f32)
    b2 = np.zeros((C1, 1), f32)
    w2a = np.zeros((128, 128), f32)
    w2b = np.zeros((128, 128), f32)
    wct = np.zeros((SLAB, C1), f32)
    bc = np.zeros((SLAB, 1), f32)
    col = KPS_OUT
    for i, h in enumerate(HEADS):
        hp = params[h]
        s = i * HEAD_WIDTH
        w1t[s:s + HEAD_WIDTH, :] = np.asarray(hp["w1"], f32).T
        b1[s:s + HEAD_WIDTH, 0] = np.asarray(hp["b1"], f32).reshape(-1)
        b2[s:s + HEAD_WIDTH, 0] = np.asarray(hp["b2"], f32).reshape(-1)
        dst = w2a if i < 2 else w2b                      # block-diagonal, split in halves
        o = (i % 2) * HEAD_WIDTH
        dst[o:o + HEAD_WIDTH, o:o + HEAD_WIDTH] = np.asarray(hp["w2"], f32).T
        cout = HEAD_DIMS[i]
        wct[col:col + cout, s:s + HEAD_WIDTH] = np.asarray(hp["wc"], f32).T
        bc[col:col + cout, 0] = np.asarray(hp["bc"], f32).reshape(-1)
        col += cout

    wk = np.asarray(params["kps_w"], f32)                # (768, 42)
    wk2t = np.zeros((SLAB, 256), f32)
    wk2t[:KPS_OUT, :] = wk[:256].T
    wk3t = np.zeros((SLAB, 512), f32)
    wk3t[:KPS_OUT, :] = wk[256:].T
    bk = np.zeros((SLAB, 1), f32)
    bk[:KPS_OUT, 0] = np.asarray(params["kps_b"], f32).reshape(-1)

    return dict(
        w1t=jnp.asarray(w1t, dtype=jnp.bfloat16),        # streamed: bf16, f32 accumulate
        w2a=jnp.asarray(w2a, dtype=jnp.bfloat16),
        w2b=jnp.asarray(w2b, dtype=jnp.bfloat16),
        b1=jnp.asarray(b1), b2=jnp.asarray(b2),
        wct=jnp.asarray(wct), bc=jnp.asarray(bc),        # finalize-only: f32
        wk2t=jnp.asarray(wk2t), wk3t=jnp.asarray(wk3t), bk=jnp.asarray(bk),
    )


def reference_forward(x2_nchw, x3_nchw, params):
    """Plain-JAX f32 reference mirroring the PyTorch forward (eval mode)."""
    m2 = jnp.mean(x2_nchw, axis=(2, 3))
    m3 = jnp.mean(x3_nchw, axis=(2, 3))
    kps = jax.nn.sigmoid(jnp.concatenate([m2, m3], axis=1) @ params["kps_w"] + params["kps_b"])

    def head(hp):
        x = jnp.transpose(x3_nchw, (0, 2, 3, 1))         # NHWC
        h1 = _relu6(x @ hp["w1"] + hp["b1"])
        h = h1 + _relu6(h1 @ hp["w2"] + hp["b2"])
        pooled = jnp.mean(h, axis=(1, 2))
        return _relu6(pooled @ hp["wc"] + hp["bc"])

    return (kps,) + tuple(head(params[h]) for h in HEADS)


if __name__ == "__main__":
    key = jax.random.PRNGKey(0)
    kx2, kx3, kx3o, kp = jax.random.split(key, 4)

    params = init_params(kp)
    fused = prepare_params(params)                       # packed once, outside jit

    # Backbone feature maps (NCHW): x2 = 256ch, x3 = 512ch.
    x2 = jax.random.normal(kx2, (2, 256, 16, 16), dtype=jnp.float32)
    x3 = jax.random.normal(kx3, (2, 512, 16, 16), dtype=jnp.float32)       # hw3 = 256
    x3_odd = jax.random.normal(kx3o, (2, 512, 10, 16), dtype=jnp.float32)  # hw3 = 160

    refs = reference_forward(x2, x3, params)
    refs_odd = reference_forward(x2, x3_odd, params)

    def check(outs, ref, tag):
        for o, r in zip(outs, ref):
            assert o.shape == r.shape, (tag, o.shape, r.shape)
            err = float(jnp.max(jnp.abs(o - r)))
            assert jnp.allclose(o, r, rtol=2e-2, atol=2e-2), (tag, err)

    # 1) default tiling: one HW tile, one chunk.
    check(jax.block_until_ready(multitask_forward(x2, x3, fused)), refs, "default")
    # 2) multiple HW grid tiles -> exercises the cross-tile accumulators.
    check(jax.block_until_ready(multitask_forward(x2, x3, fused, max_hw_tile=128)),
          refs, "hw_tiles")
    # 3) in-kernel pixel chunking inside one HW tile.
    check(jax.block_until_ready(multitask_forward(x2, x3, fused, max_chunk=128)),
          refs, "chunks")
    # 4) hw3 not divisible by the tile -> masked-tail path.
    check(jax.block_until_ready(multitask_forward(x2, x3_odd, fused, max_hw_tile=128)),
          refs_odd, "masked_tail")

    print("KERNEL_OK")
</pallas_src>

<mosaic_0001>
module attributes {stable_mosaic.version = 11 : i64} {
  func.func @_fused_kernel(%arg0: i32, %arg1: i32, %arg2: memref<1x256x1xf32, #tpu.memory_space<vmem>>, %arg3: memref<1x512x256xf32, #tpu.memory_space<vmem>>, %arg4: memref<256x512xbf16, #tpu.memory_space<vmem>>, %arg5: memref<256x1xf32, #tpu.memory_space<vmem>>, %arg6: memref<128x128xbf16, #tpu.memory_space<vmem>>, %arg7: memref<128x128xbf16, #tpu.memory_space<vmem>>, %arg8: memref<256x1xf32, #tpu.memory_space<vmem>>, %arg9: memref<128x256xf32, #tpu.memory_space<vmem>>, %arg10: memref<128x1xf32, #tpu.memory_space<vmem>>, %arg11: memref<128x256xf32, #tpu.memory_space<vmem>>, %arg12: memref<128x512xf32, #tpu.memory_space<vmem>>, %arg13: memref<128x1xf32, #tpu.memory_space<vmem>>, %arg14: memref<1x128x1xf32, #tpu.memory_space<vmem>>, %arg15: memref<512x1xf32, #tpu.memory_space<vmem>>, %arg16: memref<256x1xf32, #tpu.memory_space<vmem>>) attributes {dimension_semantics = [#tpu.dimension_semantics<parallel>, #tpu.dimension_semantics<arbitrary>], iteration_bounds = array<i64: 2, 1>, scalar_prefetch = 0 : i64, scratch_operands = 2 : i64, tpu.core_type = #tpu.core_type<tc>, window_params = [{transform_indices = @transform_0, window_bounds = array<i64: 1, 256, 1>}, {transform_indices = @transform_1, window_bounds = array<i64: 1, 512, 256>}, {pipeline_mode = #tpu.pipeline_mode<synchronous>, transform_indices = @transform_2, window_bounds = array<i64: 256, 512>}, {pipeline_mode = #tpu.pipeline_mode<synchronous>, transform_indices = @transform_3, window_bounds = array<i64: 256, 1>}, {pipeline_mode = #tpu.pipeline_mode<synchronous>, transform_indices = @transform_4, window_bounds = array<i64: 128, 128>}, {pipeline_mode = #tpu.pipeline_mode<synchronous>, transform_indices = @transform_5, window_bounds = array<i64: 128, 128>}, {pipeline_mode = #tpu.pipeline_mode<synchronous>, transform_indices = @transform_6, window_bounds = array<i64: 256, 1>}, {pipeline_mode = #tpu.pipeline_mode<synchronous>, transform_indices = @transform_7, window_bounds = array<i64: 128, 256>}, {pipeline_mode = #tpu.pipeline_mode<synchronous>, transform_indices = @transform_8, window_bounds = array<i64: 128, 1>}, {pipeline_mode = #tpu.pipeline_mode<synchronous>, transform_indices = @transform_9, window_bounds = array<i64: 128, 256>}, {pipeline_mode = #tpu.pipeline_mode<synchronous>, transform_indices = @transform_10, window_bounds = array<i64: 128, 512>}, {pipeline_mode = #tpu.pipeline_mode<synchronous>, transform_indices = @transform_11, window_bounds = array<i64: 128, 1>}, {transform_indices = @transform_12, window_bounds = array<i64: 1, 128, 1>}]} {
    %c0_i32 = arith.constant 0 : i32
    %0 = arith.cmpi eq, %arg1, %c0_i32 : i32
    %1 = arith.extui %0 : i1 to i32
    %c0_i32_0 = arith.constant 0 : i32
    %2 = arith.cmpi ne, %1, %c0_i32_0 : i32
    scf.if %2 {
      %cst_37 = arith.constant 0.000000e+00 : f32
      %59 = vector.broadcast %cst_37 : f32 to vector<512x1xf32>
      %c0_38 = arith.constant 0 : index
      %c0_39 = arith.constant 0 : index
      %60 = vector.load %arg15[%c0_38, %c0_39] : memref<512x1xf32, #tpu.memory_space<vmem>>, vector<512x1xf32>
      tpu.vector_store %arg15[%c0_38, %c0_39], %59 {strides = array<i32>} : memref<512x1xf32, #tpu.memory_space<vmem>>, vector<512x1xf32>,
      %cst_40 = arith.constant 0.000000e+00 : f32
      %61 = vector.broadcast %cst_40 : f32 to vector<256x1xf32>
      %c0_41 = arith.constant 0 : index
      %c0_42 = arith.constant 0 : index
      %62 = vector.load %arg16[%c0_41, %c0_42] : memref<256x1xf32, #tpu.memory_space<vmem>>, vector<256x1xf32>
      tpu.vector_store %arg16[%c0_41, %c0_42], %61 {strides = array<i32>} : memref<256x1xf32, #tpu.memory_space<vmem>>, vector<256x1xf32>,
    } else {
    }
    %c0 = arith.constant 0 : index
    %c0_1 = arith.constant 0 : index
    %3 = vector.load %arg4[%c0, %c0_1] : memref<256x512xbf16, #tpu.memory_space<vmem>>, vector<256x512xbf16>
    %c0_2 = arith.constant 0 : index
    %c0_3 = arith.constant 0 : index
    %4 = vector.load %arg6[%c0_2, %c0_3] : memref<128x128xbf16, #tpu.memory_space<vmem>>, vector<128x128xbf16>
    %c0_4 = arith.constant 0 : index
    %c0_5 = arith.constant 0 : index
    %5 = vector.load %arg7[%c0_4, %c0_5] : memref<128x128xbf16, #tpu.memory_space<vmem>>, vector<128x128xbf16>
    %c0_6 = arith.constant 0 : index
    %c0_7 = arith.constant 0 : index
    %6 = vector.load %arg5[%c0_6, %c0_7] : memref<256x1xf32, #tpu.memory_space<vmem>>, vector<256x1xf32>
    %c0_8 = arith.constant 0 : index
    %c0_9 = arith.constant 0 : index
    %7 = vector.load %arg8[%c0_8, %c0_9] : memref<256x1xf32, #tpu.memory_space<vmem>>, vector<256x1xf32>
    %c0_10 = arith.constant 0 : index
    %c0_11 = arith.constant 0 : index
    %c0_12 = arith.constant 0 : index
    %8 = vector.load %arg3[%c0_10, %c0_11, %c0_12] : memref<1x512x256xf32, #tpu.memory_space<vmem>>, vector<1x512x256xf32>
    %9 = vector.shape_cast %8 : vector<1x512x256xf32> to vector<512x256xf32>
    %c0_13 = arith.constant 0 : index
    %c0_14 = arith.constant 0 : index
    %10 = vector.load %arg15[%c0_13, %c0_14] : memref<512x1xf32, #tpu.memory_space<vmem>>, vector<512x1xf32>
    %cst = arith.constant dense<0.000000e+00> : vector<512xf32>
    %11 = vector.multi_reduction <add>, %9, %cst [1] : vector<512x256xf32> to vector<512xf32>
    %12 = vector.shape_cast %11 : vector<512xf32> to vector<512x1xf32>
    %13 = arith.addf %10, %12 : vector<512x1xf32>
    %c0_15 = arith.constant 0 : index
    %c0_16 = arith.constant 0 : index
    %14 = vector.load %arg15[%c0_15, %c0_16] : memref<512x1xf32, #tpu.memory_space<vmem>>, vector<512x1xf32>
    tpu.vector_store %arg15[%c0_15, %c0_16], %13 {strides = array<i32>} : memref<512x1xf32, #tpu.memory_space<vmem>>, vector<512x1xf32>,
    %15 = arith.truncf %9 : vector<512x256xf32> to vector<512x256xbf16>
    %cst_17 = arith.constant dense<0.000000e+00> : vector<256x256xf32>
    %16 = tpu.matmul %3, %15, %cst_17 {dimension_numbers = #tpu.dot_dimension_numbers<[1], [0], [0], [1], [0, 0, 1, 1], [], []>} : vector<256x512xbf16>, vector<512x256xbf16>, vector<256x256xf32> -> vector<256x256xf32>
    %17 = vector.broadcast %6 : vector<256x1xf32> to vector<256x256xf32>
    %18 = arith.addf %16, %17 : vector<256x256xf32>
    %cst_18 = arith.constant 0.000000e+00 : f32
    %19 = vector.broadcast %cst_18 : f32 to vector<256x256xf32>
    %20 = arith.maximumf %18, %19 : vector<256x256xf32>
    %cst_19 = arith.constant 6.000000e+00 : f32
    %21 = vector.broadcast %cst_19 : f32 to vector<256x256xf32>
    %22 = arith.minimumf %20, %21 : vector<256x256xf32>
    %23 = arith.truncf %22 : vector<256x256xf32> to vector<256x256xbf16>
    %24 = vector.extract_strided_slice %23 {offsets = [0, 0], sizes = [128, 256], strides = [1, 1]} : vector<256x256xbf16> to vector<128x256xbf16>
    %cst_20 = arith.constant dense<0.000000e+00> : vector<128x256xf32>
    %25 = tpu.matmul %4, %24, %cst_20 {dimension_numbers = #tpu.dot_dimension_numbers<[1], [0], [0], [1], [0, 0, 1, 1], [], []>} : vector<128x128xbf16>, vector<128x256xbf16>, vector<128x256xf32> -> vector<128x256xf32>
    %26 = vector.extract_strided_slice %7 {offsets = [0, 0], sizes = [128, 1], strides = [1, 1]} : vector<256x1xf32> to vector<128x1xf32>
    %27 = vector.broadcast %26 : vector<128x1xf32> to vector<128x256xf32>
    %28 = arith.addf %25, %27 : vector<128x256xf32>
    %cst_21 = arith.constant 0.000000e+00 : f32
    %29 = vector.broadcast %cst_21 : f32 to vector<128x256xf32>
    %30 = arith.maximumf %28, %29 : vector<128x256xf32>
    %cst_22 = arith.constant 6.000000e+00 : f32
    %31 = vector.broadcast %cst_22 : f32 to vector<128x256xf32>
    %32 = arith.minimumf %30, %31 : vector<128x256xf32>
    %33 = vector.extract_strided_slice %23 {offsets = [128, 0], sizes = [128, 256], strides = [1, 1]} : vector<256x256xbf16> to vector<128x256xbf16>
    %cst_23 = arith.constant dense<0.000000e+00> : vector<128x256xf32>
    %34 = tpu.matmul %5, %33, %cst_23 {dimension_numbers = #tpu.dot_dimension_numbers<[1], [0], [0], [1], [0, 0, 1, 1], [], []>} : vector<128x128xbf16>, vector<128x256xbf16>, vector<128x256xf32> -> vector<128x256xf32>
    %35 = vector.extract_strided_slice %7 {offsets = [128, 0], sizes = [128, 1], strides = [1, 1]} : vector<256x1xf32> to vector<128x1xf32>
    %36 = vector.broadcast %35 : vector<128x1xf32> to vector<128x256xf32>
    %37 = arith.addf %34, %36 : vector<128x256xf32>
    %cst_24 = arith.constant 0.000000e+00 : f32
    %38 = vector.broadcast %cst_24 : f32 to vector<128x256xf32>
    %39 = arith.maximumf %37, %38 : vector<128x256xf32>
    %cst_25 = arith.constant 6.000000e+00 : f32
    %40 = vector.broadcast %cst_25 : f32 to vector<128x256xf32>
    %41 = arith.minimumf %39, %40 : vector<128x256xf32>
    %42 = vector.extract_strided_slice %22 {offsets = [0, 0], sizes = [128, 256], strides = [1, 1]} : vector<256x256xf32> to vector<128x256xf32>
    %43 = arith.addf %42, %32 : vector<128x256xf32>
    %44 = vector.extract_strided_slice %22 {offsets = [128, 0], sizes = [128, 256], strides = [1, 1]} : vector<256x256xf32> to vector<128x256xf32>
    %45 = arith.addf %44, %41 : vector<128x256xf32>
    %c0_26 = arith.constant 0 : index
    %c0_27 = arith.constant 0 : index
    %46 = vector.load %arg16[%c0_26, %c0_27] : memref<256x1xf32, #tpu.memory_space<vmem>>, vector<128x1xf32>
    %cst_28 = arith.constant dense<0.000000e+00> : vector<128xf32>
    %47 = vector.multi_reduction <add>, %43, %cst_28 [1] : vector<128x256xf32> to vector<128xf32>
    %48 = vector.shape_cast %47 : vector<128xf32> to vector<128x1xf32>
    %49 = arith.addf %46, %48 : vector<128x1xf32>
    %c0_29 = arith.constant 0 : index
    %c0_30 = arith.constant 0 : index
    %50 = vector.load %arg16[%c0_29, %c0_30] : memref<256x1xf32, #tpu.memory_space<vmem>>, vector<128x1xf32>
    tpu.vector_store %arg16[%c0_29, %c0_30], %49 {strides = array<i32>} : memref<256x1xf32, #tpu.memory_space<vmem>>, vector<128x1xf32>,
    %c128 = arith.constant 128 : index
    %c0_31 = arith.constant 0 : index
    %51 = vector.load %arg16[%c128, %c0_31] : memref<256x1xf32, #tpu.memory_space<vmem>>, vector<128x1xf32>
    %cst_32 = arith.constant dense<0.000000e+00> : vector<128xf32>
    %52 = vector.multi_reduction <add>, %45, %cst_32 [1] : vector<128x256xf32> to vector<128xf32>
    %53 = vector.shape_cast %52 : vector<128xf32> to vector<128x1xf32>
    %54 = arith.addf %51, %53 : vector<128x1xf32>
    %c128_33 = arith.constant 128 : index
    %c0_34 = arith.constant 0 : index
    %55 = vector.load %arg16[%c128_33, %c0_34] : memref<256x1xf32, #tpu.memory_space<vmem>>, vector<128x1xf32>
    tpu.vector_store %arg16[%c128_33, %c0_34], %54 {strides = array<i32>} : memref<256x1xf32, #tpu.memory_space<vmem>>, vector<128x1xf32>,
    %c0_i32_35 = arith.constant 0 : i32
    %56 = arith.cmpi eq, %arg1, %c0_i32_35 : i32
    %57 = arith.extui %56 : i1 to i32
    %c0_i32_36 = arith.constant 0 : i32
    %58 = arith.cmpi ne, %57, %c0_i32_36 : i32
    scf.if %58 {
      %c0_37 = arith.constant 0 : index
      %c0_38 = arith.constant 0 : index
      %59 = vector.load %arg15[%c0_37, %c0_38] : memref<512x1xf32, #tpu.memory_space<vmem>>, vector<512x1xf32>
      %cst_39 = arith.constant 3.906250e-03 : f32
      %60 = vector.broadcast %cst_39 : f32 to vector<512x1xf32>
      %61 = arith.mulf %59, %60 : vector<512x1xf32>
      %c0_40 = arith.constant 0 : index
      %c0_41 = arith.constant 0 : index
      %c0_42 = arith.constant 0 : index
      %62 = vector.load %arg2[%c0_40, %c0_41, %c0_42] : memref<1x256x1xf32, #tpu.memory_space<vmem>>, vector<1x256x1xf32>
      %63 = vector.shape_cast %62 : vector<1x256x1xf32> to vector<256x1xf32>
      %c0_43 = arith.constant 0 : index
      %c0_44 = arith.constant 0 : index
      %64 = vector.load %arg11[%c0_43, %c0_44] : memref<128x256xf32, #tpu.memory_space<vmem>>, vector<128x256xf32>
      %cst_45 = arith.constant dense<0.000000e+00> : vector<128x1xf32>
      %65 = tpu.matmul %64, %63, %cst_45 {dimension_numbers = #tpu.dot_dimension_numbers<[1], [0], [0], [1], [0, 0, 1, 1], [], []>} : vector<128x256xf32>, vector<256x1xf32>, vector<128x1xf32> -> vector<128x1xf32>
      %c0_46 = arith.constant 0 : index
      %c0_47 = arith.constant 0 : index
      %66 = vector.load %arg12[%c0_46, %c0_47] : memref<128x512xf32, #tpu.memory_space<vmem>>, vector<128x512xf32>
      %cst_48 = arith.constant dense<0.000000e+00> : vector<128x1xf32>
      %67 = tpu.matmul %66, %61, %cst_48 {dimension_numbers = #tpu.dot_dimension_numbers<[1], [0], [0], [1], [0, 0, 1, 1], [], []>} : vector<128x512xf32>, vector<512x1xf32>, vector<128x1xf32> -> vector<128x1xf32>
      %68 = arith.addf %65, %67 : vector<128x1xf32>
      %c0_49 = arith.constant 0 : index
      %c0_50 = arith.constant 0 : index
      %69 = vector.load %arg13[%c0_49, %c0_50] : memref<128x1xf32, #tpu.memory_space<vmem>>, vector<128x1xf32>
      %70 = arith.addf %68, %69 : vector<128x1xf32>
      %cst_51 = arith.constant 0.000000e+00 : f32
      %71 = vector.broadcast %cst_51 : f32 to vector<128x1xf32>
      %72 = arith.subf %71, %70 : vector<128x1xf32>
      %73 = math.exp %72 : vector<128x1xf32>
      %cst_52 = arith.constant 1.000000e+00 : f32
      %74 = vector.broadcast %cst_52 : f32 to vector<128x1xf32>
      %75 = arith.addf %74, %73 : vector<128x1xf32>
      %76 = tpu.reciprocal %75 {approx = true} : vector<128x1xf32> -> vector<128x1xf32>
      %c0_53 = arith.constant 0 : index
      %c0_54 = arith.constant 0 : index
      %77 = vector.load %arg16[%c0_53, %c0_54] : memref<256x1xf32, #tpu.memory_space<vmem>>, vector<256x1xf32>
      %cst_55 = arith.constant 3.906250e-03 : f32
      %78 = vector.broadcast %cst_55 : f32 to vector<256x1xf32>
      %79 = arith.mulf %77, %78 : vector<256x1xf32>
      %c0_56 = arith.constant 0 : index
      %c0_57 = arith.constant 0 : index
      %80 = vector.load %arg9[%c0_56, %c0_57] : memref<128x256xf32, #tpu.memory_space<vmem>>, vector<128x256xf32>
      %cst_58 = arith.constant dense<0.000000e+00> : vector<128x1xf32>
      %81 = tpu.matmul %80, %79, %cst_58 {dimension_numbers = #tpu.dot_dimension_numbers<[1], [0], [0], [1], [0, 0, 1, 1], [], []>} : vector<128x256xf32>, vector<256x1xf32>, vector<128x1xf32> -> vector<128x1xf32>
      %c0_59 = arith.constant 0 : index
      %c0_60 = arith.constant 0 : index
      %82 = vector.load %arg10[%c0_59, %c0_60] : memref<128x1xf32, #tpu.memory_space<vmem>>, vector<128x1xf32>
      %83 = arith.addf %81, %82 : vector<128x1xf32>
      %cst_61 = arith.constant 0.000000e+00 : f32
      %84 = vector.broadcast %cst_61 : f32 to vector<128x1xf32>
      %85 = arith.maximumf %83, %84 : vector<128x1xf32>
      %cst_62 = arith.constant 6.000000e+00 : f32
      %86 = vector.broadcast %cst_62 : f32 to vector<128x1xf32>
      %87 = arith.minimumf %85, %86 : vector<128x1xf32>
      %88 = tpu.iota {dimensions = array<i32: 0>} : vector<128x1xi32>
      %c42_i32 = arith.constant 42 : i32
      %89 = vector.broadcast %c42_i32 : i32 to vector<128x1xi32>
      %90 = arith.cmpi slt, %88, %89 : vector<128x1xi32>
      %91 = arith.select %90, %76, %87 : vector<128x1xi1>, vector<128x1xf32>
      %c0_63 = arith.constant 0 : index
      %c0_64 = arith.constant 0 : index
      %c0_65 = arith.constant 0 : index
      %92 = vector.load %arg14[%c0_63, %c0_64, %c0_65] : memref<1x128x1xf32, #tpu.memory_space<vmem>>, vector<1x128x1xf32>
      %93 = vector.shape_cast %92 : vector<1x128x1xf32> to vector<128x1xf32>
      %94 = vector.shape_cast %91 : vector<128x1xf32> to vector<1x128x1xf32>
      tpu.vector_store %arg14[%c0_63, %c0_64, %c0_65], %94 {strides = array<i32>} : memref<1x128x1xf32, #tpu.memory_space<vmem>>, vector<1x128x1xf32>,
    } else {
    }
    return
  }
  func.func @transform_0(%arg0: i32, %arg1: i32) -> (i32, i32, i32) {
    %c0_i32 = arith.constant 0 : i32
    %c0_i32_0 = arith.constant 0 : i32
    %c0_i32_1 = arith.constant 0 : i32
    return %arg0, %c0_i32, %c0_i32_0 : i32, i32, i32
  }
  func.func @transform_1(%arg0: i32, %arg1: i32) -> (i32, i32, i32) {
    %c0_i32 = arith.constant 0 : i32
    %c0_i32_0 = arith.constant 0 : i32
    return %arg0, %c0_i32, %arg1 : i32, i32, i32
  }
  func.func @transform_2(%arg0: i32, %arg1: i32) -> (i32, i32) {
    %c0_i32 = arith.constant 0 : i32
    %c0_i32_0 = arith.constant 0 : i32
    %c0_i32_1 = arith.constant 0 : i32
    return %c0_i32, %c0_i32_0 : i32, i32
  }
  func.func @transform_3(%arg0: i32, %arg1: i32) -> (i32, i32) {
    %c0_i32 = arith.constant 0 : i32
    %c0_i32_0 = arith.constant 0 : i32
    %c0_i32_1 = arith.constant 0 : i32
    return %c0_i32, %c0_i32_0 : i32, i32
  }
  func.func @transform_4(%arg0: i32, %arg1: i32) -> (i32, i32) {
    %c0_i32 = arith.constant 0 : i32
    %c0_i32_0 = arith.constant 0 : i32
    %c0_i32_1 = arith.constant 0 : i32
    return %c0_i32, %c0_i32_0 : i32, i32
  }
  func.func @transform_5(%arg0: i32, %arg1: i32) -> (i32, i32) {
    %c0_i32 = arith.constant 0 : i32
    %c0_i32_0 = arith.constant 0 : i32
    %c0_i32_1 = arith.constant 0 : i32
    return %c0_i32, %c0_i32_0 : i32, i32
  }
  func.func @transform_6(%arg0: i32, %arg1: i32) -> (i32, i32) {
    %c0_i32 = arith.constant 0 : i32
    %c0_i32_0 = arith.constant 0 : i32
    %c0_i32_1 = arith.constant 0 : i32
    return %c0_i32, %c0_i32_0 : i32, i32
  }
  func.func @transform_7(%arg0: i32, %arg1: i32) -> (i32, i32) {
    %c0_i32 = arith.constant 0 : i32
    %c0_i32_0 = arith.constant 0 : i32
    %c0_i32_1 = arith.constant 0 : i32
    return %c0_i32, %c0_i32_0 : i32, i32
  }
  func.func @transform_8(%arg0: i32, %arg1: i32) -> (i32, i32) {
    %c0_i32 = arith.constant 0 : i32
    %c0_i32_0 = arith.constant 0 : i32
    %c0_i32_1 = arith.constant 0 : i32
    return %c0_i32, %c0_i32_0 : i32, i32
  }
  func.func @transform_9(%arg0: i32, %arg1: i32) -> (i32, i32) {
    %c0_i32 = arith.constant 0 : i32
    %c0_i32_0 = arith.constant 0 : i32
    %c0_i32_1 = arith.constant 0 : i32
    return %c0_i32, %c0_i32_0 : i32, i32
  }
  func.func @transform_10(%arg0: i32, %arg1: i32) -> (i32, i32) {
    %c0_i32 = arith.constant 0 : i32
    %c0_i32_0 = arith.constant 0 : i32
    %c0_i32_1 = arith.constant 0 : i32
    return %c0_i32, %c0_i32_0 : i32, i32
  }
  func.func @transform_11(%arg0: i32, %arg1: i32) -> (i32, i32) {
    %c0_i32 = arith.constant 0 : i32
    %c0_i32_0 = arith.constant 0 : i32
    %c0_i32_1 = arith.constant 0 : i32
    return %c0_i32, %c0_i32_0 : i32, i32
  }
  func.func @transform_12(%arg0: i32, %arg1: i32) -> (i32, i32, i32) {
    %c0_i32 = arith.constant 0 : i32
    %c0_i32_0 = arith.constant 0 : i32
    %c0_i32_1 = arith.constant 0 : i32
    return %arg0, %c0_i32, %c0_i32_0 : i32, i32, i32
  }
}

</mosaic_0001>

<bundles_post_ra>
// kernel: multitask_forward.1
= control target key start
LH: loop header
LB: loop body
LE: loop exit
PB: predicated region body
PF: predicated region fallthrough
CT: control target
= control target key end

     0   :  { %s5377_s21 = smov 0   ;;  %s5379_s22 = smov 0   ;;  %s7790_s0 = inlined_call_operand.vmem [shape: f32[2,256,1], index: 0, kind: input, shape index: {}]   ;;  %s7791_s1 = inlined_call_operand.vmem [shape: f32[2,512,256], index: 1, kind: input, shape index: {}]   ;;  %s7792_s2 = inlined_call_operand.vmem [shape: bf16[256,512], index: 2, kind: input, shape index: {}]   ;;  %s7793_s3 = inlined_call_operand.vmem [shape: f32[256,1], index: 3, kind: input, shape index: {}]   ;;  %s7794_s4 = inlined_call_operand.vmem [shape: bf16[128,128], index: 4, kind: input, shape index: {}]   ;;  %s7795_s5 = inlined_call_operand.vmem [shape: bf16[128,128], index: 5, kind: input, shape index: {}]   ;;  %s7796_s6 = inlined_call_operand.vmem [shape: f32[256,1], index: 6, kind: input, shape index: {}]   ;;  %s7797_s7 = inlined_call_operand.vmem [shape: f32[128,256], index: 7, kind: input, shape index: {}]   ;;  %s7798_s8 = inlined_call_operand.vmem [shape: f32[128,1], index: 8, kind: input, shape index: {}]   ;;  %s7799_s9 = inlined_call_operand.vmem [shape: f32[128,256], index: 9, kind: input, shape index: {}]   ;;  %s7800_s10 = inlined_call_operand.vmem [shape: f32[128,512], index: 10, kind: input, shape index: {}]   ;;  %s7801_s11 = inlined_call_operand.vmem [shape: f32[128,1], index: 11, kind: input, shape index: {}]   ;;  %s7802_s12 = inlined_call_operand.vmem [shape: f32[2,128,1], index: 12, kind: output, shape index: {}]  }
   0x1   :  { %s5381_s23 = smov 0  }
   0x2 LB: > { %s34_s24 = sadd.s32 1, %s5304_s22  ;;  %p4438_p0 = scmp.ge.s32.totalorder %s5308_s23, 1  ;;  %s5308_s23 = sphi %s5381_s23, %s22_s23   ;;  %s5304_s22 = sphi %s5379_s22, %s7973_s22   ;;  %s5300_s21 = sphi %s5377_s21, %s7972_s21  }
   0x3   : > { %p36_p1 = scmp.ge.s32.totalorder %s34_s24, 2  ;;  %p391_p2 = scmp.lt.s32.totalorder %s5308_s23, 3 }
   0x5   : > { %s7975_s24 = smov (%p36_p1, %s34_s24), 0  ;;  %p392_p3 = pnand %p4438_p0, %p391_p2 }
   0x7   : > { %395 = sbr.rel (%p392_p3) target bundleno = 1271 (0x4f7), region = 68 }
   0xe   : > { %p442_p4 = scmp.lt.s32.totalorder %s5300_s21, 1  ;;  %v660_v0 = vld [vmem:[%s7793_s3] sm:$0xff]  ;;  %v662_v1 = vld [vmem:[%s7793_s3 + $0x10] sm:$0xff]  ;;  %v7803_v2 = vmov 0   ;;  %v661_v3 = vld [vmem:[%s7793_s3 + $0x8] sm:$0xff]  ;;  %vm467_vm0 = vcmask 7168  }
   0xf   : > { %5148 = vset.pattern.permute.xlu0 %v7803_v2  ;;  %5149 = vset.pattern.permute.xlu1 %v7803_v2  ;;  %v663_v4 = vld [vmem:[%s7793_s3 + $0x18] sm:$0xff]  ;;  %v664_v5 = vld [vmem:[%s7793_s3 + $0x20] sm:$0xff]  ;;  %v665_v9 = vld [vmem:[%s7793_s3 + $0x28] sm:$0xff] }
  0x10   : > { %s7977_s21 = smov (!%p442_p4, %s5300_s21), 1  ;;  %1303 = vperm.xlu0 %5148, %v660_v0   ;;  %1313 = vperm.xlu1 %5149, %v662_v1   ;;  %v666_v33 = vld [vmem:[%s7793_s3 + $0x30] sm:$0xff]  ;;  %v667_v36 = vld [vmem:[%s7793_s3 + $0x38] sm:$0xff]  ;;  %v668_v40 = vld [vmem:[%s7793_s3 + $0x40] sm:$0xff] }
  0x11   : > { %2487 = vmatprep.mubr.bf16.mxu1 %v7803_v2  ;;  %s4528_s15 = sshll.u32 %s7977_s21, 10  ;;  %v669_v45 = vld [vmem:[%s7793_s3 + $0x48] sm:$0xff]  ;;  %v670_v50 = vld [vmem:[%s7793_s3 + $0x50] sm:$0xff]  ;;  %v671_v53 = vld [vmem:[%s7793_s3 + $0x58] sm:$0xff]  ;;  %s4527_s16 = sshll.u32 %s7977_s21, 8 }
  0x12   : > { %s5416_s18 = scalar_lea.vmem %s7791_s1, %s4528_s15  ;;  %v672_v56 = vld [vmem:[%s7793_s3 + $0x60] sm:$0xff]  ;;  %v673_v59 = vld [vmem:[%s7793_s3 + $0x68] sm:$0xff]  ;;  %s7121_s26 = scalar_lea.vmem %s7790_s0, %s4527_s16 }
  0x13   : > { %v725_v6 = vld [vmem:[%s5416_s18 + $0x8] sm:$0xff]  ;;  %v727_v7 = vld [vmem:[%s5416_s18 + $0x18] sm:$0xff]  ;;  %v724_v8 = vld [vmem:[%s5416_s18] sm:$0xff]  ;;  %s4529_s30 = sshll.u32 %s7977_s21, 7 }
  0x14   : > { %1308 = vperm.xlu0 %5148, %v661_v3   ;;  %1318 = vperm.xlu1 %5149, %v663_v4   ;;  %v1238_v10 = vpack.c.bf16 %v727_v7, %v725_v6  ;;  %v726_v11 = vld [vmem:[%s5416_s18 + $0x10] sm:$0xff]  ;;  %v729_v12 = vld [vmem:[%s5416_s18 + $0x28] sm:$0xff]  ;;  %v731_v13 = vld [vmem:[%s5416_s18 + $0x38] sm:$0xff]  ;;  %v5430_v14 = vadd.f32 %v725_v6, %v724_v8  ;;  %s7620_s15 = scalar_lea.vmem %s7802_s12, %s4529_s30 }
  0x15   : > { %v1237_v15 = vpack.c.bf16 %v726_v11, %v724_v8  ;;  %v1240_v16 = vpack.c.bf16 %v731_v13, %v729_v12  ;;  %v728_v17 = vld [vmem:[%s5416_s18 + $0x20] sm:$0xff]  ;;  %v730_v18 = vld [vmem:[%s5416_s18 + $0x30] sm:$0xff]  ;;  %v733_v19 = vld [vmem:[%s5416_s18 + $0x48] sm:$0xff]  ;;  %v5435_v20 = vadd.f32 %v727_v7, %v726_v11 }
  0x16   : > { %1781 = vmatprep.subr.bf16.mxu0 %v1238_v10  ;;  %v735_v21 = vld [vmem:[%s5416_s18 + $0x58] sm:$0xff]  ;;  %v732_v22 = vld [vmem:[%s5416_s18 + $0x40] sm:$0xff]  ;;  %v5439_v23 = vadd.f32 %v729_v12, %v728_v17  ;;  %v5441_v24 = vadd.f32 %v731_v13, %v730_v18  ;;  %v1239_v25 = vpack.c.bf16 %v730_v18, %v728_v17  ;;  %v734_v26 = vld [vmem:[%s5416_s18 + $0x50] sm:$0xff] }
  0x17   : > { %1782 = vmatpush1.bf16.msra.mxu0 %v1237_v15  ;;  %v737_v27 = vld [vmem:[%s5416_s18 + $0x68] sm:$0xff]  ;;  %v736_v28 = vld [vmem:[%s5416_s18 + $0x60] sm:$0xff]  ;;  %v5446_v29 = vadd.f32 %v733_v19, %v732_v22  ;;  %v1242_v30 = vpack.c.bf16 %v735_v21, %v733_v19  ;;  %v739_v31 = vld [vmem:[%s5416_s18 + $0x78] sm:$0xff]  ;;  %v5453_v34 = vadd.f32 %v735_v21, %v734_v26  ;;  %v1241_v38 = vpack.c.bf16 %v734_v26, %v732_v22 }
  0x18   : > { %1323 = vperm.xlu0 %5148, %v664_v5   ;;  %1783 = vmatprep.subr.bf16.mxu0 %v1240_v16  ;;  %v738_v32 = vld [vmem:[%s5416_s18 + $0x70] sm:$0xff]  ;;  %v5455_v35 = vadd.f32 %v737_v27, %v736_v28  ;;  %v741_v39 = vld [vmem:[%s5416_s18 + $0x88] sm:$0xff]  ;;  %v1244_v41 = vpack.c.bf16 %v739_v31, %v737_v27  ;;  %v743_v42 = vld [vmem:[%s5416_s18 + $0x98] sm:$0xff] }
  0x19   : > { %1328 = vperm.xlu1 %5149, %v665_v9   ;;  %v5460_v37 = vadd.f32 %v739_v31, %v738_v32  ;;  %v740_v43 = vld [vmem:[%s5416_s18 + $0x80] sm:$0xff]  ;;  %v742_v44 = vld [vmem:[%s5416_s18 + $0x90] sm:$0xff]  ;;  %v1243_v48 = vpack.c.bf16 %v738_v32, %v736_v28  ;;  %v1246_v49 = vpack.c.bf16 %v743_v42, %v741_v39  ;;  %v745_v51 = vld [vmem:[%s5416_s18 + $0xa8] sm:$0xff] }
  0x1a   : > { %v5472_v46 = vadd.f32 %v741_v39, %v740_v43  ;;  %v5474_v47 = vadd.f32 %v743_v42, %v742_v44  ;;  %v747_v52 = vld [vmem:[%s5416_s18 + $0xb8] sm:$0xff]  ;;  %v744_v54 = vld [vmem:[%s5416_s18 + $0xa0] sm:$0xff]  ;;  %v746_v55 = vld [vmem:[%s5416_s18 + $0xb0] sm:$0xff]  ;;  %v1245_v58 = vpack.c.bf16 %v742_v44, %v740_v43 }
  0x1b   : > { %1784 = vmatpush1.bf16.msra.mxu0 %v1239_v25  ;;  %v5490_v57 = vld [vmem:[%s5416_s18 + $0x168] sm:$0xff]  ;;  %v5496_v60 = vld [vmem:[%s5416_s18 + $0x178] sm:$0xff]  ;;  %v5499_v61 = vld [vmem:[%s5416_s18 + $0x160] sm:$0xff]  ;;  %v1248_v63 = vpack.c.bf16 %v747_v52, %v745_v51  ;;  %v5526_v9 = vadd.f32 %v745_v51, %v744_v54  ;;  %v5528_v10 = vadd.f32 %v747_v52, %v746_v55  ;;  %v1247_v18 = vpack.c.bf16 %v746_v55, %v744_v54 }
  0x1c   : > { %1333 = vperm.xlu0 %5148, %v666_v33   ;;  %1785 = vmatprep.subr.bf16.mxu0 %v1242_v30  ;;  %v5502_v62 = vld [vmem:[%s5416_s18 + $0x170] sm:$0xff]  ;;  %v749_v0 = vld [vmem:[%s5416_s18 + $0xc8] sm:$0xff]  ;;  %v751_v1 = vld [vmem:[%s5416_s18 + $0xd8] sm:$0xff]  ;;  %v5511_v4 = vadd.f32 %v5490_v57, %v5499_v61 }
  0x1d   : > { %1338 = vperm.xlu1 %5149, %v667_v36   ;;  %v5507_v3 = vld [vmem:[%s5416_s18 + $0x188] sm:$0xff]  ;;  %v5515_v5 = vadd.f32 %v5496_v60, %v5502_v62  ;;  %v5518_v6 = vld [vmem:[%s5416_s18 + $0x198] sm:$0xff]  ;;  %v5521_v7 = vld [vmem:[%s5416_s18 + $0x180] sm:$0xff]  ;;  %7839 = vst [vmem:[#allocation4_spill] sm:$0xff] %v5528_v10  ;;  %v1250_v26 = vpack.c.bf16 %v751_v1, %v749_v0 }
  0x1e   : > { %v5524_v8 = vld [vmem:[%s5416_s18 + $0x190] sm:$0xff]  ;;  %v748_v11 = vld [vmem:[%s5416_s18 + $0xc0] sm:$0xff]  ;;  %v5536_v15 = vld [vmem:[%s5416_s18 + $0x1a8] sm:$0xff]  ;;  %v5540_v16 = vadd.f32 %v5507_v3, %v5521_v7 }
  0x1f   : > { %1786 = vmatpush1.bf16.msra.mxu0 %v1241_v38  ;;  %v750_v12 = vld [vmem:[%s5416_s18 + $0xd0] sm:$0xff]  ;;  %v5544_v17 = vadd.f32 %v5518_v6, %v5524_v8  ;;  %v675_v19 = vld [vmem:[%s7793_s3 + $0x78] sm:$0xff]  ;;  %v5553_v22 = vld [vmem:[%s5416_s18 + $0x1a0] sm:$0xff] }
  0x20   : > { %1343 = vperm.xlu0 %5148, %v668_v40   ;;  %1787 = vmatprep.subr.bf16.mxu0 %v1244_v41  ;;  %v674_v13 = vld [vmem:[%s7793_s3 + $0x70] sm:$0xff]  ;;  %v5550_v21 = vld [vmem:[%s5416_s18 + $0x1b8] sm:$0xff]  ;;  %v753_v27 = vld [vmem:[%s5416_s18 + $0xe8] sm:$0xff]  ;;  %v5565_v31 = vadd.f32 %v5536_v15, %v5553_v22  ;;  %v1249_v44 = vpack.c.bf16 %v750_v12, %v748_v11 }
  0x21   : > { %1348 = vperm.xlu1 %5149, %v669_v45   ;;  %v5556_v25 = vld [vmem:[%s5416_s18 + $0x1b0] sm:$0xff]  ;;  %v755_v28 = vld [vmem:[%s5416_s18 + $0xf8] sm:$0xff]  ;;  %v5561_v30 = vld [vmem:[%s5416_s18 + $0x1c8] sm:$0xff] }
  0x22   : > { %v5569_v32 = vadd.f32 %v5550_v21, %v5556_v25  ;;  %v5572_v33 = vld [vmem:[%s5416_s18 + $0x1d8] sm:$0xff]  ;;  %v5575_v36 = vld [vmem:[%s5416_s18 + $0x1c0] sm:$0xff]  ;;  %v5578_v38 = vld [vmem:[%s5416_s18 + $0x1d0] sm:$0xff]  ;;  %v1252_v51 = vpack.c.bf16 %v755_v28, %v753_v27 }
  0x23   : > { %1788 = vmatpush1.bf16.msra.mxu0 %v1243_v48  ;;  %v752_v39 = vld [vmem:[%s5416_s18 + $0xe0] sm:$0xff]  ;;  %v754_v40 = vld [vmem:[%s5416_s18 + $0xf0] sm:$0xff]  ;;  %v5587_v42 = vadd.f32 %v5561_v30, %v5575_v36  ;;  %v5591_v43 = vadd.f32 %v5572_v33, %v5578_v38  ;;  %v5594_v45 = vld [vmem:[%s5416_s18 + $0x108] sm:$0xff] }
  0x24   : > { %1353 = vperm.xlu0 %5148, %v670_v50   ;;  %1789 = vmatprep.subr.bf16.mxu0 %v1246_v49  ;;  %v676_v41 = vld [vmem:[%s7793_s3 + $0x80] sm:$0xff]  ;;  %v5597_v48 = vld [vmem:[%s5416_s18 + $0x118] sm:$0xff]  ;;  %v677_v49 = vld [vmem:[%s7793_s3 + $0x88] sm:$0xff] }
  0x25   : > { %1358 = vperm.xlu1 %5149, %v671_v53   ;;  %7840 = vst [vmem:[#allocation5_spill] sm:$0xff] %v5587_v42  ;;  %7841 = vst [vmem:[#allocation6_spill] sm:$0xff] %v5591_v43  ;;  %v5603_v50 = vld [vmem:[%s5416_s18 + $0x1e8] sm:$0xff]  ;;  %v5606_v52 = vld [vmem:[%s5416_s18 + $0x1f8] sm:$0xff] }
  0x26   : > { %v5609_v53 = vld [vmem:[%s5416_s18 + $0x1e0] sm:$0xff]  ;;  %v5612_v54 = vld [vmem:[%s5416_s18 + $0x1f0] sm:$0xff]  ;;  %v5658_v2 = vld [vmem:[%s5416_s18 + $0x148] sm:$0xff] }
  0x27   : > { %1790 = vmatpush1.bf16.msra.mxu0 %v1245_v58  ;;  %v5152_v55 = vld [vmem:[%s7792_s2 + $0x4] ss:$16 sps:$4 sm:$0xff]   ;;  %v5619_v58 = vadd.f32 %v751_v1, %v750_v12  ;;  %v1254_v1 = vpack.c.bf16 %v5597_v48, %v5594_v45 }
  0x28   : > { %1363 = vperm.xlu0 %5148, %v672_v56   ;;  %1791 = vmatprep.subr.bf16.mxu0 %v1248_v63  ;;  %v5617_v56 = vadd.f32 %v749_v0, %v748_v11  ;;  %v5626_v63 = vadd.f32 %v5603_v50, %v5609_v53  ;;  %v5636_v0 = vld [vmem:[%s5416_s18 + $0x128] sm:$0xff]  ;;  %v5641_v11 = vld [vmem:[%s5416_s18 + $0x138] sm:$0xff]  ;;  %v678_v12 = vld [vmem:[%s7793_s3 + $0x90] sm:$0xff] }
  0x29   : > { %1368 = vperm.xlu1 %5149, %v673_v59   ;;  %7843 = vst [vmem:[#allocation8_spill] sm:$0xff] %v5619_v58  ;;  %v5622_v59 = vld [vmem:[%s5416_s18 + $0x100] sm:$0xff]  ;;  %1813 = vmatprep.mubr.bf16.mxu0 %v5152_v55  ;;  %v5673_v58 = vadd.f32 %v755_v28, %v754_v40  ;;  %v683_v28 = vld [vmem:[%s7793_s3 + $0xb8] sm:$0xff] }
  0x2a   : > { %7842 = vst [vmem:[#allocation7_spill] sm:$0xff] %v5617_v56  ;;  %7844 = vst [vmem:[#allocation9_spill] sm:$0xff] %v5626_v63  ;;  %v680_v55 = vld [vmem:[%s7793_s3 + $0xa0] sm:$0xff]  ;;  %v5671_v63 = vadd.f32 %v753_v27, %v752_v39  ;;  %v5683_v56 = vld [vmem:[%s5416_s18 + $0x150] sm:$0xff] }
  0x2b   : > { %1792 = vmatpush1.bf16.msra.mxu0 %v1247_v18  ;;  %v1251_v18 = vpack.c.bf16 %v754_v40, %v752_v39  ;;  %7847 = vst [vmem:[#allocation12_spill] sm:$0xff] %v5673_v58  ;;  %v682_v27 = vld [vmem:[%s7793_s3 + $0xb0] sm:$0xff]  ;;  %v684_v39 = vld [vmem:[%s7793_s3 + $0xc0] sm:$0xff] }
  0x2c   : > { %1373 = vperm.xlu0 %5148, %v674_v13   ;;  %1793 = vmatprep.subr.bf16.mxu0 %v1250_v26  ;;  %v5630_v13 = vadd.f32 %v5606_v52, %v5612_v54  ;;  %v679_v26 = vld [vmem:[%s7793_s3 + $0x98] sm:$0xff]  ;;  %7846 = vst [vmem:[#allocation11_spill] sm:$0xff] %v5671_v63  ;;  %v5708_v58 = vld [vmem:[%s5416_s18 + $0x210] sm:$0xff] }
  0x2d   : > { %1378 = vperm.xlu1 %5149, %v675_v19   ;;  %v5633_v19 = vld [vmem:[%s5416_s18 + $0x110] sm:$0xff] }
  0x2e   : > { %7845 = vst [vmem:[#allocation10_spill] sm:$0xff] %v5630_v13  ;;  %v5663_v13 = vld [vmem:[%s5416_s18 + $0x158] sm:$0xff] }
  0x2f   : > { %1794 = vmatpush1.bf16.msra.mxu0 %v1249_v44  ;;  %v5650_v44 = vld [vmem:[%s5416_s18 + $0x120] sm:$0xff] }
  0x30   : > { %1383 = vperm.xlu0 %5148, %v676_v41   ;;  %1795 = vmatprep.subr.bf16.mxu0 %v1252_v51  ;;  %v1253_v41 = vpack.c.bf16 %v5633_v19, %v5622_v59  ;;  %v5655_v51 = vld [vmem:[%s5416_s18 + $0x130] sm:$0xff] }
  0x31   : > { %1388 = vperm.xlu1 %5149, %v677_v49   ;;  %v1256_v49 = vpack.c.bf16 %v5641_v11, %v5636_v0 }
  0x33   : > { %1796 = vmatpush1.bf16.msra.mxu0 %v1251_v18  ;;  %v681_v18 = vld [vmem:[%s7793_s3 + $0xa8] sm:$0xff] }
  0x34   : > { %1393 = vperm.xlu0 %5148, %v678_v12   ;;  %1797 = vmatprep.subr.bf16.mxu0 %v1254_v1  ;;  %v1255_v1 = vpack.c.bf16 %v5655_v51, %v5650_v44  ;;  %v5678_v12 = vld [vmem:[%s5416_s18 + $0x140] sm:$0xff] }
  0x35   : > { %1398 = vperm.xlu1 %5149, %v679_v26   ;;  %v1258_v26 = vpack.c.bf16 %v5663_v13, %v5658_v2  ;;  %v1257_v40 = vpack.c.bf16 %v5683_v56, %v5678_v12 }
  0x37   : > { %1798 = vmatpush1.bf16.msra.mxu0 %v1253_v41  ;;  %v5697_v41 = vld [vmem:[%s5416_s18 + $0x208] sm:$0xff] }
  0x38   : > { %1403 = vperm.xlu0 %5148, %v680_v55   ;;  %1799 = vmatprep.subr.bf16.mxu0 %v1256_v49  ;;  %v5700_v49 = vld [vmem:[%s5416_s18 + $0x218] sm:$0xff]  ;;  %v1260_v55 = vpack.c.bf16 %v5496_v60, %v5490_v57  ;;  %v1259_v57 = vpack.c.bf16 %v5502_v62, %v5499_v61  ;;  %v1262_v60 = vpack.c.bf16 %v5518_v6, %v5507_v3  ;;  %v688_v61 = vld [vmem:[%s7793_s3 + $0xe0] sm:$0xff] }
  0x39   : > { %1408 = vperm.xlu1 %5149, %v681_v18   ;;  %v5705_v18 = vld [vmem:[%s5416_s18 + $0x200] sm:$0xff]  ;;  %v1261_v62 = vpack.c.bf16 %v5524_v8, %v5521_v7  ;;  %v795_v3 = vld [vmem:[%s5416_s18 + $0x238] sm:$0xff]  ;;  %v1264_v6 = vpack.c.bf16 %v5550_v21, %v5536_v15  ;;  %v1263_v15 = vpack.c.bf16 %v5556_v25, %v5553_v22  ;;  %v1266_v21 = vpack.c.bf16 %v5572_v33, %v5561_v30  ;;  %v797_v25 = vld [vmem:[%s5416_s18 + $0x248] sm:$0xff] }
  0x3a   : > { %v1265_v22 = vpack.c.bf16 %v5578_v38, %v5575_v36  ;;  %v799_v30 = vld [vmem:[%s5416_s18 + $0x258] sm:$0xff]  ;;  %v1268_v33 = vpack.c.bf16 %v5606_v52, %v5603_v50  ;;  %v1267_v38 = vpack.c.bf16 %v5612_v54, %v5609_v53  ;;  %v5789_v50 = vld [vmem:[%s5416_s18 + $0x360] sm:$0xff]  ;;  %v5792_v52 = vld [vmem:[%s5416_s18 + $0x370] sm:$0xff] }
  0x3b   : > { %1800 = vmatpush1.bf16.msra.mxu0 %v1255_v1  ;;  %v685_v1 = vld [vmem:[%s7793_s3 + $0xc8] sm:$0xff]  ;;  %v5784_v36 = vld [vmem:[%s5416_s18 + $0x378] sm:$0xff]  ;;  %v5150_v54 = vld [vmem:[%s7792_s2] ss:$16 sps:$4 sm:$0xff]  }
  0x3c   : > { %1413 = vperm.xlu0 %5148, %v682_v27   ;;  %1801 = vmatprep.subr.bf16.mxu0 %v1258_v26  ;;  %v5715_v27 = vadd.f32 %v5697_v41, %v5705_v18  ;;  %v5719_v26 = vadd.f32 %v5700_v49, %v5708_v58  ;;  %v5802_v53 = vadd.f32 %v5784_v36, %v5792_v52 }
  0x3d   : > { %1418 = vperm.xlu1 %5149, %v683_v28   ;;  %v686_v28 = vld [vmem:[%s7793_s3 + $0xd0] sm:$0xff] }
  0x3e   : > { %7848 = vst [vmem:[#allocation13_spill] sm:$0xff] %v5715_v27  ;;  %7849 = vst [vmem:[#allocation14_spill] sm:$0xff] %v5719_v26  ;;  %v687_v26 = vld [vmem:[%s7793_s3 + $0xd8] sm:$0xff]  ;;  %v5896_v27 = vld [vmem:[%s5416_s18 + $0x3c0] sm:$0xff] }
  0x3f   : > { %1802 = vmatpush1.bf16.msra.mxu0 %v1257_v40  ;;  %v5743_v40 = vld [vmem:[%s5416_s18 + $0x220] sm:$0xff]  ;;  %7855 = vst [vmem:[#allocation20_spill] sm:$0xff] %v5802_v53  ;;  %v5818_v53 = vld [vmem:[%s5416_s18 + $0x388] sm:$0xff] }
  0x40   : > { %1423 = vperm.xlu0 %5148, %v684_v39   ;;  %1803 = vmatprep.subr.bf16.mxu0 %v1260_v55  ;;  %v5737_v39 = vld [vmem:[%s5416_s18 + $0x228] sm:$0xff]  ;;  %v5746_v55 = vld [vmem:[%s5416_s18 + $0x230] sm:$0xff] }
  0x41   : > { %1428 = vperm.xlu1 %5149, %v685_v1   ;;  %v689_v1 = vld [vmem:[%s7793_s3 + $0xe8] sm:$0xff]  ;;  %v5753_v7 = vadd.f32 %v5737_v39, %v5743_v40  ;;  %v5756_v8 = vadd.f32 %v795_v3, %v5746_v55 }
  0x43   : > { %1804 = vmatpush1.bf16.msra.mxu0 %v1259_v57  ;;  %7850 = vst [vmem:[#allocation15_spill] sm:$0xff] %v5753_v7  ;;  %7851 = vst [vmem:[#allocation16_spill] sm:$0xff] %v5756_v8  ;;  %v691_v57 = vld [vmem:[%s7793_s3 + $0xf8] sm:$0xff]  ;;  %v806_v8 = vld [vmem:[%s5416_s18 + $0x290] sm:$0xff] }
  0x44   : > { %1433 = vperm.xlu0 %5148, %v686_v28   ;;  %1805 = vmatprep.subr.bf16.mxu0 %v1262_v60  ;;  %v796_v60 = vld [vmem:[%s5416_s18 + $0x240] sm:$0xff]  ;;  %v798_v28 = vld [vmem:[%s5416_s18 + $0x250] sm:$0xff] }
  0x45   : > { %1438 = vperm.xlu1 %5149, %v687_v26   ;;  %v690_v26 = vld [vmem:[%s7793_s3 + $0xf0] sm:$0xff] }
  0x47   : > { %1806 = vmatpush1.bf16.msra.mxu0 %v1261_v62  ;;  %v5778_v62 = vadd.f32 %v799_v30, %v798_v28 }
  0x48   : > { %1443 = vperm.xlu0 %5148, %v688_v61   ;;  %1807 = vmatprep.subr.bf16.mxu0 %v1264_v6  ;;  %v5776_v61 = vadd.f32 %v797_v25, %v796_v60  ;;  %v5781_v6 = vld [vmem:[%s5416_s18 + $0x368] sm:$0xff] }
  0x49   : > { %1448 = vperm.xlu1 %5149, %v689_v1   ;;  %7853 = vst [vmem:[#allocation18_spill] sm:$0xff] %v5778_v62  ;;  %v1270_v1 = vpack.c.bf16 %v5700_v49, %v5697_v41  ;;  %v1269_v41 = vpack.c.bf16 %v5708_v58, %v5705_v18  ;;  %v803_v49 = vld [vmem:[%s5416_s18 + $0x278] sm:$0xff]  ;;  %v5824_v62 = vld [vmem:[%s5416_s18 + $0x380] sm:$0xff] }
  0x4a   : > { %7852 = vst [vmem:[#allocation17_spill] sm:$0xff] %v5776_v61  ;;  %v5827_v61 = vld [vmem:[%s5416_s18 + $0x390] sm:$0xff]  ;;  %v5835_v18 = vadd.f32 %v5818_v53, %v5824_v62 }
  0x4b   : > { %1808 = vmatpush1.bf16.msra.mxu0 %v1263_v15  ;;  %v5798_v15 = vadd.f32 %v5781_v6, %v5789_v50 }
  0x4c   : > { %1453 = vperm.xlu0 %5148, %v690_v26   ;;  %1809 = vmatprep.subr.bf16.mxu0 %v1266_v21  ;;  %v5153_v21 = vld [vmem:[%s7792_s2 + $0x24] ss:$16 sps:$4 sm:$0xff]   ;;  %v801_v26 = vld [vmem:[%s5416_s18 + $0x268] sm:$0xff]  ;;  %7858 = vst [vmem:[#allocation23_spill] sm:$0xff] %v5835_v18 }
  0x4d   : > { %1458 = vperm.xlu1 %5149, %v691_v57   ;;  %7854 = vst [vmem:[#allocation19_spill] sm:$0xff] %v5798_v15  ;;  %v800_v57 = vld [vmem:[%s5416_s18 + $0x260] sm:$0xff]  ;;  %v5821_v15 = vld [vmem:[%s5416_s18 + $0x398] sm:$0xff] }
  0x4e   : > { %v5156_v18 = vld [vmem:[%s7792_s2 + $0x44] ss:$16 sps:$4 sm:$0xff]  }
  0x4f   : > { %1810 = vmatpush1.bf16.msra.mxu0 %v1265_v22  ;;  %v1272_v22 = vpack.c.bf16 %v795_v3, %v5737_v39  ;;  %v5839_v39 = vadd.f32 %v5821_v15, %v5827_v61  ;;  %v1271_v3 = vpack.c.bf16 %v5746_v55, %v5743_v40  ;;  %v5857_v40 = vld [vmem:[%s5416_s18 + $0x3b8] sm:$0xff]  ;;  %v5860_v55 = vld [vmem:[%s5416_s18 + $0x3a0] sm:$0xff] }
  0x50   : > { %1811 = vmatprep.subr.bf16.mxu0 %v1268_v33  ;;  %v802_v33 = vld [vmem:[%s5416_s18 + $0x270] sm:$0xff] }
  0x51   : > { %v5831_v58 = vadd.f32 %v803_v49, %v802_v33  ;;  %7859 = vst [vmem:[#allocation24_spill] sm:$0xff] %v5839_v39  ;;  %v804_v39 = vld [vmem:[%s5416_s18 + $0x280] sm:$0xff] }
  0x53   : > { %1812 = vmatpush1.bf16.msra.mxu0 %v1267_v38  ;;  %v5829_v38 = vadd.f32 %v801_v26, %v800_v57  ;;  %7857 = vst [vmem:[#allocation22_spill] sm:$0xff] %v5831_v58  ;;  %v805_v58 = vld [vmem:[%s5416_s18 + $0x288] sm:$0xff] }
  0x54   : > { %1974 = vmatprep.subr.bf16.mxu0 %v1270_v1  ;;  %v5155_v1 = vld [vmem:[%s7792_s2 + $0x20] ss:$16 sps:$4 sm:$0xff]  }
  0x55   : > { %7856 = vst [vmem:[#allocation21_spill] sm:$0xff] %v5829_v38  ;;  %v807_v38 = vld [vmem:[%s5416_s18 + $0x298] sm:$0xff] }
  0x56   : > { %1814 = vmatmul.mubr.bf16.vlgmr.msra.gmra.mrb[0].mxu0 %v5150_v54  ;;  %v1274_v54 = vpack.c.bf16 %v799_v30, %v797_v25  ;;  %v1276_v25 = vpack.c.bf16 %v803_v49, %v801_v26  ;;  %v5865_v30 = vadd.f32 %v805_v58, %v804_v39  ;;  %v5867_v7 = vadd.f32 %v807_v38, %v806_v8  ;;  %v809_v49 = vld [vmem:[%s5416_s18 + $0x2a8] sm:$0xff] }
  0x57   : > { %1823 = vmatprep.mubr.bf16.mxu0 %v5153_v21  ;;  %1975 = vmatpush1.bf16.msra.mxu0 %v1269_v41  ;;  %v1273_v21 = vpack.c.bf16 %v798_v28, %v796_v60  ;;  %v5854_v41 = vld [vmem:[%s5416_s18 + $0x3a8] sm:$0xff]  ;;  %v1275_v26 = vpack.c.bf16 %v802_v33, %v800_v57  ;;  %v815_v33 = vld [vmem:[%s5416_s18 + $0x2d8] sm:$0xff] }
  0x58   : > { %1976 = vmatprep.subr.bf16.mxu0 %v1272_v22  ;;  %v5863_v22 = vld [vmem:[%s5416_s18 + $0x3b0] sm:$0xff]  ;;  %7860 = vst [vmem:[#allocation25_spill] sm:$0xff] %v5865_v30  ;;  %7861 = vst [vmem:[#allocation26_spill] sm:$0xff] %v5867_v7  ;;  %v5871_v60 = vadd.f32 %v5854_v41, %v5860_v55  ;;  %v813_v57 = vld [vmem:[%s5416_s18 + $0x2c8] sm:$0xff] }
  0x59   : > { %v5875_v28 = vadd.f32 %v5857_v40, %v5863_v22  ;;  %v5890_v7 = vld [vmem:[%s5416_s18 + $0x3c8] sm:$0xff]  ;;  %v5893_v30 = vld [vmem:[%s5416_s18 + $0x3d8] sm:$0xff] }
  0x5a   : > { %7862 = vst [vmem:[#allocation27_spill] sm:$0xff] %v5871_v60  ;;  %v5159_v60 = vld [vmem:[%s7792_s2 + $0x64] ss:$16 sps:$4 sm:$0xff]  }
  0x5b   : > { %1977 = vmatpush1.bf16.msra.mxu0 %v1271_v3  ;;  %7863 = vst [vmem:[#allocation28_spill] sm:$0xff] %v5875_v28  ;;  %v811_v3 = vld [vmem:[%s5416_s18 + $0x2b8] sm:$0xff]  ;;  %v808_v28 = vld [vmem:[%s5416_s18 + $0x2a0] sm:$0xff] }
  0x5c   : > { %1978 = vmatprep.subr.bf16.mxu0 %v1274_v54  ;;  %v1278_v54 = vpack.c.bf16 %v807_v38, %v805_v58  ;;  %v5899_v38 = vld [vmem:[%s5416_s18 + $0x3d0] sm:$0xff]  ;;  %v1280_v58 = vpack.c.bf16 %v811_v3, %v809_v49 }
  0x5d   : > { %v5911_v43 = vadd.f32 %v5893_v30, %v5899_v38 }
  0x5e   : > { %1824 = vmatmul.mubr.bf16.gmra.mrb[4].mxu0 %v5155_v1  ;;  %v5158_v1 = vld [vmem:[%s7792_s2 + $0x40] ss:$16 sps:$4 sm:$0xff]  }
  0x5f   : > { %1833 = vmatprep.mubr.bf16.mxu0 %v5156_v18  ;;  %1979 = vmatpush1.bf16.msra.mxu0 %v1273_v21  ;;  %v810_v18 = vld [vmem:[%s5416_s18 + $0x2b0] sm:$0xff]  ;;  %v1277_v21 = vpack.c.bf16 %v806_v8, %v804_v39  ;;  %v964_v8 = vadd.f32 %v5594_v45, %v5622_v59  ;;  %v812_v39 = vld [vmem:[%s5416_s18 + $0x2c0] sm:$0xff]  ;;  %7866 = vst [vmem:[#allocation31_spill] sm:$0xff] %v5911_v43  ;;  %v5919_v45 = vld [vmem:[%s5416_s18 + $0x2f8] sm:$0xff] }
  0x60   : > { %1980 = vmatprep.subr.bf16.mxu0 %v1276_v25  ;;  %v5901_v25 = vadd.f32 %v809_v49, %v808_v28  ;;  %v5903_v63 = vadd.f32 %v811_v3, %v810_v18  ;;  %v5915_v49 = vadd.f32 %v5890_v7, %v5896_v27  ;;  %v1279_v3 = vpack.c.bf16 %v810_v18, %v808_v28  ;;  %v5161_v59 = vld [vmem:[%s7792_s2 + $0x60] ss:$16 sps:$4 sm:$0xff]   ;;  %v5162_v43 = vld [vmem:[%s7792_s2 + $0x84] ss:$16 sps:$4 sm:$0xff]  }
  0x61   : > { %v5935_v28 = vld [vmem:[%s5416_s18 + $0x3f0] sm:$0xff] }
  0x62   : > { %7864 = vst [vmem:[#allocation29_spill] sm:$0xff] %v5901_v25  ;;  %7865 = vst [vmem:[#allocation30_spill] sm:$0xff] %v5903_v63  ;;  %v5938_v63 = vld [vmem:[%s5416_s18 + $0x308] sm:$0xff]  ;;  %v5941_v25 = vld [vmem:[%s5416_s18 + $0x318] sm:$0xff] }
  0x63   : > { %1981 = vmatpush1.bf16.msra.mxu0 %v1275_v26  ;;  %v814_v26 = vld [vmem:[%s5416_s18 + $0x2d0] sm:$0xff]  ;;  %7867 = vst [vmem:[#allocation32_spill] sm:$0xff] %v5915_v49  ;;  %v816_v49 = vld [vmem:[%s5416_s18 + $0x2e0] sm:$0xff] }
  0x64   : > { %1982 = vmatprep.subr.bf16.mxu0 %v1278_v54  ;;  %v1282_v54 = vpack.c.bf16 %v815_v33, %v813_v57  ;;  %v1281_v18 = vpack.c.bf16 %v814_v26, %v812_v39  ;;  %v5953_v10 = vadd.f32 %v815_v33, %v814_v26  ;;  %v5970_v33 = vld [vmem:[%s5416_s18 + $0x338] sm:$0xff]  ;;  %v5165_v26 = vld [vmem:[%s7792_s2 + $0xa4] ss:$16 sps:$4 sm:$0xff]  }
  0x66   : > { %1834 = vmatmul.mubr.bf16.gmra.mrb[8].mxu0 %v5158_v1  ;;  %v817_v1 = vld [vmem:[%s5416_s18 + $0x2e8] sm:$0xff]  ;;  %7870 = vst [vmem:[#allocation35_spill] sm:$0xff] %v5953_v10  ;;  %v976_v10 = vadd.f32 %v5658_v2, %v5678_v12  ;;  %v5168_v2 = vld [vmem:[%s7792_s2 + $0xc4] ss:$16 sps:$4 sm:$0xff]  }
  0x67   : > { %1843 = vmatprep.mubr.bf16.mxu0 %v5159_v60  ;;  %1983 = vmatpush1.bf16.msra.mxu0 %v1277_v21  ;;  %v5929_v60 = vld [vmem:[%s5416_s18 + $0x2f0] sm:$0xff]  ;;  %v5932_v21 = vld [vmem:[%s5416_s18 + $0x3f8] sm:$0xff] }
  0x68   : > { %1984 = vmatprep.subr.bf16.mxu0 %v1280_v58  ;;  %v967_v58 = vadd.f32 %v5597_v48, %v5633_v19  ;;  %v5948_v42 = vadd.f32 %v5932_v21, %v5935_v28  ;;  %v1283_v48 = vpack.c.bf16 %v5929_v60, %v816_v49  ;;  %v970_v19 = vadd.f32 %v5636_v0, %v5650_v44  ;;  %v5164_v0 = vld [vmem:[%s7792_s2 + $0x80] ss:$16 sps:$4 sm:$0xff]  }
  0x69   : > { %v973_v44 = vadd.f32 %v5641_v11, %v5655_v51  ;;  %v5995_v11 = vld [vmem:[%s5416_s18 + $0x3e0] sm:$0xff]  ;;  %v5998_v51 = vld [vmem:[%s5416_s18 + $0x348] sm:$0xff] }
  0x6a   : > { %7868 = vst [vmem:[#allocation33_spill] sm:$0xff] %v5948_v42  ;;  %v6017_v42 = vld [vmem:[%s5416_s18 + $0x340] sm:$0xff] }
  0x6b   : > { %965 = vadd.xlane.f32.xlu0 %v964_v8  ;;  %1985 = vmatpush1.bf16.msra.mxu0 %v1279_v3  ;;  %v1284_v8 = vpack.c.bf16 %v5919_v45, %v817_v1  ;;  %v5950_v3 = vadd.f32 %v813_v57, %v812_v39  ;;  %v1286_v57 = vpack.c.bf16 %v5941_v25, %v5938_v63  ;;  %v5961_v39 = vld [vmem:[%s5416_s18 + $0x300] sm:$0xff] }
  0x6c   : > { %1986 = vmatprep.subr.bf16.mxu0 %v1282_v54  ;;  %v5984_v54 = vld [vmem:[%s5416_s18 + $0x320] sm:$0xff] }
  0x6d   : > { %7869 = vst [vmem:[#allocation34_spill] sm:$0xff] %v5950_v3 }
  0x6e   : > { %1844 = vmatmul.mubr.bf16.gmra.mrb[12].mxu0 %v5161_v59 }
  0x6f   : > { %917 = vadd.xlane.f32.xlu0 %v5430_v14  ;;  %1853 = vmatprep.mubr.bf16.mxu0 %v5162_v43  ;;  %v5964_v14 = vld [vmem:[%s5416_s18 + $0x310] sm:$0xff]  ;;  %v5967_v43 = vld [vmem:[%s5416_s18 + $0x328] sm:$0xff] }
  0x70   : > { %1987 = vmatpush1.bf16.msra.mxu0 %v1281_v18  ;;  %v1285_v59 = vpack.c.bf16 %v5964_v14, %v5961_v39  ;;  %v1288_v18 = vpack.c.bf16 %v5970_v33, %v5967_v43 }
  0x71   : > { %968 = vadd.xlane.f32.xlu1 %v967_v58  ;;  %1988 = vmatprep.subr.bf16.mxu0 %v1284_v8  ;;  %v5989_v58 = vld [vmem:[%s5416_s18 + $0x330] sm:$0xff]  ;;  %v6001_v8 = vld [vmem:[%s5416_s18 + $0x358] sm:$0xff] }
  0x72   : > { %v1290_v3 = vpack.c.bf16 %v6001_v8, %v5998_v51 }
  0x73   : > { %920 = vadd.xlane.f32.xlu0 %v5435_v20  ;;  %v5992_v20 = vld [vmem:[%s5416_s18 + $0x3e8] sm:$0xff] }
  0x74   : > { %1989 = vmatpush1.bf16.msra.mxu0 %v1283_v48  ;;  %v6005_v48 = vadd.f32 %v5992_v20, %v5995_v11 }
  0x75   : > { %971 = vadd.xlane.f32.xlu1 %v970_v19  ;;  %1990 = vmatprep.subr.bf16.mxu0 %v1286_v57  ;;  %v6007_v19 = vadd.f32 %v817_v1, %v816_v49  ;;  %v1287_v57 = vpack.c.bf16 %v5989_v58, %v5984_v54  ;;  %v5167_v49 = vld [vmem:[%s7792_s2 + $0xa0] ss:$16 sps:$4 sm:$0xff]   ;;  %v1292_v1 = vpack.c.bf16 %v5784_v36, %v5781_v6  ;;  %v5311_v36 = vmov 0.0  }
  0x76   : > { %1854 = vmatmul.mubr.bf16.gmra.mrb[16].mxu0 %v5164_v0  ;;  %v6020_v0 = vld [vmem:[%s5416_s18 + $0x350] sm:$0xff]  ;;  %v1293_v6 = vpack.c.bf16 %v5827_v61, %v5824_v62  ;;  %484 = vst.msk [vmem:[#allocation2 + $0x80] sm:$0xff] %vm467_vm0, %v5311_v36  ;;  %468 = vst.msk [vmem:[#allocation2] sm:$0xff] %vm467_vm0, %v5311_v36 }
  0x77   : > { %974 = vadd.xlane.f32.xlu0 %v973_v44  ;;  %1863 = vmatprep.mubr.bf16.mxu0 %v5165_v26  ;;  %v1289_v12 = vpack.c.bf16 %v6020_v0, %v6017_v42  ;;  %v6037_v44 = vadd.f32 %v5919_v45, %v5929_v60  ;;  %469 = vst.msk [vmem:[#allocation2 + $0x8] sm:$0xff] %vm467_vm0, %v5311_v36  ;;  %470 = vst.msk [vmem:[#allocation2 + $0x10] sm:$0xff] %vm467_vm0, %v5311_v36  ;;  %v5174_v61 = vld [vmem:[%s7792_s2 + $0x104] ss:$16 sps:$4 sm:$0xff]  }
  0x78   : > { %1991 = vmatpush1.bf16.msra.mxu0 %v1285_v59  ;;  %471 = vst.msk [vmem:[#allocation2 + $0x18] sm:$0xff] %vm467_vm0, %v5311_v36  ;;  %472 = vst.msk [vmem:[#allocation2 + $0x20] sm:$0xff] %vm467_vm0, %v5311_v36  ;;  %v5180_v62 = vld [vmem:[%s7792_s2 + $0x144] ss:$16 sps:$4 sm:$0xff]   ;;  %v1060_v45 = vadd.f32 %v5938_v63, %v5961_v39  ;;  %v1063_v26 = vadd.f32 %v5941_v25, %v5964_v14  ;;  %v5188_v25 = vld [vmem:[%s7792_s2 + $0x180] ss:$16 sps:$4 sm:$0xff]  }
  0x79   : > { %923 = vadd.xlane.f32.xlu1 %v5439_v23  ;;  %1992 = vmatprep.subr.bf16.mxu0 %v1288_v18  ;;  %v979_v23 = vadd.f32 %v5663_v13, %v5683_v56  ;;  %v5170_v56 = vld [vmem:[%s7792_s2 + $0xc0] ss:$16 sps:$4 sm:$0xff]   ;;  %v5171_v13 = vld [vmem:[%s7792_s2 + $0xe4] ss:$16 sps:$4 sm:$0xff]   ;;  %473 = vst.msk [vmem:[#allocation2 + $0x28] sm:$0xff] %vm467_vm0, %v5311_v36  ;;  %474 = vst.msk [vmem:[#allocation2 + $0x30] sm:$0xff] %vm467_vm0, %v5311_v36 }
  0x7a   : > { %475 = vst.msk [vmem:[#allocation2 + $0x38] sm:$0xff] %vm467_vm0, %v5311_v36  ;;  %476 = vst.msk [vmem:[#allocation2 + $0x40] sm:$0xff] %vm467_vm0, %v5311_v36  ;;  %v5186_v59 = vld [vmem:[%s7792_s2 + $0x184] ss:$16 sps:$4 sm:$0xff]   ;;  %v7880_v18 = vld [vmem:[#allocation13_spill] sm:$0xff] }
  0x7b   : > { %926 = vadd.xlane.f32.xlu0 %v5441_v24  ;;  %v1291_v24 = vpack.c.bf16 %v5792_v52, %v5789_v50  ;;  %477 = vst.msk [vmem:[#allocation2 + $0x48] sm:$0xff] %vm467_vm0, %v5311_v36  ;;  %478 = vst.msk [vmem:[#allocation2 + $0x50] sm:$0xff] %vm467_vm0, %v5311_v36  ;;  %v7872_v50 = vld [vmem:[#allocation5_spill] sm:$0xff]  ;;  %v7873_v52 = vld [vmem:[#allocation6_spill] sm:$0xff] }
  0x7c   : > { %1993 = vmatpush1.bf16.msra.mxu0 %v1287_v57  ;;  %479 = vst.msk [vmem:[#allocation2 + $0x58] sm:$0xff] %vm467_vm0, %v5311_v36  ;;  %480 = vst.msk [vmem:[#allocation2 + $0x60] sm:$0xff] %vm467_vm0, %v5311_v36  ;;  %v7881_v14 = vld [vmem:[#allocation14_spill] sm:$0xff] }
  0x7d   : > { %977 = vadd.xlane.f32.xlu1 %v976_v10  ;;  %1994 = vmatprep.subr.bf16.mxu0 %v1290_v3  ;;  %v1294_v10 = vpack.c.bf16 %v5821_v15, %v5818_v53  ;;  %481 = vst.msk [vmem:[#allocation2 + $0x68] sm:$0xff] %vm467_vm0, %v5311_v36  ;;  %482 = vst.msk [vmem:[#allocation2 + $0x70] sm:$0xff] %vm467_vm0, %v5311_v36  ;;  %v5182_v15 = vld [vmem:[%s7792_s2 + $0x140] ss:$16 sps:$4 sm:$0xff]   ;;  %v5189_v57 = vld [vmem:[%s7792_s2 + $0x1a4] ss:$16 sps:$4 sm:$0xff]  }
  0x7e   : > { %1864 = vmatmul.mubr.bf16.gmra.mrb[20].mxu0 %v5167_v49  ;;  %483 = vst.msk [vmem:[#allocation2 + $0x78] sm:$0xff] %vm467_vm0, %v5311_v36  ;;  %485 = vst.msk [vmem:[#allocation2 + $0x88] sm:$0xff] %vm467_vm0, %v5311_v36  ;;  %v7875_v53 = vld [vmem:[#allocation8_spill] sm:$0xff] }
  0x7f   : > { %980 = vadd.xlane.f32.xlu0 %v979_v23  ;;  %1873 = vmatprep.mubr.bf16.mxu0 %v5168_v2  ;;  %486 = vst.msk [vmem:[#allocation2 + $0x90] sm:$0xff] %vm467_vm0, %v5311_v36  ;;  %487 = vst.msk [vmem:[#allocation2 + $0x98] sm:$0xff] %vm467_vm0, %v5311_v36  ;;  %v7879_v3 = vld [vmem:[#allocation12_spill] sm:$0xff]  ;;  %v1075_v2 = vadd.f32 %v6001_v8, %v6020_v0  ;;  %v7885_v0 = vld [vmem:[#allocation18_spill] sm:$0xff] }
  0x80   : > { %1995 = vmatpush1.bf16.msra.mxu0 %v1289_v12  ;;  %488 = vst.msk [vmem:[#allocation2 + $0xa0] sm:$0xff] %vm467_vm0, %v5311_v36  ;;  %489 = vst.msk [vmem:[#allocation2 + $0xa8] sm:$0xff] %vm467_vm0, %v5311_v36  ;;  %v5192_v12 = vld [vmem:[%s7792_s2 + $0x1c4] ss:$16 sps:$4 sm:$0xff]   ;;  %v5194_v8 = vld [vmem:[%s7792_s2 + $0x1c0] ss:$16 sps:$4 sm:$0xff]  }
  0x81   : > { %929 = vadd.xlane.f32.xlu1 %v5446_v29  ;;  %1996 = vmatprep.subr.bf16.mxu0 %v1292_v1  ;;  %v1296_v29 = vpack.c.bf16 %v5857_v40, %v5854_v41  ;;  %490 = vst.msk [vmem:[#allocation2 + $0xb0] sm:$0xff] %vm467_vm0, %v5311_v36  ;;  %491 = vst.msk [vmem:[#allocation2 + $0xb8] sm:$0xff] %vm467_vm0, %v5311_v36  ;;  %v5183_v41 = vld [vmem:[%s7792_s2 + $0x164] ss:$16 sps:$4 sm:$0xff]  }
  0x82   : > { %492 = vst.msk [vmem:[#allocation2 + $0xc0] sm:$0xff] %vm467_vm0, %v5311_v36  ;;  %493 = vst.msk [vmem:[#allocation2 + $0xc8] sm:$0xff] %vm467_vm0, %v5311_v36 }
  0x83   : > { %932 = vadd.xlane.f32.xlu0 %v5453_v34  ;;  %v1295_v34 = vpack.c.bf16 %v5863_v22, %v5860_v55  ;;  %494 = vst.msk [vmem:[#allocation2 + $0xd0] sm:$0xff] %vm467_vm0, %v5311_v36  ;;  %495 = vst.msk [vmem:[#allocation2 + $0xd8] sm:$0xff] %vm467_vm0, %v5311_v36  ;;  %v7876_v22 = vld [vmem:[#allocation9_spill] sm:$0xff] }
  0x84   : > { %1997 = vmatpush1.bf16.msra.mxu0 %v1291_v24  ;;  %496 = vst.msk [vmem:[#allocation2 + $0xe0] sm:$0xff] %vm467_vm0, %v5311_v36  ;;  %497 = vst.msk [vmem:[#allocation2 + $0xe8] sm:$0xff] %vm467_vm0, %v5311_v36 }
  0x85   : > { %983 = vadd.xlane.f32.xlu1 %v5511_v4  ;;  %1998 = vmatprep.subr.bf16.mxu0 %v1294_v10  ;;  %498 = vst.msk [vmem:[#allocation2 + $0xf0] sm:$0xff] %vm467_vm0, %v5311_v36  ;;  %499 = vst.msk [vmem:[#allocation2 + $0xf8] sm:$0xff] %vm467_vm0, %v5311_v36  ;;  %v1298_v4 = vpack.c.bf16 %v5893_v30, %v5890_v7  ;;  %v1300_v7 = vpack.c.bf16 %v5932_v21, %v5992_v20  ;;  %v7877_v30 = vld [vmem:[#allocation10_spill] sm:$0xff] }
  0x86   : > { %1874 = vmatmul.mubr.bf16.gmra.mrb[24].mxu0 %v5170_v56  ;;  %500 = vst.msk [vmem:[#allocation2 + $0x100] sm:$0xff] %vm467_vm0, %v5311_v36  ;;  %501 = vst.msk [vmem:[#allocation2 + $0x108] sm:$0xff] %vm467_vm0, %v5311_v36  ;;  %v1066_v20 = vadd.f32 %v5967_v43, %v5984_v54  ;;  %v7882_v43 = vld [vmem:[#allocation15_spill] sm:$0xff]  ;;  %v1072_v54 = vadd.f32 %v5998_v51, %v6017_v42  ;;  %v7884_v42 = vld [vmem:[#allocation17_spill] sm:$0xff] }
  0x87   : > { %986 = vadd.xlane.f32.xlu0 %v5515_v5  ;;  %1883 = vmatprep.mubr.bf16.mxu0 %v5171_v13  ;;  %502 = vst.msk [vmem:[#allocation2 + $0x110] sm:$0xff] %vm467_vm0, %v5311_v36  ;;  %503 = vst.msk [vmem:[#allocation2 + $0x118] sm:$0xff] %vm467_vm0, %v5311_v36  ;;  %v5173_v5 = vld [vmem:[%s7792_s2 + $0xe0] ss:$16 sps:$4 sm:$0xff]   ;;  %v5195_v56 = vld [vmem:[%s7792_s2 + $0x1e4] ss:$16 sps:$4 sm:$0xff]  }
  0x88   : > { %1999 = vmatpush1.bf16.msra.mxu0 %v1293_v6  ;;  %504 = vst.msk [vmem:[#allocation2 + $0x120] sm:$0xff] %vm467_vm0, %v5311_v36  ;;  %505 = vst.msk [vmem:[#allocation2 + $0x128] sm:$0xff] %vm467_vm0, %v5311_v36  ;;  %v7886_v13 = vld [vmem:[#allocation19_spill] sm:$0xff]  ;;  %v7887_v6 = vld [vmem:[#allocation20_spill] sm:$0xff] }
  0x89   : > { %506 = vst.msk [vmem:[#allocation2 + $0x130] sm:$0xff] %vm467_vm0, %v5311_v36  ;;  %507 = vst.msk [vmem:[#allocation2 + $0x138] sm:$0xff] %vm467_vm0, %v5311_v36  ;;  %935 = vadd.xlane.f32.xlu1 %v5455_v35  ;;  %2000 = vmatprep.subr.bf16.mxu0 %v1296_v29  ;;  %v1297_v35 = vpack.c.bf16 %v5899_v38, %v5896_v27  ;;  %v5176_v27 = vld [vmem:[%s7792_s2 + $0x100] ss:$16 sps:$4 sm:$0xff]   ;;  %v7878_v38 = vld [vmem:[#allocation11_spill] sm:$0xff] }
  0x8a   : > { %508 = vst.msk [vmem:[#allocation2 + $0x140] sm:$0xff] %vm467_vm0, %v5311_v36  ;;  %509 = vst.msk [vmem:[#allocation2 + $0x148] sm:$0xff] %vm467_vm0, %v5311_v36 }
  0x8b   : > { %510 = vst.msk [vmem:[#allocation2 + $0x150] sm:$0xff] %vm467_vm0, %v5311_v36  ;;  %511 = vst.msk [vmem:[#allocation2 + $0x158] sm:$0xff] %vm467_vm0, %v5311_v36  ;;  %938 = vadd.xlane.f32.xlu0 %v5460_v37  ;;  %v1299_v37 = vpack.c.bf16 %v5935_v28, %v5995_v11  ;;  %v5185_v28 = vld [vmem:[%s7792_s2 + $0x160] ss:$16 sps:$4 sm:$0xff]   ;;  %v1069_v11 = vadd.f32 %v5970_v33, %v5989_v58 }
  0x8c   : > { %512 = vst.msk [vmem:[#allocation2 + $0x160] sm:$0xff] %vm467_vm0, %v5311_v36  ;;  %513 = vst.msk [vmem:[#allocation2 + $0x168] sm:$0xff] %vm467_vm0, %v5311_v36  ;;  %2001 = vmatpush1.bf16.msra.mxu0 %v1295_v34  ;;  %v5191_v33 = vld [vmem:[%s7792_s2 + $0x1a0] ss:$16 sps:$4 sm:$0xff]  }
  0x8d   : > { %514 = vst.msk [vmem:[#allocation2 + $0x170] sm:$0xff] %vm467_vm0, %v5311_v36  ;;  %515 = vst.msk [vmem:[#allocation2 + $0x178] sm:$0xff] %vm467_vm0, %v5311_v36  ;;  %989 = vadd.xlane.f32.xlu1 %v5540_v16  ;;  %2002 = vmatprep.subr.bf16.mxu0 %v1298_v4  ;;  %v5177_v16 = vld [vmem:[%s7792_s2 + $0x124] ss:$16 sps:$4 sm:$0xff]   ;;  %v5197_v4 = vld [vmem:[%s7792_s2 + $0x1e0] ss:$16 sps:$4 sm:$0xff]  }
  0x8e   : > { %516 = vst.msk [vmem:[#allocation2 + $0x180] sm:$0xff] %vm467_vm0, %v5311_v36  ;;  %517 = vst.msk [vmem:[#allocation2 + $0x188] sm:$0xff] %vm467_vm0, %v5311_v36  ;;  %1884 = vmatmul.mubr.bf16.gmra.mrb[28].mxu0 %v5173_v5  ;;  %v7883_v58 = vld [vmem:[#allocation16_spill] sm:$0xff]  ;;  %v7889_v5 = vld [vmem:[#allocation22_spill] sm:$0xff] }
  0x8f   : > { %518 = vst.msk [vmem:[#allocation2 + $0x190] sm:$0xff] %vm467_vm0, %v5311_v36  ;;  %519 = vst.msk [vmem:[#allocation2 + $0x198] sm:$0xff] %vm467_vm0, %v5311_v36  ;;  %992 = vadd.xlane.f32.xlu0 %v5544_v17  ;;  %1893 = vmatprep.mubr.bf16.mxu0 %v5174_v61  ;;  %v6285_v17 = vpop.permute.xlu0 %1303  ;;  %v5200_v61 = vld [vmem:[%s7792_s2 + $0xc] ss:$16 sps:$4 sm:$0xff]  }
  0x90   : > { %520 = vst.msk [vmem:[#allocation2 + $0x1a0] sm:$0xff] %vm467_vm0, %v5311_v36  ;;  %521 = vst.msk [vmem:[#allocation2 + $0x1a8] sm:$0xff] %vm467_vm0, %v5311_v36  ;;  %2003 = vmatpush1.bf16.msra.mxu0 %v1297_v35  ;;  %v7890_v35 = vld [vmem:[#allocation23_spill] sm:$0xff] }
  0x91   : > { %522 = vst.msk [vmem:[#allocation2 + $0x1b0] sm:$0xff] %vm467_vm0, %v5311_v36  ;;  %523 = vst.msk [vmem:[#allocation2 + $0x1b8] sm:$0xff] %vm467_vm0, %v5311_v36  ;;  %941 = vadd.xlane.f32.xlu1 %v5472_v46  ;;  %2004 = vmatprep.subr.bf16.mxu0 %v1300_v7  ;;  %v5179_v46 = vld [vmem:[%s7792_s2 + $0x120] ss:$16 sps:$4 sm:$0xff]  }
  0x92   : > { %524 = vst.msk [vmem:[#allocation2 + $0x1c0] sm:$0xff] %vm467_vm0, %v5311_v36  ;;  %525 = vst.msk [vmem:[#allocation2 + $0x1c8] sm:$0xff] %vm467_vm0, %v5311_v36 }
  0x93   : > { %526 = vst.msk [vmem:[#allocation2 + $0x1d0] sm:$0xff] %vm467_vm0, %v5311_v36  ;;  %527 = vst.msk [vmem:[#allocation2 + $0x1d8] sm:$0xff] %vm467_vm0, %v5311_v36  ;;  %944 = vadd.xlane.f32.xlu0 %v5474_v47  ;;  %v7871_v47 = vld [vmem:[#allocation4_spill] sm:$0xff] }
  0x94   : > { %528 = vst.msk [vmem:[#allocation2 + $0x1e0] sm:$0xff] %vm467_vm0, %v5311_v36  ;;  %529 = vst.msk [vmem:[#allocation2 + $0x1e8] sm:$0xff] %vm467_vm0, %v5311_v36  ;;  %2005 = vmatpush1.bf16.msra.mxu0 %v1299_v37 }
  0x95   : > { %530 = vst.msk [vmem:[#allocation2 + $0x1f0] sm:$0xff] %vm467_vm0, %v5311_v36  ;;  %531 = vst.msk [vmem:[#allocation2 + $0x1f8] sm:$0xff] %vm467_vm0, %v5311_v36  ;;  %995 = vadd.xlane.f32.xlu1 %v5565_v31  ;;  %v6296_v31 = vpop.permute.xlu1 %1313 }
  0x96   : > { %532 = vst.msk [vmem:[#allocation3] sm:$0xff] %vm467_vm0, %v5311_v36  ;;  %533 = vst.msk [vmem:[#allocation3 + $0x8] sm:$0xff] %vm467_vm0, %v5311_v36  ;;  %1894 = vmatmul.mubr.bf16.gmra.mrb[32].mxu0 %v5176_v27  ;;  %v7891_v27 = vld [vmem:[#allocation24_spill] sm:$0xff] }
  0x97   : > { %534 = vst.msk [vmem:[#allocation3 + $0x10] sm:$0xff] %vm467_vm0, %v5311_v36  ;;  %535 = vst.msk [vmem:[#allocation3 + $0x18] sm:$0xff] %vm467_vm0, %v5311_v36  ;;  %998 = vadd.xlane.f32.xlu0 %v5569_v32  ;;  %1903 = vmatprep.mubr.bf16.mxu0 %v5177_v16  ;;  %v6298_v32 = vpop.permute.xlu0 %1308  ;;  %v7892_v16 = vld [vmem:[#allocation25_spill] sm:$0xff] }
  0x98   : > { %536 = vst.msk [vmem:[#allocation3 + $0x20] sm:$0xff] %vm467_vm0, %v5311_v36  ;;  %537 = vst.msk [vmem:[#allocation3 + $0x28] sm:$0xff] %vm467_vm0, %v5311_v36 }
  0x99   : > { %538 = vst.msk [vmem:[#allocation3 + $0x30] sm:$0xff] %vm467_vm0, %v5311_v36  ;;  %539 = vst.msk [vmem:[#allocation3 + $0x38] sm:$0xff] %vm467_vm0, %v5311_v36  ;;  %947 = vadd.xlane.f32.xlu1 %v5526_v9  ;;  %v7874_v9 = vld [vmem:[#allocation7_spill] sm:$0xff]  ;;  %v6309_v40 = vpop.permute.xlu1 %1318 }
  0x9a   : > { %540 = vst.msk [vmem:[#allocation3 + $0x40] sm:$0xff] %vm467_vm0, %v5311_v36  ;;  %541 = vst.msk [vmem:[#allocation3 + $0x48] sm:$0xff] %vm467_vm0, %v5311_v36 }
  0x9b   : > { %542 = vst.msk [vmem:[#allocation3 + $0x50] sm:$0xff] %vm467_vm0, %v5311_v36  ;;  %543 = vst.msk [vmem:[#allocation3 + $0x58] sm:$0xff] %vm467_vm0, %v5311_v36  ;;  %950 = vadd.xlane.f32.xlu0 %v7871_v47  ;;  %v6311_v55 = vpop.permute.xlu0 %1323  ;;  %v7893_v47 = vld [vmem:[#allocation26_spill] sm:$0xff] }
  0x9c   : > { %544 = vst.msk [vmem:[#allocation3 + $0x60] sm:$0xff] %vm467_vm0, %v5311_v36  ;;  %545 = vst.msk [vmem:[#allocation3 + $0x68] sm:$0xff] %vm467_vm0, %v5311_v36 }
  0x9d   : > { %546 = vst.msk [vmem:[#allocation3 + $0x70] sm:$0xff] %vm467_vm0, %v5311_v36  ;;  %547 = vst.msk [vmem:[#allocation3 + $0x78] sm:$0xff] %vm467_vm0, %v5311_v36  ;;  %1001 = vadd.xlane.f32.xlu1 %v7872_v50  ;;  %v6318_v60 = vpop.permute.xlu1 %1328 }
  0x9e   : > { %548 = vst.msk [vmem:[#allocation3 + $0x80] sm:$0xff] %vm467_vm0, %v5311_v36  ;;  %549 = vst.msk [vmem:[#allocation3 + $0x88] sm:$0xff] %vm467_vm0, %v5311_v36  ;;  %1904 = vmatmul.mubr.bf16.gmra.mrb[36].mxu0 %v5179_v46  ;;  %v5198_v46 = vld [vmem:[%s7792_s2 + $0x8] ss:$16 sps:$4 sm:$0xff]  }
  0x9f   : > { %550 = vst.msk [vmem:[#allocation3 + $0x90] sm:$0xff] %vm467_vm0, %v5311_v36  ;;  %551 = vst.msk [vmem:[#allocation3 + $0x98] sm:$0xff] %vm467_vm0, %v5311_v36  ;;  %1004 = vadd.xlane.f32.xlu0 %v7873_v52  ;;  %1913 = vmatprep.mubr.bf16.mxu0 %v5180_v62  ;;  %v6320_v21 = vpop.permute.xlu0 %1333  ;;  %v5201_v62 = vld [vmem:[%s7792_s2 + $0x2c] ss:$16 sps:$4 sm:$0xff]  }
  0xa0   : > { %552 = vst.msk [vmem:[#allocation3 + $0xa0] sm:$0xff] %vm467_vm0, %v5311_v36  ;;  %553 = vst.msk [vmem:[#allocation3 + $0xa8] sm:$0xff] %vm467_vm0, %v5311_v36 }
  0xa1   : > { %554 = vst.msk [vmem:[#allocation3 + $0xb0] sm:$0xff] %vm467_vm0, %v5311_v36  ;;  %555 = vst.msk [vmem:[#allocation3 + $0xb8] sm:$0xff] %vm467_vm0, %v5311_v36  ;;  %953 = vadd.xlane.f32.xlu1 %v7874_v9  ;;  %v6331_v63 = vpop.permute.xlu1 %1338  ;;  %v7894_v9 = vld [vmem:[#allocation27_spill] sm:$0xff] }
  0xa2   : > { %556 = vst.msk [vmem:[#allocation3 + $0xc0] sm:$0xff] %vm467_vm0, %v5311_v36  ;;  %557 = vst.msk [vmem:[#allocation3 + $0xc8] sm:$0xff] %vm467_vm0, %v5311_v36 }
  0xa3   : > { %558 = vst.msk [vmem:[#allocation3 + $0xd0] sm:$0xff] %vm467_vm0, %v5311_v36  ;;  %559 = vst.msk [vmem:[#allocation3 + $0xd8] sm:$0xff] %vm467_vm0, %v5311_v36  ;;  %956 = vadd.xlane.f32.xlu0 %v7875_v53  ;;  %v6333_v39 = vpop.permute.xlu0 %1343  ;;  %v7896_v53 = vld [vmem:[#allocation29_spill] sm:$0xff] }
  0xa4   : > { %560 = vst.msk [vmem:[#allocation3 + $0xe0] sm:$0xff] %vm467_vm0, %v5311_v36  ;;  %561 = vst.msk [vmem:[#allocation3 + $0xe8] sm:$0xff] %vm467_vm0, %v5311_v36 }
  0xa5   : > { %562 = vst.msk [vmem:[#allocation3 + $0xf0] sm:$0xff] %vm467_vm0, %v5311_v36  ;;  %563 = vst.msk [vmem:[#allocation3 + $0xf8] sm:$0xff] %vm467_vm0, %v5311_v36  ;;  %1007 = vadd.xlane.f32.xlu1 %v7876_v22  ;;  %v6347_v49 = vpop.permute.xlu1 %1348  ;;  %v7888_v36 = vld [vmem:[#allocation21_spill] sm:$0xff] }
  0xa6   : > { %1914 = vmatmul.mubr.bf16.gmra.mrb[40].mxu0 %v5182_v15  ;;  %v7895_v15 = vld [vmem:[#allocation28_spill] sm:$0xff] }
  0xa7   : > { %1010 = vadd.xlane.f32.xlu0 %v7877_v30  ;;  %1923 = vmatprep.mubr.bf16.mxu0 %v5183_v41  ;;  %v6349_v23 = vpop.permute.xlu0 %1353  ;;  %v5203_v30 = vld [vmem:[%s7792_s2 + $0x28] ss:$16 sps:$4 sm:$0xff]  }
  0xa9   : > { %959 = vadd.xlane.f32.xlu1 %v7878_v38  ;;  %v6363_v1 = vpop.permute.xlu1 %1358  ;;  %v7897_v38 = vld [vmem:[#allocation30_spill] sm:$0xff] }
  0xab   : > { %962 = vadd.xlane.f32.xlu0 %v7879_v3  ;;  %v6365_v24 = vpop.permute.xlu0 %1363  ;;  %v7899_v3 = vld [vmem:[#allocation32_spill] sm:$0xff] }
  0xad   : > { %1061 = vadd.xlane.f32.xlu1 %v1060_v45  ;;  %v6368_v51 = vpop.permute.xlu1 %1368  ;;  %v5204_v45 = vld [vmem:[%s7792_s2 + $0x4c] ss:$16 sps:$4 sm:$0xff]  }
  0xae   : > { %1924 = vmatmul.mubr.bf16.gmra.mrb[44].mxu0 %v5185_v28  ;;  %v7898_v28 = vld [vmem:[#allocation31_spill] sm:$0xff] }
  0xaf   : > { %1064 = vadd.xlane.f32.xlu0 %v1063_v26  ;;  %1933 = vmatprep.mubr.bf16.mxu0 %v5186_v59  ;;  %v6370_v10 = vpop.permute.xlu0 %1373 }
  0xb1   : > { %1013 = vadd.xlane.f32.xlu1 %v7880_v18  ;;  %v6381_v29 = vpop.permute.xlu1 %1378  ;;  %v7900_v18 = vld [vmem:[#allocation33_spill] sm:$0xff] }
  0xb3   : > { %1016 = vadd.xlane.f32.xlu0 %v7881_v14  ;;  %v6383_v34 = vpop.permute.xlu0 %1383  ;;  %v5207_v14 = vld [vmem:[%s7792_s2 + $0x6c] ss:$16 sps:$4 sm:$0xff]  }
  0xb5   : > { %1067 = vadd.xlane.f32.xlu1 %v1066_v20  ;;  %v6394_v7 = vpop.permute.xlu1 %1388  ;;  %v5206_v20 = vld [vmem:[%s7792_s2 + $0x48] ss:$16 sps:$4 sm:$0xff]  }
  0xb6   : > { %1934 = vmatmul.mubr.bf16.gmra.mrb[48].mxu0 %v5188_v25  ;;  %v7901_v25 = vld [vmem:[#allocation34_spill] sm:$0xff] }
  0xb7   : > { %1070 = vadd.xlane.f32.xlu0 %v1069_v11  ;;  %1943 = vmatprep.mubr.bf16.mxu0 %v5189_v57  ;;  %v6396_v37 = vpop.permute.xlu0 %1393 }
  0xb9   : > { %1019 = vadd.xlane.f32.xlu1 %v7882_v43  ;;  %v6407_v50 = vpop.permute.xlu1 %1398  ;;  %v7902_v43 = vld [vmem:[#allocation35_spill] sm:$0xff] }
  0xbb   : > { %1022 = vadd.xlane.f32.xlu0 %v7883_v58  ;;  %v6409_v52 = vpop.permute.xlu0 %1403 }
  0xbd   : > { %1073 = vadd.xlane.f32.xlu1 %v1072_v54  ;;  %v6414_v41 = vpop.permute.xlu1 %1408  ;;  %v5209_v54 = vld [vmem:[%s7792_s2 + $0x68] ss:$16 sps:$4 sm:$0xff]  }
  0xbe   : > { %1944 = vmatmul.mubr.bf16.gmra.mrb[52].mxu0 %v5191_v33  ;;  %v5210_v33 = vld [vmem:[%s7792_s2 + $0x8c] ss:$16 sps:$4 sm:$0xff]  }
  0xbf   : > { %1076 = vadd.xlane.f32.xlu0 %v1075_v2  ;;  %1953 = vmatprep.mubr.bf16.mxu0 %v5192_v12  ;;  %v6416_v22 = vpop.permute.xlu0 %1413  ;;  %v708_v12 = vld [vmem:[%s7796_s6 + $0x80] sm:$0xff] }
  0xc1   : > { %1025 = vadd.xlane.f32.xlu1 %v7884_v42  ;;  %v6427_v26 = vpop.permute.xlu1 %1418 }
  0xc3   : > { %1028 = vadd.xlane.f32.xlu0 %v7885_v0  ;;  %v6429_v59 = vpop.permute.xlu0 %1423  ;;  %v5213_v0 = vld [vmem:[%s7792_s2 + $0xac] ss:$16 sps:$4 sm:$0xff]  }
  0xc5   : > { %1079 = vadd.xlane.f32.xlu1 %v7886_v13  ;;  %v6439_v11 = vpop.permute.xlu1 %1428  ;;  %v693_v13 = vld [vmem:[%s7796_s6 + $0x8] sm:$0xff] }
  0xc6   : > { %1954 = vmatmul.mubr.bf16.gmra.mrb[56].mxu0 %v5194_v8  ;;  %v5212_v8 = vld [vmem:[%s7792_s2 + $0x88] ss:$16 sps:$4 sm:$0xff]  }
  0xc7   : > { %1082 = vadd.xlane.f32.xlu0 %v7887_v6  ;;  %1963 = vmatprep.mubr.bf16.mxu0 %v5195_v56  ;;  %v6441_v57 = vpop.permute.xlu0 %1433  ;;  %v868_v56 = vld [vmem:[#allocation2 + $0x80] sm:$0xff] }
  0xc9   : > { %1031 = vadd.xlane.f32.xlu1 %v7888_v36  ;;  %v6451_v58 = vpop.permute.xlu1 %1438 }
  0xcb   : > { %1034 = vadd.xlane.f32.xlu0 %v7889_v5  ;;  %v6453_v2 = vpop.permute.xlu0 %1443  ;;  %v5215_v5 = vld [vmem:[%s7792_s2 + $0xa8] ss:$16 sps:$4 sm:$0xff]  }
  0xcd   : > { %1085 = vadd.xlane.f32.xlu1 %v7890_v35  ;;  %v6459_v42 = vpop.permute.xlu1 %1448  ;;  %v5216_v35 = vld [vmem:[%s7792_s2 + $0xcc] ss:$16 sps:$4 sm:$0xff]  }
  0xce   : > { %1964 = vmatmul.mubr.bf16.gmra.mrb[60].mxu0 %v5197_v4  ;;  %v852_v4 = vld [vmem:[#allocation2] sm:$0xff] }
  0xcf   : > { %1088 = vadd.xlane.f32.xlu0 %v7891_v27  ;;  %2006 = vmatprep.mubr.bf16.mxu0 %v5200_v61  ;;  %v710_v61 = vld [vmem:[%s7796_s6 + $0x90] sm:$0xff]  ;;  %v869_v27 = vld [vmem:[#allocation2 + $0x88] sm:$0xff] }
  0xd1   : > { %1037 = vadd.xlane.f32.xlu1 %v7892_v16  ;;  %v6476_v6 = vpop.permute.xlu1 %1458 }
  0xd3   : > { %1040 = vadd.xlane.f32.xlu0 %v7893_v47 }
  0xd5   : > { %1091 = vadd.xlane.f32.xlu1 %v7894_v9 }
  0xd6   : > { %2007 = vmatmul.mubr.bf16.vlgmr.msra.gmra.mrb[0].mxu0 %v5198_v46 }
  0xd7   : > { %1094 = vadd.xlane.f32.xlu0 %v7895_v15  ;;  %2016 = vmatprep.mubr.bf16.mxu0 %v5201_v62  ;;  %v853_v62 = vld [vmem:[#allocation2 + $0x8] sm:$0xff]  ;;  %v694_v15 = vld [vmem:[%s7796_s6 + $0x10] sm:$0xff] }
  0xd9   : > { %1043 = vadd.xlane.f32.xlu1 %v7896_v53  ;;  %v870_v53 = vld [vmem:[#allocation2 + $0x90] sm:$0xff] }
  0xdb   : > { %1046 = vadd.xlane.f32.xlu0 %v7897_v38 }
  0xdd   : > { %1100 = vadd.xlane.f32.xlu1 %v7898_v28  ;;  %v871_v28 = vld [vmem:[#allocation2 + $0x98] sm:$0xff] }
  0xde   : > { %2017 = vmatmul.mubr.bf16.gmra.mrb[4].mxu0 %v5203_v30 }
  0xdf   : > { %1097 = vadd.xlane.f32.xlu0 %v7899_v3  ;;  %2026 = vmatprep.mubr.bf16.mxu0 %v5204_v45  ;;  %v5218_v3 = vld [vmem:[%s7792_s2 + $0xc8] ss:$16 sps:$4 sm:$0xff]  }
  0xe1   : > { %1106 = vadd.xlane.f32.xlu1 %v7900_v18 }
  0xe3   : > { %1049 = vadd.xlane.f32.xlu0 %v7901_v25  ;;  %v5219_v25 = vld [vmem:[%s7792_s2 + $0xec] ss:$16 sps:$4 sm:$0xff]  }
  0xe6   : > { %2027 = vmatmul.mubr.bf16.gmra.mrb[8].mxu0 %v5206_v20  ;;  %v695_v20 = vld [vmem:[%s7796_s6 + $0x18] sm:$0xff] }
  0xe7   : > { %1052 = vadd.xlane.f32.xlu0 %v7902_v43  ;;  %2036 = vmatprep.mubr.bf16.mxu0 %v5207_v14  ;;  %v854_v14 = vld [vmem:[#allocation2 + $0x10] sm:$0xff] }
  0xeb   : > { %1103 = vadd.xlane.f32.xlu0 %v6005_v48  ;;  %v6461_v48 = vpop.permute.xlu0 %1453 }
  0xee   : > { %2037 = vmatmul.mubr.bf16.gmra.mrb[12].mxu0 %v5209_v54 }
  0xef   : > { %1055 = vadd.xlane.f32.xlu0 %v6007_v19  ;;  %2046 = vmatprep.mubr.bf16.mxu0 %v5210_v33  ;;  %v692_v19 = vld [vmem:[%s7796_s6] sm:$0xff] }
  0xf2   : > { %2634 = vperm.xlu1 %5149, %v708_v12   ;;  %v709_v12 = vld [vmem:[%s7796_s6 + $0x88] sm:$0xff] }
  0xf3   : > { %1058 = vadd.xlane.f32.xlu0 %v6037_v44 }
  0xf6   : > { %2329 = vperm.xlu1 %5149, %v692_v19   ;;  %2047 = vmatmul.mubr.bf16.gmra.mrb[16].mxu0 %v5212_v8  ;;  %v855_v8 = vld [vmem:[#allocation2 + $0x18] sm:$0xff] }
  0xf7   : > { %2056 = vmatprep.mubr.bf16.mxu0 %v5213_v0  ;;  %v712_v0 = vld [vmem:[%s7796_s6 + $0xa0] sm:$0xff] }
  0xf8   : > { %v966_v36 = vpop.xlane.xlu0 %965 }
  0xf9   : > { %v1124_v44 = vadd.f32 %v966_v36, %v868_v56  ;;  %v872_v56 = vld [vmem:[#allocation2 + $0xa0] sm:$0xff] }
  0xfa   : > { %2334 = vperm.xlu1 %5149, %v693_v13  }
  0xfb   : > { %1189 = vst.msk [vmem:[#allocation2 + $0x80] sm:$0xff] %vm467_vm0, %v1124_v44 }
  0xfc   : > { %v918_v16 = vpop.xlane.xlu0 %917 }
  0xfd   : > { %v1108_v46 = vadd.f32 %v918_v16, %v852_v4  ;;  %v711_v4 = vld [vmem:[%s7796_s6 + $0x98] sm:$0xff] }
  0xfe   : > { %v969_v47 = vpop.xlane.xlu1 %968  ;;  %2644 = vperm.xlu1 %5149, %v710_v61   ;;  %2057 = vmatmul.mubr.bf16.gmra.mrb[20].mxu0 %v5215_v5  ;;  %v873_v5 = vld [vmem:[#allocation2 + $0xa8] sm:$0xff] }
  0xff   : > { %v1125_v9 = vadd.f32 %v969_v47, %v869_v27  ;;  %1173 = vst.msk [vmem:[#allocation2] sm:$0xff] %vm467_vm0, %v1108_v46  ;;  %2066 = vmatprep.mubr.bf16.mxu0 %v5216_v35  ;;  %v5221_v61 = vld [vmem:[%s7792_s2 + $0xe8] ss:$16 sps:$4 sm:$0xff]   ;;  %v696_v27 = vld [vmem:[%s7796_s6 + $0x20] sm:$0xff]  ;;  %v5222_v16 = vld [vmem:[%s7792_s2 + $0x10c] ss:$16 sps:$4 sm:$0xff]  }
 0x100   : > { %v921_v30 = vpop.xlane.xlu0 %920  ;;  %v856_v46 = vld [vmem:[#allocation2 + $0x20] sm:$0xff] }
 0x101   : > { %1190 = vst.msk [vmem:[#allocation2 + $0x88] sm:$0xff] %vm467_vm0, %v1125_v9  ;;  %v1109_v38 = vadd.f32 %v921_v30, %v853_v62 }
 0x102   : > { %v972_v45 = vpop.xlane.xlu1 %971  ;;  %2339 = vperm.xlu1 %5149, %v694_v15   ;;  %v713_v15 = vld [vmem:[%s7796_s6 + $0xa8] sm:$0xff] }
 0x103   : > { %v1126_v18 = vadd.f32 %v972_v45, %v870_v53  ;;  %1174 = vst.msk [vmem:[#allocation2 + $0x8] sm:$0xff] %vm467_vm0, %v1109_v38  ;;  %v857_v53 = vld [vmem:[#allocation2 + $0x28] sm:$0xff]  ;;  %v874_v45 = vld [vmem:[#allocation2 + $0xb0] sm:$0xff] }
 0x104   : > { %v975_v43 = vpop.xlane.xlu0 %974  ;;  %v697_v38 = vld [vmem:[%s7796_s6 + $0x28] sm:$0xff] }
 0x105   : > { %1191 = vst.msk [vmem:[#allocation2 + $0x90] sm:$0xff] %vm467_vm0, %v1126_v18  ;;  %v1127_v54 = vadd.f32 %v975_v43, %v871_v28 }
 0x106   : > { %v924_v33 = vpop.xlane.xlu1 %923  ;;  %2344 = vperm.xlu1 %5149, %v695_v20   ;;  %2067 = vmatmul.mubr.bf16.gmra.mrb[24].mxu0 %v5218_v3  ;;  %v714_v20 = vld [vmem:[%s7796_s6 + $0xb0] sm:$0xff] }
 0x107   : > { %v1110_v19 = vadd.f32 %v924_v33, %v854_v14  ;;  %1192 = vst.msk [vmem:[#allocation2 + $0x98] sm:$0xff] %vm467_vm0, %v1127_v54  ;;  %2076 = vmatprep.mubr.bf16.mxu0 %v5219_v25  ;;  %v875_v25 = vld [vmem:[#allocation2 + $0xb8] sm:$0xff] }
 0x108   : > { %v927_v13 = vpop.xlane.xlu0 %926  ;;  %v5224_v14 = vld [vmem:[%s7792_s2 + $0x108] ss:$16 sps:$4 sm:$0xff]   ;;  %v5225_v33 = vld [vmem:[%s7792_s2 + $0x12c] ss:$16 sps:$4 sm:$0xff]  }
 0x109   : > { %1175 = vst.msk [vmem:[#allocation2 + $0x10] sm:$0xff] %vm467_vm0, %v1110_v19  ;;  %2639 = vperm.xlu0 %5148, %v709_v12   ;;  %v1111_v36 = vadd.f32 %v927_v13, %v855_v8  ;;  %v715_v54 = vld [vmem:[%s7796_s6 + $0xb8] sm:$0xff]  ;;  %v858_v12 = vld [vmem:[#allocation2 + $0x30] sm:$0xff] }
 0x10a   : > { %v978_v44 = vpop.xlane.xlu1 %977  ;;  %2654 = vperm.xlu1 %5149, %v712_v0   ;;  %v859_v13 = vld [vmem:[#allocation2 + $0x38] sm:$0xff] }
 0x10b   : > { %v1128_v35 = vadd.f32 %v978_v44, %v872_v56  ;;  %1176 = vst.msk [vmem:[#allocation2 + $0x18] sm:$0xff] %vm467_vm0, %v1111_v36  ;;  %v698_v56 = vld [vmem:[%s7796_s6 + $0x30] sm:$0xff]  ;;  %v699_v44 = vld [vmem:[%s7796_s6 + $0x38] sm:$0xff] }
 0x10c   : > { %v981_v47 = vpop.xlane.xlu0 %980 }
 0x10d   : > { %1193 = vst.msk [vmem:[#allocation2 + $0xa0] sm:$0xff] %vm467_vm0, %v1128_v35  ;;  %2649 = vperm.xlu0 %5148, %v711_v4   ;;  %v1129_v62 = vadd.f32 %v981_v47, %v873_v5  ;;  %v876_v4 = vld [vmem:[#allocation2 + $0xc0] sm:$0xff] }
 0x10e   : > { %v930_v9 = vpop.xlane.xlu1 %929  ;;  %2349 = vperm.xlu1 %5149, %v696_v27   ;;  %2077 = vmatmul.mubr.bf16.gmra.mrb[28].mxu0 %v5221_v61  ;;  %v716_v27 = vld [vmem:[%s7796_s6 + $0xc0] sm:$0xff] }
 0x10f   : > { %v1112_v30 = vadd.f32 %v930_v9, %v856_v46  ;;  %1194 = vst.msk [vmem:[#allocation2 + $0xa8] sm:$0xff] %vm467_vm0, %v1129_v62  ;;  %2086 = vmatprep.mubr.bf16.mxu0 %v5222_v16  ;;  %v877_v16 = vld [vmem:[#allocation2 + $0xc8] sm:$0xff] }
 0x110   : > { %v933_v28 = vpop.xlane.xlu0 %932  ;;  %v5227_v46 = vld [vmem:[%s7792_s2 + $0x128] ss:$16 sps:$4 sm:$0xff]   ;;  %v5228_v9 = vld [vmem:[%s7792_s2 + $0x14c] ss:$16 sps:$4 sm:$0xff]  }
 0x111   : > { %1177 = vst.msk [vmem:[#allocation2 + $0x20] sm:$0xff] %vm467_vm0, %v1112_v30  ;;  %2659 = vperm.xlu0 %5148, %v713_v15   ;;  %v1113_v3 = vadd.f32 %v933_v28, %v857_v53  ;;  %v717_v62 = vld [vmem:[%s7796_s6 + $0xc8] sm:$0xff]  ;;  %v860_v15 = vld [vmem:[#allocation2 + $0x40] sm:$0xff] }
 0x112   : > { %v984_v18 = vpop.xlane.xlu1 %983  ;;  %2354 = vperm.xlu1 %5149, %v697_v38   ;;  %v861_v28 = vld [vmem:[#allocation2 + $0x48] sm:$0xff] }
 0x113   : > { %v1130_v43 = vadd.f32 %v984_v18, %v874_v45  ;;  %1178 = vst.msk [vmem:[#allocation2 + $0x28] sm:$0xff] %vm467_vm0, %v1113_v3  ;;  %v700_v45 = vld [vmem:[%s7796_s6 + $0x40] sm:$0xff]  ;;  %v701_v18 = vld [vmem:[%s7796_s6 + $0x48] sm:$0xff] }
 0x114   : > { %v987_v8 = vpop.xlane.xlu0 %986 }
 0x115   : > { %1195 = vst.msk [vmem:[#allocation2 + $0xb0] sm:$0xff] %vm467_vm0, %v1130_v43  ;;  %2664 = vperm.xlu0 %5148, %v714_v20   ;;  %v1131_v19 = vadd.f32 %v987_v8, %v875_v25  ;;  %v878_v20 = vld [vmem:[#allocation2 + $0xd0] sm:$0xff] }
 0x116   : > { %v936_v0 = vpop.xlane.xlu1 %935  ;;  %2669 = vperm.xlu1 %5149, %v715_v54   ;;  %2087 = vmatmul.mubr.bf16.gmra.mrb[32].mxu0 %v5224_v14  ;;  %v718_v54 = vld [vmem:[%s7796_s6 + $0xd0] sm:$0xff] }
 0x117   : > { %v1114_v36 = vadd.f32 %v936_v0, %v858_v12  ;;  %1196 = vst.msk [vmem:[#allocation2 + $0xb8] sm:$0xff] %vm467_vm0, %v1131_v19  ;;  %2096 = vmatprep.mubr.bf16.mxu0 %v5225_v33  ;;  %v879_v33 = vld [vmem:[#allocation2 + $0xd8] sm:$0xff] }
 0x118   : > { %v939_v5 = vpop.xlane.xlu0 %938  ;;  %v5230_v12 = vld [vmem:[%s7792_s2 + $0x148] ss:$16 sps:$4 sm:$0xff]   ;;  %v5231_v0 = vld [vmem:[%s7792_s2 + $0x16c] ss:$16 sps:$4 sm:$0xff]  }
 0x119   : > { %1179 = vst.msk [vmem:[#allocation2 + $0x30] sm:$0xff] %vm467_vm0, %v1114_v36  ;;  %2359 = vperm.xlu0 %5148, %v698_v56   ;;  %v1115_v61 = vadd.f32 %v939_v5, %v859_v13  ;;  %v719_v19 = vld [vmem:[%s7796_s6 + $0xd8] sm:$0xff]  ;;  %v862_v56 = vld [vmem:[#allocation2 + $0x50] sm:$0xff] }
 0x11a   : > { %v990_v35 = vpop.xlane.xlu1 %989  ;;  %2364 = vperm.xlu1 %5149, %v699_v44   ;;  %v863_v5 = vld [vmem:[#allocation2 + $0x58] sm:$0xff] }
 0x11b   : > { %v1132_v47 = vadd.f32 %v990_v35, %v876_v4  ;;  %1180 = vst.msk [vmem:[#allocation2 + $0x38] sm:$0xff] %vm467_vm0, %v1115_v61  ;;  %v702_v4 = vld [vmem:[%s7796_s6 + $0x50] sm:$0xff]  ;;  %v703_v35 = vld [vmem:[%s7796_s6 + $0x58] sm:$0xff] }
 0x11c   : > { %v993_v53 = vpop.xlane.xlu0 %992 }
 0x11d   : > { %1197 = vst.msk [vmem:[#allocation2 + $0xc0] sm:$0xff] %vm467_vm0, %v1132_v47  ;;  %2674 = vperm.xlu0 %5148, %v716_v27   ;;  %v1133_v30 = vadd.f32 %v993_v53, %v877_v16  ;;  %v880_v27 = vld [vmem:[#allocation2 + $0xe0] sm:$0xff] }
 0x11e   : > { %v942_v38 = vpop.xlane.xlu1 %941  ;;  %2679 = vperm.xlu1 %5149, %v717_v62   ;;  %2097 = vmatmul.mubr.bf16.gmra.mrb[36].mxu0 %v5227_v46  ;;  %v720_v62 = vld [vmem:[%s7796_s6 + $0xe0] sm:$0xff] }
 0x11f   : > { %v1116_v3 = vadd.f32 %v942_v38, %v860_v15  ;;  %1198 = vst.msk [vmem:[#allocation2 + $0xc8] sm:$0xff] %vm467_vm0, %v1133_v30  ;;  %2106 = vmatprep.mubr.bf16.mxu0 %v5228_v9  ;;  %v881_v9 = vld [vmem:[#allocation2 + $0xe8] sm:$0xff] }
 0x120   : > { %v945_v25 = vpop.xlane.xlu0 %944  ;;  %v5233_v15 = vld [vmem:[%s7792_s2 + $0x168] ss:$16 sps:$4 sm:$0xff]   ;;  %v5234_v38 = vld [vmem:[%s7792_s2 + $0x18c] ss:$16 sps:$4 sm:$0xff]  }
 0x121   : > { %1181 = vst.msk [vmem:[#allocation2 + $0x40] sm:$0xff] %vm467_vm0, %v1116_v3  ;;  %2369 = vperm.xlu0 %5148, %v700_v45   ;;  %v1117_v14 = vadd.f32 %v945_v25, %v861_v28  ;;  %v721_v30 = vld [vmem:[%s7796_s6 + $0xe8] sm:$0xff]  ;;  %v864_v45 = vld [vmem:[#allocation2 + $0x60] sm:$0xff] }
 0x122   : > { %v996_v43 = vpop.xlane.xlu1 %995  ;;  %2374 = vperm.xlu1 %5149, %v701_v18   ;;  %v865_v25 = vld [vmem:[#allocation2 + $0x68] sm:$0xff] }
 0x123   : > { %v1134_v8 = vadd.f32 %v996_v43, %v878_v20  ;;  %1182 = vst.msk [vmem:[#allocation2 + $0x48] sm:$0xff] %vm467_vm0, %v1117_v14  ;;  %v704_v20 = vld [vmem:[%s7796_s6 + $0x60] sm:$0xff]  ;;  %v705_v43 = vld [vmem:[%s7796_s6 + $0x68] sm:$0xff] }
 0x124   : > { %v999_v13 = vpop.xlane.xlu0 %998 }
 0x125   : > { %1199 = vst.msk [vmem:[#allocation2 + $0xd0] sm:$0xff] %vm467_vm0, %v1134_v8  ;;  %2684 = vperm.xlu0 %5148, %v718_v54   ;;  %v1135_v36 = vadd.f32 %v999_v13, %v879_v33  ;;  %v882_v54 = vld [vmem:[#allocation2 + $0xf0] sm:$0xff] }
 0x126   : > { %v948_v44 = vpop.xlane.xlu1 %947  ;;  %2689 = vperm.xlu1 %5149, %v719_v19   ;;  %2107 = vmatmul.mubr.bf16.gmra.mrb[40].mxu0 %v5230_v12  ;;  %v722_v19 = vld [vmem:[%s7796_s6 + $0xf0] sm:$0xff] }
 0x127   : > { %v1118_v61 = vadd.f32 %v948_v44, %v862_v56  ;;  %1200 = vst.msk [vmem:[#allocation2 + $0xd8] sm:$0xff] %vm467_vm0, %v1135_v36  ;;  %2116 = vmatprep.mubr.bf16.mxu0 %v5231_v0  ;;  %v883_v0 = vld [vmem:[#allocation2 + $0xf8] sm:$0xff] }
 0x128   : > { %v951_v16 = vpop.xlane.xlu0 %950  ;;  %v5236_v56 = vld [vmem:[%s7792_s2 + $0x188] ss:$16 sps:$4 sm:$0xff]   ;;  %v5237_v44 = vld [vmem:[%s7792_s2 + $0x1ac] ss:$16 sps:$4 sm:$0xff]  }
 0x129   : > { %1183 = vst.msk [vmem:[#allocation2 + $0x50] sm:$0xff] %vm467_vm0, %v1118_v61  ;;  %2379 = vperm.xlu0 %5148, %v702_v4   ;;  %v1119_v46 = vadd.f32 %v951_v16, %v863_v5  ;;  %v723_v36 = vld [vmem:[%s7796_s6 + $0xf8] sm:$0xff]  ;;  %v866_v4 = vld [vmem:[#allocation2 + $0x70] sm:$0xff] }
 0x12a   : > { %v1002_v47 = vpop.xlane.xlu1 %1001  ;;  %2384 = vperm.xlu1 %5149, %v703_v35   ;;  %v867_v16 = vld [vmem:[#allocation2 + $0x78] sm:$0xff] }
 0x12b   : > { %v1136_v53 = vadd.f32 %v1002_v47, %v880_v27  ;;  %1184 = vst.msk [vmem:[#allocation2 + $0x58] sm:$0xff] %vm467_vm0, %v1119_v46  ;;  %v706_v27 = vld [vmem:[%s7796_s6 + $0x70] sm:$0xff]  ;;  %v707_v47 = vld [vmem:[%s7796_s6 + $0x78] sm:$0xff] }
 0x12c   : > { %v1005_v28 = vpop.xlane.xlu0 %1004 }
 0x12d   : > { %1201 = vst.msk [vmem:[#allocation2 + $0xe0] sm:$0xff] %vm467_vm0, %v1136_v53  ;;  %2694 = vperm.xlu0 %5148, %v720_v62   ;;  %v1137_v3 = vadd.f32 %v1005_v28, %v881_v9  ;;  %v900_v62 = vld [vmem:[#allocation2 + $0x180] sm:$0xff]  ;;  %v5240_v28 = vld [vmem:[%s7792_s2 + $0x1cc] ss:$16 sps:$4 sm:$0xff]  }
 0x12e   : > { %v954_v18 = vpop.xlane.xlu1 %953  ;;  %2699 = vperm.xlu1 %5149, %v721_v30   ;;  %2117 = vmatmul.mubr.bf16.gmra.mrb[44].mxu0 %v5233_v15  ;;  %v901_v30 = vld [vmem:[#allocation2 + $0x188] sm:$0xff] }
 0x12f   : > { %v1120_v14 = vadd.f32 %v954_v18, %v864_v45  ;;  %1202 = vst.msk [vmem:[#allocation2 + $0xe8] sm:$0xff] %vm467_vm0, %v1137_v3  ;;  %2126 = vmatprep.mubr.bf16.mxu0 %v5234_v38  ;;  %v5239_v38 = vld [vmem:[%s7792_s2 + $0x1a8] ss:$16 sps:$4 sm:$0xff]   ;;  %v884_v3 = vld [vmem:[#allocation2 + $0x100] sm:$0xff] }
 0x130   : > { %v957_v33 = vpop.xlane.xlu0 %956 }
 0x131   : > { %1185 = vst.msk [vmem:[#allocation2 + $0x60] sm:$0xff] %vm467_vm0, %v1120_v14  ;;  %2389 = vperm.xlu0 %5148, %v704_v20   ;;  %v1121_v12 = vadd.f32 %v957_v33, %v865_v25  ;;  %v885_v14 = vld [vmem:[#allocation2 + $0x108] sm:$0xff] }
 0x132   : > { %v1008_v8 = vpop.xlane.xlu1 %1007  ;;  %2394 = vperm.xlu1 %5149, %v705_v43  }
 0x133   : > { %v1138_v13 = vadd.f32 %v1008_v8, %v882_v54  ;;  %1186 = vst.msk [vmem:[#allocation2 + $0x68] sm:$0xff] %vm467_vm0, %v1121_v12  ;;  %v902_v54 = vld [vmem:[#allocation2 + $0x190] sm:$0xff] }
 0x134   : > { %v1011_v5 = vpop.xlane.xlu0 %1010 }
 0x135   : > { %1203 = vst.msk [vmem:[#allocation2 + $0xf0] sm:$0xff] %vm467_vm0, %v1138_v13  ;;  %2704 = vperm.xlu0 %5148, %v722_v19   ;;  %v1139_v61 = vadd.f32 %v1011_v5, %v883_v0  ;;  %v903_v19 = vld [vmem:[#allocation2 + $0x198] sm:$0xff] }
 0x136   : > { %v960_v35 = vpop.xlane.xlu1 %959  ;;  %2709 = vperm.xlu1 %5149, %v723_v36   ;;  %2127 = vmatmul.mubr.bf16.gmra.mrb[48].mxu0 %v5236_v56  ;;  %v5242_v0 = vld [vmem:[%s7792_s2 + $0x1c8] ss:$16 sps:$4 sm:$0xff]   ;;  %v5243_v13 = vld [vmem:[%s7792_s2 + $0x1ec] ss:$16 sps:$4 sm:$0xff]   ;;  %v886_v36 = vld [vmem:[#allocation2 + $0x110] sm:$0xff] }
 0x137   : > { %v1122_v46 = vadd.f32 %v960_v35, %v866_v4  ;;  %1204 = vst.msk [vmem:[#allocation2 + $0xf8] sm:$0xff] %vm467_vm0, %v1139_v61  ;;  %2136 = vmatprep.mubr.bf16.mxu0 %v5237_v44  ;;  %v887_v61 = vld [vmem:[#allocation2 + $0x118] sm:$0xff] }
 0x138   : > { %v963_v9 = vpop.xlane.xlu0 %962 }
 0x139   : > { %1187 = vst.msk [vmem:[#allocation2 + $0x70] sm:$0xff] %vm467_vm0, %v1122_v46  ;;  %2399 = vperm.xlu0 %5148, %v706_v27   ;;  %v1123_v15 = vadd.f32 %v963_v9, %v867_v16  ;;  %v904_v27 = vld [vmem:[#allocation2 + $0x1a0] sm:$0xff]  ;;  %v5245_v9 = vld [vmem:[%s7792_s2 + $0x1e8] ss:$16 sps:$4 sm:$0xff]  }
 0x13a   : > { %v1062_v53 = vpop.xlane.xlu1 %1061  ;;  %2404 = vperm.xlu1 %5149, %v707_v47  }
 0x13b   : > { %v1156_v45 = vadd.f32 %v1062_v53, %v900_v62  ;;  %1188 = vst.msk [vmem:[#allocation2 + $0x78] sm:$0xff] %vm467_vm0, %v1123_v15  ;;  %v905_v62 = vld [vmem:[#allocation2 + $0x1a8] sm:$0xff]  ;;  %v888_v53 = vld [vmem:[#allocation2 + $0x120] sm:$0xff] }
 0x13c   : > { %v1065_v18 = vpop.xlane.xlu0 %1064 }
 0x13d   : > { %1221 = vst.msk [vmem:[#allocation2 + $0x180] sm:$0xff] %vm467_vm0, %v1156_v45  ;;  %v1157_v20 = vadd.f32 %v1065_v18, %v901_v30  ;;  %v906_v18 = vld [vmem:[#allocation2 + $0x1b0] sm:$0xff] }
 0x13e   : > { %v1014_v25 = vpop.xlane.xlu1 %1013  ;;  %2137 = vmatmul.mubr.bf16.gmra.mrb[52].mxu0 %v5239_v38 }
 0x13f   : > { %v1140_v43 = vadd.f32 %v1014_v25, %v884_v3  ;;  %1222 = vst.msk [vmem:[#allocation2 + $0x188] sm:$0xff] %vm467_vm0, %v1157_v20  ;;  %2146 = vmatprep.mubr.bf16.mxu0 %v5240_v28  ;;  %v889_v28 = vld [vmem:[#allocation2 + $0x128] sm:$0xff] }
 0x140   : > { %v1017_v33 = vpop.xlane.xlu0 %1016 }
 0x141   : > { %1205 = vst.msk [vmem:[#allocation2 + $0x100] sm:$0xff] %vm467_vm0, %v1140_v43  ;;  %v1141_v12 = vadd.f32 %v1017_v33, %v885_v14  ;;  %v907_v43 = vld [vmem:[#allocation2 + $0x1b8] sm:$0xff]  ;;  %v890_v33 = vld [vmem:[#allocation2 + $0x130] sm:$0xff] }
 0x142   : > { %v1068_v8 = vpop.xlane.xlu1 %1067 }
 0x143   : > { %v1158_v56 = vadd.f32 %v1068_v8, %v902_v54  ;;  %1206 = vst.msk [vmem:[#allocation2 + $0x108] sm:$0xff] %vm467_vm0, %v1141_v12 }
 0x144   : > { %v1071_v44 = vpop.xlane.xlu0 %1070 }
 0x145   : > { %1223 = vst.msk [vmem:[#allocation2 + $0x190] sm:$0xff] %vm467_vm0, %v1158_v56  ;;  %v1159_v4 = vadd.f32 %v1071_v44, %v903_v19 }
 0x146   : > { %v1020_v5 = vpop.xlane.xlu1 %1019  ;;  %2147 = vmatmul.mubr.bf16.gmra.mrb[56].mxu0 %v5242_v0  ;;  %v891_v0 = vld [vmem:[#allocation2 + $0x138] sm:$0xff] }
 0x147   : > { %v1142_v35 = vadd.f32 %v1020_v5, %v886_v36  ;;  %1224 = vst.msk [vmem:[#allocation2 + $0x198] sm:$0xff] %vm467_vm0, %v1159_v4  ;;  %2156 = vmatprep.mubr.bf16.mxu0 %v5243_v13  ;;  %v908_v13 = vld [vmem:[#allocation2 + $0x1c0] sm:$0xff]  ;;  %v909_v5 = vld [vmem:[#allocation2 + $0x1c8] sm:$0xff] }
 0x148   : > { %v1023_v16 = vpop.xlane.xlu0 %1022 }
 0x149   : > { %1207 = vst.msk [vmem:[#allocation2 + $0x110] sm:$0xff] %vm467_vm0, %v1142_v35  ;;  %v1143_v46 = vadd.f32 %v1023_v16, %v887_v61  ;;  %v892_v35 = vld [vmem:[#allocation2 + $0x140] sm:$0xff] }
 0x14a   : > { %v1074_v47 = vpop.xlane.xlu1 %1073 }
 0x14b   : > { %v1160_v15 = vadd.f32 %v1074_v47, %v904_v27  ;;  %1208 = vst.msk [vmem:[#allocation2 + $0x118] sm:$0xff] %vm467_vm0, %v1143_v46  ;;  %v893_v47 = vld [vmem:[#allocation2 + $0x148] sm:$0xff] }
 0x14c   : > { %v1077_v30 = vpop.xlane.xlu0 %1076 }
 0x14d   : > { %1225 = vst.msk [vmem:[#allocation2 + $0x1a0] sm:$0xff] %vm467_vm0, %v1160_v15  ;;  %v1161_v38 = vadd.f32 %v1077_v30, %v905_v62 }
 0x14e   : > { %v1026_v45 = vpop.xlane.xlu1 %1025  ;;  %2157 = vmatmul.mubr.bf16.gmra.mrb[60].mxu0 %v5245_v9  ;;  %v910_v9 = vld [vmem:[#allocation2 + $0x1d0] sm:$0xff] }
 0x14f   : > { %v1144_v3 = vadd.f32 %v1026_v45, %v888_v53  ;;  %1226 = vst.msk [vmem:[#allocation2 + $0x1a8] sm:$0xff] %vm467_vm0, %v1161_v38  ;;  %v911_v38 = vld [vmem:[#allocation2 + $0x1d8] sm:$0xff] }
 0x150   : > { %v1029_v20 = vpop.xlane.xlu0 %1028 }
 0x151   : > { %1209 = vst.msk [vmem:[#allocation2 + $0x120] sm:$0xff] %vm467_vm0, %v1144_v3  ;;  %v1145_v25 = vadd.f32 %v1029_v20, %v889_v28  ;;  %v894_v28 = vld [vmem:[#allocation2 + $0x150] sm:$0xff] }
 0x152   : > { %v1080_v14 = vpop.xlane.xlu1 %1079 }
 0x153   : > { %v1162_v54 = vadd.f32 %v1080_v14, %v906_v18  ;;  %1210 = vst.msk [vmem:[#allocation2 + $0x128] sm:$0xff] %vm467_vm0, %v1145_v25  ;;  %v895_v25 = vld [vmem:[#allocation2 + $0x158] sm:$0xff] }
 0x154   : > { %v1083_v12 = vpop.xlane.xlu0 %1082 }
 0x155   : > { %1227 = vst.msk [vmem:[#allocation2 + $0x1b0] sm:$0xff] %vm467_vm0, %v1162_v54  ;;  %v1163_v8 = vadd.f32 %v1083_v12, %v907_v43  ;;  %v913_v43 = vld [vmem:[#allocation2 + $0x1e8] sm:$0xff] }
 0x156   : > { %v1032_v19 = vpop.xlane.xlu1 %1031 }
 0x157   : > { %v1146_v56 = vadd.f32 %v1032_v19, %v890_v33  ;;  %1228 = vst.msk [vmem:[#allocation2 + $0x1b8] sm:$0xff] %vm467_vm0, %v1163_v8  ;;  %v912_v8 = vld [vmem:[#allocation2 + $0x1e0] sm:$0xff] }
 0x158   : > { %v1035_v36 = vpop.xlane.xlu0 %1034 }
 0x159   : > { %1211 = vst.msk [vmem:[#allocation2 + $0x130] sm:$0xff] %vm467_vm0, %v1146_v56  ;;  %v1147_v44 = vadd.f32 %v1035_v36, %v891_v0  ;;  %v915_v0 = vld [vmem:[#allocation2 + $0x1f8] sm:$0xff] }
 0x15a   : > { %v1086_v4 = vpop.xlane.xlu1 %1085 }
 0x15b   : > { %v1164_v61 = vadd.f32 %v1086_v4, %v908_v13  ;;  %1212 = vst.msk [vmem:[#allocation2 + $0x138] sm:$0xff] %vm467_vm0, %v1147_v44  ;;  %v896_v44 = vld [vmem:[#allocation2 + $0x160] sm:$0xff] }
 0x15c   : > { %v1089_v27 = vpop.xlane.xlu0 %1088 }
 0x15d   : > { %1229 = vst.msk [vmem:[#allocation2 + $0x1c0] sm:$0xff] %vm467_vm0, %v1164_v61  ;;  %v1165_v16 = vadd.f32 %v1089_v27, %v909_v5 }
 0x15e   : > { %v1038_v46 = vpop.xlane.xlu1 %1037 }
 0x15f   : > { %v1148_v62 = vadd.f32 %v1038_v46, %v892_v35  ;;  %1230 = vst.msk [vmem:[#allocation2 + $0x1c8] sm:$0xff] %vm467_vm0, %v1165_v16  ;;  %v897_v35 = vld [vmem:[#allocation2 + $0x168] sm:$0xff]  ;;  %v914_v46 = vld [vmem:[#allocation2 + $0x1f0] sm:$0xff] }
 0x160   : > { %v1041_v15 = vpop.xlane.xlu0 %1040 }
 0x161   : > { %1213 = vst.msk [vmem:[#allocation2 + $0x140] sm:$0xff] %vm467_vm0, %v1148_v62  ;;  %v1149_v53 = vadd.f32 %v1041_v15, %v893_v47 }
 0x162   : > { %v1092_v30 = vpop.xlane.xlu1 %1091 }
 0x163   : > { %v1166_v45 = vadd.f32 %v1092_v30, %v910_v9  ;;  %1214 = vst.msk [vmem:[#allocation2 + $0x148] sm:$0xff] %vm467_vm0, %v1149_v53  ;;  %v898_v9 = vld [vmem:[#allocation2 + $0x170] sm:$0xff]  ;;  %v899_v30 = vld [vmem:[#allocation2 + $0x178] sm:$0xff] }
 0x164   : > { %v1095_v3 = vpop.xlane.xlu0 %1094 }
 0x165   : > { %1231 = vst.msk [vmem:[#allocation2 + $0x1d0] sm:$0xff] %vm467_vm0, %v1166_v45  ;;  %v1167_v18 = vadd.f32 %v1095_v3, %v911_v38 }
 0x166   : > { %v1044_v20 = vpop.xlane.xlu1 %1043 }
 0x167   : > { %v1150_v14 = vadd.f32 %v1044_v20, %v894_v28  ;;  %1232 = vst.msk [vmem:[#allocation2 + $0x1d8] sm:$0xff] %vm467_vm0, %v1167_v18 }
 0x168   : > { %v1047_v54 = vpop.xlane.xlu0 %1046 }
 0x169   : > { %1215 = vst.msk [vmem:[#allocation2 + $0x150] sm:$0xff] %vm467_vm0, %v1150_v14  ;;  %v1151_v33 = vadd.f32 %v1047_v54, %v895_v25 }
 0x16a   : > { %v1101_v12 = vpop.xlane.xlu1 %1100 }
 0x16b   : > { %v1169_v19 = vadd.f32 %v1101_v12, %v913_v43  ;;  %1216 = vst.msk [vmem:[#allocation2 + $0x158] sm:$0xff] %vm467_vm0, %v1151_v33 }
 0x16c   : > { %v1098_v56 = vpop.xlane.xlu0 %1097 }
 0x16d   : > { %1234 = vst.msk [vmem:[#allocation2 + $0x1e8] sm:$0xff] %vm467_vm0, %v1169_v19  ;;  %v1168_v13 = vadd.f32 %v1098_v56, %v912_v8 }
 0x16e   : > { %v1107_v36 = vpop.xlane.xlu1 %1106 }
 0x16f   : > { %v1171_v4 = vadd.f32 %v1107_v36, %v915_v0  ;;  %1233 = vst.msk [vmem:[#allocation2 + $0x1e0] sm:$0xff] %vm467_vm0, %v1168_v13 }
 0x170   : > { %v1050_v5 = vpop.xlane.xlu0 %1049 }
 0x171   : > { %1236 = vst.msk [vmem:[#allocation2 + $0x1f8] sm:$0xff] %vm467_vm0, %v1171_v4  ;;  %v1152_v61 = vadd.f32 %v1050_v5, %v896_v44 }
 0x173   : > { %1217 = vst.msk [vmem:[#allocation2 + $0x160] sm:$0xff] %vm467_vm0, %v1152_v61 }
 0x174   : > { %v1053_v27 = vpop.xlane.xlu0 %1052 }
 0x175   : > { %v1153_v16 = vadd.f32 %v1053_v27, %v897_v35 }
 0x177   : > { %1218 = vst.msk [vmem:[#allocation2 + $0x168] sm:$0xff] %vm467_vm0, %v1153_v16 }
 0x178   : > { %v1104_v47 = vpop.xlane.xlu0 %1103 }
 0x179   : > { %v1170_v62 = vadd.f32 %v1104_v47, %v914_v46 }
 0x17b   : > { %1235 = vst.msk [vmem:[#allocation2 + $0x1f0] sm:$0xff] %vm467_vm0, %v1170_v62 }
 0x17c   : > { %v1056_v15 = vpop.xlane.xlu0 %1055 }
 0x17d   : > { %v1154_v53 = vadd.f32 %v1056_v15, %v898_v9 }
 0x17f   : > { %1219 = vst.msk [vmem:[#allocation2 + $0x170] sm:$0xff] %vm467_vm0, %v1154_v53 }
 0x180   : > { %v1059_v38 = vpop.xlane.xlu0 %1058 }
 0x181   : > { %v1155_v45 = vadd.f32 %v1059_v38, %v899_v30 }
 0x183   : > { %1220 = vst.msk [vmem:[#allocation2 + $0x178] sm:$0xff] %vm467_vm0, %v1155_v45 }
 0x1a9   : > { %v2008_v28 = vpop.f32.mrb[0].mxu0 }
 0x1aa   : > { %v4994_v3 = vadd.f32 %v2008_v28, %v6285_v17  ;;  %v2010_v18 = vpop.f32.mrb[1].mxu0 }
 0x1ab   : > { %v4995_v20 = vadd.f32 %v2010_v18, %v6285_v17  ;;  %v2012_v25 = vpop.f32.mrb[2].mxu0 }
 0x1ac   : > { %v4996_v14 = vadd.f32 %v2012_v25, %v6298_v32  ;;  %v2014_v43 = vpop.f32.mrb[3].mxu0  ;;  %v2167_v12 = vmax.f32 %v4994_v3, 0.0 }
 0x1ad   : > { %v2168_v54 = vmax.f32 %v4995_v20, 0.0  ;;  %v4997_v33 = vadd.f32 %v2014_v43, %v6298_v32 }
 0x1ae   : > { %v2169_v8 = vmax.f32 %v4996_v14, 0.0  ;;  %v6702_v44 = vmin.f32 %v2167_v12, 6.0 }
 0x1af   : > { %v2170_v19 = vmax.f32 %v4997_v33, 0.0  ;;  %v6698_v56 = vmin.f32 %v2168_v54, 6.0 }
 0x1b0   : > { %v6696_v0 = vmin.f32 %v2169_v8, 6.0 }
 0x1b1   : > { %v6700_v13 = vmin.f32 %v2170_v19, 6.0  ;;  %v2018_v36 = vpop.f32.mrb[4].mxu0 }
 0x1b2   : > { %v4998_v17 = vadd.f32 %v2018_v36, %v6296_v31  ;;  %v2020_v4 = vpop.f32.mrb[5].mxu0  ;;  %v2295_v16 = vpack.c.bf16 %v6696_v0, %v6702_v44 }
 0x1b3   : > { %v4999_v5 = vadd.f32 %v2020_v4, %v6296_v31  ;;  %v2022_v61 = vpop.f32.mrb[6].mxu0  ;;  %v2296_v32 = vpack.c.bf16 %v6700_v13, %v6698_v56 }
 0x1b4   : > { %v5000_v35 = vadd.f32 %v2022_v61, %v6309_v40  ;;  %v2024_v27 = vpop.f32.mrb[7].mxu0  ;;  %v2171_v62 = vmax.f32 %v4998_v17, 0.0 }
 0x1b5   : > { %v2172_v46 = vmax.f32 %v4999_v5, 0.0  ;;  %v5001_v47 = vadd.f32 %v2024_v27, %v6309_v40  ;;  %2455 = vmatprep.subr.bf16.mxu1 %v2296_v32 }
 0x1b6   : > { %v2173_v9 = vmax.f32 %v5000_v35, 0.0  ;;  %2456 = vmatpush1.bf16.msra.mxu1 %v2295_v16  ;;  %v6718_v45 = vmin.f32 %v2171_v62, 6.0 }
 0x1b7   : > { %v2174_v15 = vmax.f32 %v5001_v47, 0.0  ;;  %v6714_v31 = vmin.f32 %v2172_v46, 6.0 }
 0x1b8   : > { %v6712_v53 = vmin.f32 %v2173_v9, 6.0 }
 0x1b9   : > { %v6716_v30 = vmin.f32 %v2174_v15, 6.0  ;;  %v2028_v38 = vpop.f32.mrb[8].mxu0 }
 0x1ba   : > { %v5002_v28 = vadd.f32 %v2028_v38, %v6311_v55  ;;  %v2030_v3 = vpop.f32.mrb[9].mxu0  ;;  %v2297_v25 = vpack.c.bf16 %v6712_v53, %v6718_v45 }
 0x1bb   : > { %v2298_v40 = vpack.c.bf16 %v6716_v30, %v6714_v31  ;;  %v5003_v18 = vadd.f32 %v2030_v3, %v6311_v55  ;;  %v2032_v20 = vpop.f32.mrb[10].mxu0 }
 0x1bc   : > { %v5004_v14 = vadd.f32 %v2032_v20, %v6318_v60  ;;  %v2034_v43 = vpop.f32.mrb[11].mxu0  ;;  %v2175_v12 = vmax.f32 %v5002_v28, 0.0 }
 0x1bd   : > { %v2176_v54 = vmax.f32 %v5003_v18, 0.0  ;;  %v5005_v33 = vadd.f32 %v2034_v43, %v6318_v60  ;;  %2457 = vmatprep.subr.bf16.mxu1 %v2298_v40 }
 0x1be   : > { %v2177_v8 = vmax.f32 %v5004_v14, 0.0  ;;  %2458 = vmatpush1.bf16.msra.mxu1 %v2297_v25  ;;  %v6734_v5 = vmin.f32 %v2175_v12, 6.0 }
 0x1bf   : > { %v2178_v19 = vmax.f32 %v5005_v33, 0.0  ;;  %v6730_v17 = vmin.f32 %v2176_v54, 6.0 }
 0x1c0   : > { %v6728_v36 = vmin.f32 %v2177_v8, 6.0 }
 0x1c1   : > { %v6732_v55 = vmin.f32 %v2178_v19, 6.0  ;;  %v2038_v4 = vpop.f32.mrb[12].mxu0 }
 0x1c2   : > { %v5006_v61 = vadd.f32 %v2038_v4, %v6320_v21  ;;  %v2040_v32 = vpop.f32.mrb[13].mxu0  ;;  %v2299_v16 = vpack.c.bf16 %v6728_v36, %v6734_v5 }
 0x1c3   : > { %v2300_v60 = vpack.c.bf16 %v6732_v55, %v6730_v17  ;;  %v5007_v35 = vadd.f32 %v2040_v32, %v6320_v21  ;;  %v2042_v27 = vpop.f32.mrb[14].mxu0 }
 0x1c4   : > { %v5008_v46 = vadd.f32 %v2042_v27, %v6331_v63  ;;  %v2044_v47 = vpop.f32.mrb[15].mxu0  ;;  %v2179_v15 = vmax.f32 %v5006_v61, 0.0 }
 0x1c5   : > { %v2180_v62 = vmax.f32 %v5007_v35, 0.0  ;;  %v5009_v9 = vadd.f32 %v2044_v47, %v6331_v63  ;;  %2459 = vmatprep.subr.bf16.mxu1 %v2300_v60 }
 0x1c6   : > { %v2181_v38 = vmax.f32 %v5008_v46, 0.0  ;;  %2460 = vmatpush1.bf16.msra.mxu1 %v2299_v16  ;;  %v6750_v20 = vmin.f32 %v2179_v15, 6.0 }
 0x1c7   : > { %v2182_v28 = vmax.f32 %v5009_v9, 0.0  ;;  %v6746_v40 = vmin.f32 %v2180_v62, 6.0 }
 0x1c8   : > { %v6744_v3 = vmin.f32 %v2181_v38, 6.0 }
 0x1c9   : > { %v6748_v21 = vmin.f32 %v2182_v28, 6.0  ;;  %v2048_v18 = vpop.f32.mrb[16].mxu0 }
 0x1ca   : > { %v5010_v25 = vadd.f32 %v2048_v18, %v6333_v39  ;;  %v2050_v14 = vpop.f32.mrb[17].mxu0  ;;  %v2301_v33 = vpack.c.bf16 %v6744_v3, %v6750_v20 }
 0x1cb   : > { %v2302_v63 = vpack.c.bf16 %v6748_v21, %v6746_v40  ;;  %v5011_v43 = vadd.f32 %v2050_v14, %v6333_v39  ;;  %v2052_v54 = vpop.f32.mrb[18].mxu0 }
 0x1cc   : > { %v5012_v12 = vadd.f32 %v2052_v54, %v6347_v49  ;;  %v2054_v8 = vpop.f32.mrb[19].mxu0  ;;  %v2183_v61 = vmax.f32 %v5010_v25, 0.0 }
 0x1cd   : > { %v2184_v19 = vmax.f32 %v5011_v43, 0.0  ;;  %v5013_v4 = vadd.f32 %v2054_v8, %v6347_v49  ;;  %2461 = vmatprep.subr.bf16.mxu1 %v2302_v63 }
 0x1ce   : > { %v2185_v32 = vmax.f32 %v5012_v12, 0.0  ;;  %2462 = vmatpush1.bf16.msra.mxu1 %v2301_v33  ;;  %v6766_v46 = vmin.f32 %v2183_v61, 6.0 }
 0x1cf   : > { %v2186_v60 = vmax.f32 %v5013_v4, 0.0  ;;  %v6762_v27 = vmin.f32 %v2184_v19, 6.0 }
 0x1d0   : > { %v6760_v35 = vmin.f32 %v2185_v32, 6.0 }
 0x1d1   : > { %v6764_v39 = vmin.f32 %v2186_v60, 6.0  ;;  %v2058_v16 = vpop.f32.mrb[20].mxu0 }
 0x1d2   : > { %v5014_v47 = vadd.f32 %v2058_v16, %v6349_v23  ;;  %v2060_v62 = vpop.f32.mrb[21].mxu0  ;;  %v2303_v38 = vpack.c.bf16 %v6760_v35, %v6766_v46 }
 0x1d3   : > { %v2304_v49 = vpack.c.bf16 %v6764_v39, %v6762_v27  ;;  %v5015_v9 = vadd.f32 %v2060_v62, %v6349_v23  ;;  %v2062_v15 = vpop.f32.mrb[22].mxu0 }
 0x1d4   : > { %v5016_v28 = vadd.f32 %v2062_v15, %v6363_v1  ;;  %v2064_v18 = vpop.f32.mrb[23].mxu0  ;;  %v2187_v63 = vmax.f32 %v5014_v47, 0.0 }
 0x1d5   : > { %v2188_v25 = vmax.f32 %v5015_v9, 0.0  ;;  %v5017_v14 = vadd.f32 %v2064_v18, %v6363_v1  ;;  %2463 = vmatprep.subr.bf16.mxu1 %v2304_v49 }
 0x1d6   : > { %v2189_v43 = vmax.f32 %v5016_v28, 0.0  ;;  %2464 = vmatpush1.bf16.msra.mxu1 %v2303_v38  ;;  %v6782_v19 = vmin.f32 %v2187_v63, 6.0 }
 0x1d7   : > { %v2190_v54 = vmax.f32 %v5017_v14, 0.0  ;;  %v6778_v12 = vmin.f32 %v2188_v25, 6.0 }
 0x1d8   : > { %v6776_v33 = vmin.f32 %v2189_v43, 6.0 }
 0x1d9   : > { %v6780_v23 = vmin.f32 %v2190_v54, 6.0  ;;  %v2068_v8 = vpop.f32.mrb[24].mxu0 }
 0x1da   : > { %v5018_v4 = vadd.f32 %v2068_v8, %v6365_v24  ;;  %v2070_v61 = vpop.f32.mrb[25].mxu0  ;;  %v2305_v16 = vpack.c.bf16 %v6776_v33, %v6782_v19 }
 0x1db   : > { %v2306_v1 = vpack.c.bf16 %v6780_v23, %v6778_v12  ;;  %v5019_v32 = vadd.f32 %v2070_v61, %v6365_v24  ;;  %v2072_v60 = vpop.f32.mrb[26].mxu0 }
 0x1dc   : > { %v5020_v47 = vadd.f32 %v2072_v60, %v6368_v51  ;;  %v2074_v62 = vpop.f32.mrb[27].mxu0  ;;  %v2191_v15 = vmax.f32 %v5018_v4, 0.0 }
 0x1dd   : > { %v2192_v49 = vmax.f32 %v5019_v32, 0.0  ;;  %v5021_v9 = vadd.f32 %v2074_v62, %v6368_v51  ;;  %2465 = vmatprep.subr.bf16.mxu1 %v2306_v1 }
 0x1de   : > { %v2193_v38 = vmax.f32 %v5020_v47, 0.0  ;;  %2466 = vmatpush1.bf16.msra.mxu1 %v2305_v16  ;;  %v6798_v63 = vmin.f32 %v2191_v15, 6.0 }
 0x1df   : > { %v2194_v28 = vmax.f32 %v5021_v9, 0.0  ;;  %v6794_v25 = vmin.f32 %v2192_v49, 6.0 }
 0x1e0   : > { %v6792_v18 = vmin.f32 %v2193_v38, 6.0 }
 0x1e1   : > { %v6796_v24 = vmin.f32 %v2194_v28, 6.0  ;;  %v2078_v14 = vpop.f32.mrb[28].mxu0 }
 0x1e2   : > { %v5022_v43 = vadd.f32 %v2078_v14, %v6370_v10  ;;  %v2080_v54 = vpop.f32.mrb[29].mxu0  ;;  %v2307_v61 = vpack.c.bf16 %v6792_v18, %v6798_v63 }
 0x1e3   : > { %v2308_v51 = vpack.c.bf16 %v6796_v24, %v6794_v25  ;;  %v5023_v8 = vadd.f32 %v2080_v54, %v6370_v10  ;;  %v2082_v4 = vpop.f32.mrb[30].mxu0 }
 0x1e4   : > { %v5024_v1 = vadd.f32 %v2082_v4, %v6381_v29  ;;  %v2084_v32 = vpop.f32.mrb[31].mxu0  ;;  %v2195_v47 = vmax.f32 %v5022_v43, 0.0 }
 0x1e5   : > { %v2196_v60 = vmax.f32 %v5023_v8, 0.0  ;;  %v5025_v16 = vadd.f32 %v2084_v32, %v6381_v29  ;;  %2467 = vmatprep.subr.bf16.mxu1 %v2308_v51 }
 0x1e6   : > { %v2197_v62 = vmax.f32 %v5024_v1, 0.0  ;;  %2468 = vmatpush1.bf16.msra.mxu1 %v2307_v61  ;;  %v6814_v28 = vmin.f32 %v2195_v47, 6.0 }
 0x1e7   : > { %v2198_v49 = vmax.f32 %v5025_v16, 0.0  ;;  %v6810_v15 = vmin.f32 %v2196_v60, 6.0  ;;  %v5246_v60 = vld [vmem:[%s7794_s4] sm:$0xff]  }
 0x1e8   : > { %v6808_v9 = vmin.f32 %v2197_v62, 6.0 }
 0x1e9   : > { %v6812_v10 = vmin.f32 %v2198_v49, 6.0  ;;  %v2088_v38 = vpop.f32.mrb[32].mxu0 }
 0x1ea   : > { %v5026_v14 = vadd.f32 %v2088_v38, %v6383_v34  ;;  %v2090_v54 = vpop.f32.mrb[33].mxu0  ;;  %v2309_v8 = vpack.c.bf16 %v6808_v9, %v6814_v28 }
 0x1eb   : > { %v2310_v29 = vpack.c.bf16 %v6812_v10, %v6810_v15  ;;  %v5027_v43 = vadd.f32 %v2090_v54, %v6383_v34  ;;  %v2092_v51 = vpop.f32.mrb[34].mxu0 }
 0x1ec   : > { %v5028_v4 = vadd.f32 %v2092_v51, %v6394_v7  ;;  %v2094_v61 = vpop.f32.mrb[35].mxu0  ;;  %v2199_v16 = vmax.f32 %v5026_v14, 0.0  ;;  %v7905_v51 = vmov 0  }
 0x1ed   : > { %v2200_v1 = vmax.f32 %v5027_v43, 0.0  ;;  %v5029_v32 = vadd.f32 %v2094_v61, %v6394_v7  ;;  %2469 = vmatprep.subr.bf16.mxu1 %v2310_v29 }
 0x1ee   : > { %v2201_v47 = vmax.f32 %v5028_v4, 0.0  ;;  %2470 = vmatpush1.bf16.msra.mxu1 %v2309_v8  ;;  %v6833_v43 = vmin.f32 %v2199_v16, 6.0 }
 0x1ef   : > { %v2202_v62 = vmax.f32 %v5029_v32, 0.0  ;;  %v6829_v49 = vmin.f32 %v2200_v1, 6.0 }
 0x1f0   : > { %v6827_v34 = vmin.f32 %v2201_v47, 6.0  ;;  %v5247_v47 = vld [vmem:[%s7794_s4 + $0x8] sm:$0xff]  }
 0x1f1   : > { %v6831_v38 = vmin.f32 %v2202_v62, 6.0  ;;  %v2098_v54 = vpop.f32.mrb[36].mxu0  ;;  %2488 = vmatmul.mubr.bf16.vlgmr.msra.gmra.mrb[0].mxu1 %v5246_v60 }
 0x1f2   : > { %7903 = vst [vmem:[#allocation4_spill] sm:$0xff] %v6827_v34  ;;  %v5030_v7 = vadd.f32 %v2098_v54, %v6396_v37  ;;  %v2100_v29 = vpop.f32.mrb[37].mxu0  ;;  %2497 = vmatprep.mubr.bf16.mxu1 %v7905_v51  ;;  %v2311_v61 = vpack.c.bf16 %v6827_v34, %v6833_v43 }
 0x1f3   : > { %7904 = vst [vmem:[#allocation5_spill] sm:$0xff] %v6831_v38  ;;  %v2312_v14 = vpack.c.bf16 %v6831_v38, %v6829_v49  ;;  %v5031_v8 = vadd.f32 %v2100_v29, %v6396_v37  ;;  %v2102_v4 = vpop.f32.mrb[38].mxu0 }
 0x1f4   : > { %v5032_v1 = vadd.f32 %v2102_v4, %v6407_v50  ;;  %v2104_v32 = vpop.f32.mrb[39].mxu0  ;;  %v2203_v62 = vmax.f32 %v5030_v7, 0.0 }
 0x1f5   : > { %v2204_v60 = vmax.f32 %v5031_v8, 0.0  ;;  %v5033_v16 = vadd.f32 %v2104_v32, %v6407_v50  ;;  %2760 = vmatprep.subr.bf16.mxu1 %v2312_v14 }
 0x1f6   : > { %v2205_v54 = vmax.f32 %v5032_v1, 0.0  ;;  %2761 = vmatpush1.bf16.msra.mxu1 %v2311_v61  ;;  %v6853_v8 = vmin.f32 %v2203_v62, 6.0  ;;  %v5248_v62 = vld [vmem:[%s7794_s4 + $0x10] sm:$0xff]  }
 0x1f7   : > { %v2206_v38 = vmax.f32 %v5033_v16, 0.0  ;;  %v6849_v29 = vmin.f32 %v2204_v60, 6.0 }
 0x1f8   : > { %v6847_v37 = vmin.f32 %v2205_v54, 6.0  ;;  %7909 = vst [vmem:[#allocation9_spill] sm:$0xff] %v6853_v8 }
 0x1f9   : > { %7907 = vst [vmem:[#allocation7_spill] sm:$0xff] %v6849_v29  ;;  %v6851_v34 = vmin.f32 %v2206_v38, 6.0  ;;  %v2108_v4 = vpop.f32.mrb[40].mxu0  ;;  %2498 = vmatmul.mubr.bf16.gmra.mrb[4].mxu1 %v5247_v47 }
 0x1fa   : > { %7906 = vst [vmem:[#allocation6_spill] sm:$0xff] %v6847_v37  ;;  %v5034_v50 = vadd.f32 %v2108_v4, %v6409_v52  ;;  %v2110_v14 = vpop.f32.mrb[41].mxu0  ;;  %2507 = vmatprep.mubr.bf16.mxu1 %v7905_v51  ;;  %v2313_v32 = vpack.c.bf16 %v6847_v37, %v6853_v8 }
 0x1fb   : > { %7908 = vst [vmem:[#allocation8_spill] sm:$0xff] %v6851_v34  ;;  %v2314_v7 = vpack.c.bf16 %v6851_v34, %v6849_v29  ;;  %v5035_v61 = vadd.f32 %v2110_v14, %v6409_v52  ;;  %v2112_v1 = vpop.f32.mrb[42].mxu0  ;;  %v3338_v29 = vld [vmem:[%s7121_s26 + $0x70] sm:$0xff] }
 0x1fc   : > { %v5036_v38 = vadd.f32 %v2112_v1, %v6414_v41  ;;  %v2114_v60 = vpop.f32.mrb[43].mxu0  ;;  %v2207_v54 = vmax.f32 %v5034_v50, 0.0 }
 0x1fd   : > { %v2208_v16 = vmax.f32 %v5035_v61, 0.0  ;;  %v5037_v47 = vadd.f32 %v2114_v60, %v6414_v41  ;;  %2762 = vmatprep.subr.bf16.mxu1 %v2314_v7 }
 0x1fe   : > { %v2209_v4 = vmax.f32 %v5036_v38, 0.0  ;;  %2763 = vmatpush1.bf16.msra.mxu1 %v2313_v32  ;;  %v6873_v61 = vmin.f32 %v2207_v54, 6.0  ;;  %v5249_v54 = vld [vmem:[%s7794_s4 + $0x18] sm:$0xff]  }
 0x1ff   : > { %v2210_v34 = vmax.f32 %v5037_v47, 0.0  ;;  %v6869_v14 = vmin.f32 %v2208_v16, 6.0 }
 0x200   : > { %v6867_v52 = vmin.f32 %v2209_v4, 6.0  ;;  %7913 = vst [vmem:[#allocation13_spill] sm:$0xff] %v6873_v61 }
 0x201   : > { %7911 = vst [vmem:[#allocation11_spill] sm:$0xff] %v6869_v14  ;;  %v6871_v37 = vmin.f32 %v2210_v34, 6.0  ;;  %v2118_v1 = vpop.f32.mrb[44].mxu0  ;;  %2508 = vmatmul.mubr.bf16.gmra.mrb[8].mxu1 %v5248_v62 }
 0x202   : > { %7910 = vst [vmem:[#allocation10_spill] sm:$0xff] %v6867_v52  ;;  %v5038_v41 = vadd.f32 %v2118_v1, %v6416_v22  ;;  %v2120_v7 = vpop.f32.mrb[45].mxu0  ;;  %2517 = vmatprep.mubr.bf16.mxu1 %v7905_v51  ;;  %v2315_v60 = vpack.c.bf16 %v6867_v52, %v6873_v61 }
 0x203   : > { %7912 = vst [vmem:[#allocation12_spill] sm:$0xff] %v6871_v37  ;;  %v2316_v50 = vpack.c.bf16 %v6871_v37, %v6869_v14  ;;  %v5039_v32 = vadd.f32 %v2120_v7, %v6416_v22  ;;  %v2122_v38 = vpop.f32.mrb[46].mxu0 }
 0x204   : > { %v5040_v34 = vadd.f32 %v2122_v38, %v6427_v26  ;;  %v2124_v16 = vpop.f32.mrb[47].mxu0  ;;  %v2211_v4 = vmax.f32 %v5038_v41, 0.0 }
 0x205   : > { %v2212_v47 = vmax.f32 %v5039_v32, 0.0  ;;  %v5041_v62 = vadd.f32 %v2124_v16, %v6427_v26  ;;  %2764 = vmatprep.subr.bf16.mxu1 %v2316_v50 }
 0x206   : > { %v2213_v1 = vmax.f32 %v5040_v34, 0.0  ;;  %2765 = vmatpush1.bf16.msra.mxu1 %v2315_v60  ;;  %v6893_v32 = vmin.f32 %v2211_v4, 6.0  ;;  %v5250_v4 = vld [vmem:[%s7794_s4 + $0x20] sm:$0xff]  }
 0x207   : > { %v2214_v37 = vmax.f32 %v5041_v62, 0.0  ;;  %v6889_v7 = vmin.f32 %v2212_v47, 6.0 }
 0x208   : > { %v6887_v22 = vmin.f32 %v2213_v1, 6.0  ;;  %7917 = vst [vmem:[#allocation17_spill] sm:$0xff] %v6893_v32 }
 0x209   : > { %7915 = vst [vmem:[#allocation15_spill] sm:$0xff] %v6889_v7  ;;  %v6891_v52 = vmin.f32 %v2214_v37, 6.0  ;;  %v2128_v38 = vpop.f32.mrb[48].mxu0  ;;  %2518 = vmatmul.mubr.bf16.gmra.mrb[12].mxu1 %v5249_v54 }
 0x20a   : > { %7914 = vst [vmem:[#allocation14_spill] sm:$0xff] %v6887_v22  ;;  %v5042_v26 = vadd.f32 %v2128_v38, %v6429_v59  ;;  %v2130_v50 = vpop.f32.mrb[49].mxu0  ;;  %2527 = vmatprep.mubr.bf16.mxu1 %v7905_v51  ;;  %v2317_v16 = vpack.c.bf16 %v6887_v22, %v6893_v32  ;;  %v3336_v32 = vld [vmem:[%s7121_s26 + $0x60] sm:$0xff] }
 0x20b   : > { %7916 = vst [vmem:[#allocation16_spill] sm:$0xff] %v6891_v52  ;;  %v2318_v41 = vpack.c.bf16 %v6891_v52, %v6889_v7  ;;  %v5043_v60 = vadd.f32 %v2130_v50, %v6429_v59  ;;  %v2132_v34 = vpop.f32.mrb[50].mxu0  ;;  %v3219_v7 = vld [vmem:[#allocation2 + $0xb8] sm:$0xff] }
 0x20c   : > { %v5044_v37 = vadd.f32 %v2132_v34, %v6439_v11  ;;  %v2134_v47 = vpop.f32.mrb[51].mxu0  ;;  %v2215_v1 = vmax.f32 %v5042_v26, 0.0 }
 0x20d   : > { %v2216_v62 = vmax.f32 %v5043_v60, 0.0  ;;  %v5045_v54 = vadd.f32 %v2134_v47, %v6439_v11  ;;  %2766 = vmatprep.subr.bf16.mxu1 %v2318_v41 }
 0x20e   : > { %v2217_v38 = vmax.f32 %v5044_v37, 0.0  ;;  %2767 = vmatpush1.bf16.msra.mxu1 %v2317_v16  ;;  %v6913_v60 = vmin.f32 %v2215_v1, 6.0  ;;  %v5251_v1 = vld [vmem:[%s7794_s4 + $0x28] sm:$0xff]  }
 0x20f   : > { %v2218_v52 = vmax.f32 %v5045_v54, 0.0  ;;  %v6909_v50 = vmin.f32 %v2216_v62, 6.0 }
 0x210   : > { %v6907_v59 = vmin.f32 %v2217_v38, 6.0  ;;  %7921 = vst [vmem:[#allocation21_spill] sm:$0xff] %v6913_v60 }
 0x211   : > { %7919 = vst [vmem:[#allocation19_spill] sm:$0xff] %v6909_v50  ;;  %v6911_v22 = vmin.f32 %v2218_v52, 6.0  ;;  %v2138_v34 = vpop.f32.mrb[52].mxu0  ;;  %2528 = vmatmul.mubr.bf16.gmra.mrb[16].mxu1 %v5250_v4 }
 0x212   : > { %7918 = vst [vmem:[#allocation18_spill] sm:$0xff] %v6907_v59  ;;  %v5046_v11 = vadd.f32 %v2138_v34, %v6441_v57  ;;  %v2140_v41 = vpop.f32.mrb[53].mxu0  ;;  %2537 = vmatprep.mubr.bf16.mxu1 %v7905_v51  ;;  %v2319_v47 = vpack.c.bf16 %v6907_v59, %v6913_v60  ;;  %v3217_v60 = vld [vmem:[#allocation2 + $0xa8] sm:$0xff] }
 0x213   : > { %7920 = vst [vmem:[#allocation20_spill] sm:$0xff] %v6911_v22  ;;  %v2320_v26 = vpack.c.bf16 %v6911_v22, %v6909_v50  ;;  %v5047_v16 = vadd.f32 %v2140_v41, %v6441_v57  ;;  %v2142_v37 = vpop.f32.mrb[54].mxu0  ;;  %v3215_v50 = vld [vmem:[#allocation2 + $0x98] sm:$0xff] }
 0x214   : > { %v5048_v52 = vadd.f32 %v2142_v37, %v6451_v58  ;;  %v2144_v62 = vpop.f32.mrb[55].mxu0  ;;  %v2219_v38 = vmax.f32 %v5046_v11, 0.0 }
 0x215   : > { %v2220_v54 = vmax.f32 %v5047_v16, 0.0  ;;  %v5049_v4 = vadd.f32 %v2144_v62, %v6451_v58  ;;  %2768 = vmatprep.subr.bf16.mxu1 %v2320_v26 }
 0x216   : > { %v2221_v34 = vmax.f32 %v5048_v52, 0.0  ;;  %2769 = vmatpush1.bf16.msra.mxu1 %v2319_v47  ;;  %v6933_v16 = vmin.f32 %v2219_v38, 6.0  ;;  %v5252_v38 = vld [vmem:[%s7794_s4 + $0x30] sm:$0xff]  }
 0x217   : > { %v2222_v22 = vmax.f32 %v5049_v4, 0.0  ;;  %v6929_v41 = vmin.f32 %v2220_v54, 6.0 }
 0x218   : > { %v6927_v57 = vmin.f32 %v2221_v34, 6.0  ;;  %7925 = vst [vmem:[#allocation25_spill] sm:$0xff] %v6933_v16 }
 0x219   : > { %7923 = vst [vmem:[#allocation23_spill] sm:$0xff] %v6929_v41  ;;  %v6931_v59 = vmin.f32 %v2222_v22, 6.0  ;;  %v2148_v37 = vpop.f32.mrb[56].mxu0  ;;  %2538 = vmatmul.mubr.bf16.gmra.mrb[20].mxu1 %v5251_v1 }
 0x21a   : > { %7922 = vst [vmem:[#allocation22_spill] sm:$0xff] %v6927_v57  ;;  %v5050_v58 = vadd.f32 %v2148_v37, %v6453_v2  ;;  %v2150_v26 = vpop.f32.mrb[57].mxu0  ;;  %2547 = vmatprep.mubr.bf16.mxu1 %v7905_v51  ;;  %v2321_v62 = vpack.c.bf16 %v6927_v57, %v6933_v16  ;;  %v3214_v16 = vld [vmem:[#allocation2 + $0x90] sm:$0xff] }
 0x21b   : > { %7924 = vst [vmem:[#allocation24_spill] sm:$0xff] %v6931_v59  ;;  %v2322_v11 = vpack.c.bf16 %v6931_v59, %v6929_v41  ;;  %v5051_v47 = vadd.f32 %v2150_v26, %v6453_v2  ;;  %v2152_v52 = vpop.f32.mrb[58].mxu0 }
 0x21c   : > { %v5052_v22 = vadd.f32 %v2152_v52, %v6459_v42  ;;  %v2154_v54 = vpop.f32.mrb[59].mxu0  ;;  %v2223_v34 = vmax.f32 %v5050_v58, 0.0 }
 0x21d   : > { %v2224_v4 = vmax.f32 %v5051_v47, 0.0  ;;  %v5053_v1 = vadd.f32 %v2154_v54, %v6459_v42  ;;  %2770 = vmatprep.subr.bf16.mxu1 %v2322_v11 }
 0x21e   : > { %v2225_v37 = vmax.f32 %v5052_v22, 0.0  ;;  %2771 = vmatpush1.bf16.msra.mxu1 %v2321_v62  ;;  %v6953_v47 = vmin.f32 %v2223_v34, 6.0 }
 0x21f   : > { %v2226_v59 = vmax.f32 %v5053_v1, 0.0  ;;  %v6949_v26 = vmin.f32 %v2224_v4, 6.0  ;;  %v3212_v1 = vld [vmem:[#allocation2 + $0x80] sm:$0xff] }
 0x220   : > { %v6947_v2 = vmin.f32 %v2225_v37, 6.0  ;;  %7929 = vst [vmem:[#allocation29_spill] sm:$0xff] %v6953_v47 }
 0x221   : > { %7927 = vst [vmem:[#allocation27_spill] sm:$0xff] %v6949_v26  ;;  %v6951_v57 = vmin.f32 %v2226_v59, 6.0  ;;  %v2158_v52 = vpop.f32.mrb[60].mxu0  ;;  %2548 = vmatmul.mubr.bf16.gmra.mrb[24].mxu1 %v5252_v38  ;;  %v3213_v38 = vld [vmem:[#allocation2 + $0x88] sm:$0xff] }
 0x222   : > { %7926 = vst [vmem:[#allocation26_spill] sm:$0xff] %v6947_v2  ;;  %v5054_v42 = vadd.f32 %v2158_v52, %v6461_v48  ;;  %v2160_v11 = vpop.f32.mrb[61].mxu0  ;;  %2557 = vmatprep.mubr.bf16.mxu1 %v7905_v51  ;;  %v2323_v54 = vpack.c.bf16 %v6947_v2, %v6953_v47  ;;  %v5253_v52 = vld [vmem:[%s7794_s4 + $0x38] sm:$0xff]   ;;  %v3277_v41 = vmul.f32 0.00390625, %v3213_v38  ;;  %v3196_v2 = vld [vmem:[#allocation2] sm:$0xff]  ;;  %v3197_v47 = vld [vmem:[#allocation2 + $0x8] sm:$0xff] }
 0x223   : > { %7928 = vst [vmem:[#allocation28_spill] sm:$0xff] %v6951_v57  ;;  %v2324_v58 = vpack.c.bf16 %v6951_v57, %v6949_v26  ;;  %v5055_v62 = vadd.f32 %v2160_v11, %v6461_v48  ;;  %v2162_v22 = vpop.f32.mrb[62].mxu0  ;;  %v3276_v11 = vmul.f32 0.00390625, %v3212_v1  ;;  %v3278_v1 = vmul.f32 0.00390625, %v3214_v16  ;;  %v3198_v38 = vld [vmem:[#allocation2 + $0x10] sm:$0xff] }
 0x224   : > { %v5056_v59 = vadd.f32 %v2162_v22, %v6476_v6  ;;  %v2164_v4 = vpop.f32.mrb[63].mxu0  ;;  %v2227_v57 = vmax.f32 %v5054_v42, 0.0  ;;  %v3260_v42 = vmul.f32 0.00390625, %v3196_v2 }
 0x225   : > { %v2228_v34 = vmax.f32 %v5055_v62, 0.0  ;;  %v5057_v37 = vadd.f32 %v2164_v4, %v6476_v6  ;;  %2772 = vmatprep.subr.bf16.mxu1 %v2324_v58  ;;  %v4850_v4 = vpack.c.bf16 %v3277_v41, %v3276_v11  ;;  %v3200_v11 = vld [vmem:[#allocation2 + $0x20] sm:$0xff] }
 0x226   : > { %v2229_v26 = vmax.f32 %v5056_v59, 0.0  ;;  %2773 = vmatpush1.bf16.msra.mxu1 %v2323_v54  ;;  %v6973_v58 = vmin.f32 %v2227_v57, 6.0  ;;  %v3261_v54 = vmul.f32 0.00390625, %v3197_v47  ;;  %v5254_v57 = vld [vmem:[%s7795_s5] sm:$0xff]   ;;  %v3262_v47 = vmul.f32 0.00390625, %v3198_v38  ;;  %v3202_v38 = vld [vmem:[#allocation2 + $0x30] sm:$0xff] }
 0x227   : > { %v2230_v48 = vmax.f32 %v5057_v37, 0.0  ;;  %v6969_v62 = vmin.f32 %v2228_v34, 6.0  ;;  %v3199_v37 = vld [vmem:[#allocation2 + $0x18] sm:$0xff] }
 0x228   : > { %v6967_v22 = vmin.f32 %v2229_v26, 6.0  ;;  %7933 = vst [vmem:[#allocation33_spill] sm:$0xff] %v6973_v58  ;;  %v3279_v26 = vmul.f32 0.00390625, %v3215_v50  ;;  %v4852_v2 = vpack.c.bf16 %v3261_v54, %v3260_v42  ;;  %v3281_v50 = vmul.f32 0.00390625, %v3217_v60  ;;  %v5255_v60 = vld [vmem:[%s7795_s5 + $0x8] sm:$0xff]  }
 0x229   : > { %7931 = vst [vmem:[#allocation31_spill] sm:$0xff] %v6969_v62  ;;  %v6971_v6 = vmin.f32 %v2230_v48, 6.0  ;;  %2558 = vmatmul.mubr.bf16.gmra.mrb[28].mxu1 %v5253_v52  ;;  %v3216_v48 = vld [vmem:[#allocation2 + $0xa0] sm:$0xff]  ;;  %v3263_v52 = vmul.f32 0.00390625, %v3199_v37  ;;  %v3283_v54 = vmul.f32 0.00390625, %v3219_v7  ;;  %v3223_v7 = vld [vmem:[#allocation2 + $0xd8] sm:$0xff] }
 0x22a   : > { %7930 = vst [vmem:[#allocation30_spill] sm:$0xff] %v6967_v22  ;;  %2792 = vmatprep.mubr.bf16.mxu1 %v7905_v51  ;;  %v2325_v34 = vpack.c.bf16 %v6967_v22, %v6973_v58  ;;  %v4854_v41 = vpack.c.bf16 %v3279_v26, %v3278_v1  ;;  %v3280_v16 = vmul.f32 0.00390625, %v3216_v48  ;;  %v3264_v22 = vmul.f32 0.00390625, %v3200_v11  ;;  %v3220_v1 = vld [vmem:[#allocation2 + $0xc0] sm:$0xff]  ;;  %v3221_v26 = vld [vmem:[#allocation2 + $0xc8] sm:$0xff] }
 0x22b   : > { %7932 = vst [vmem:[#allocation32_spill] sm:$0xff] %v6971_v6  ;;  %v2326_v59 = vpack.c.bf16 %v6971_v6, %v6969_v62  ;;  %v3201_v6 = vld [vmem:[#allocation2 + $0x28] sm:$0xff]  ;;  %v3218_v62 = vld [vmem:[#allocation2 + $0xb0] sm:$0xff]  ;;  %v3266_v48 = vmul.f32 0.00390625, %v3202_v38 }
 0x22c   : > { %v3265_v58 = vmul.f32 0.00390625, %v3201_v6  ;;  %v3282_v42 = vmul.f32 0.00390625, %v3218_v62  ;;  %v3285_v6 = vmul.f32 0.00390625, %v3221_v26  ;;  %v3222_v62 = vld [vmem:[#allocation2 + $0xd0] sm:$0xff] }
 0x22d   : > { %2774 = vmatprep.subr.bf16.mxu1 %v2326_v59  ;;  %v4856_v59 = vpack.c.bf16 %v3263_v52, %v3262_v47  ;;  %v3284_v47 = vmul.f32 0.00390625, %v3220_v1  ;;  %v3204_v52 = vld [vmem:[#allocation2 + $0x40] sm:$0xff]  ;;  %v3206_v38 = vld [vmem:[#allocation2 + $0x50] sm:$0xff] }
 0x22e   : > { %2775 = vmatpush1.bf16.msra.mxu1 %v2325_v34  ;;  %v4858_v34 = vpack.c.bf16 %v3281_v50, %v3280_v16  ;;  %v4860_v37 = vpack.c.bf16 %v3265_v58, %v3264_v22  ;;  %v3268_v50 = vmul.f32 0.00390625, %v3204_v52  ;;  %v3286_v22 = vmul.f32 0.00390625, %v3222_v62  ;;  %v3227_v52 = vld [vmem:[#allocation2 + $0xf8] sm:$0xff] }
 0x22f   : > { %4851 = vmatprep.subr.bf16.mxu1 %v4850_v4  ;;  %v3203_v4 = vld [vmem:[#allocation2 + $0x38] sm:$0xff]  ;;  %v3287_v58 = vmul.f32 0.00390625, %v3223_v7  ;;  %v3270_v26 = vmul.f32 0.00390625, %v3206_v38  ;;  %v3210_v38 = vld [vmem:[#allocation2 + $0x70] sm:$0xff] }
 0x231   : > { %2793 = vmatmul.mubr.bf16.vlgmr.msra.gmra.mrb[32].mxu1 %v5254_v57  ;;  %v3267_v57 = vmul.f32 0.00390625, %v3203_v4  ;;  %v5256_v4 = vld [vmem:[%s7795_s5 + $0x10] sm:$0xff]  }
 0x232   : > { %2802 = vmatprep.mubr.bf16.mxu1 %v7905_v51  ;;  %4853 = vmatpush3.bf16.msra.mxu1 %v4852_v2  ;;  %v4862_v2 = vpack.c.bf16 %v3283_v54, %v3282_v42  ;;  %v3224_v42 = vld [vmem:[#allocation2 + $0xe0] sm:$0xff]  ;;  %v3225_v54 = vld [vmem:[#allocation2 + $0xe8] sm:$0xff] }
 0x233   : > { %4855 = vmatprep.subr.bf16.mxu1 %v4854_v41  ;;  %v3205_v41 = vld [vmem:[#allocation2 + $0x48] sm:$0xff]  ;;  %v4864_v16 = vpack.c.bf16 %v3267_v57, %v3266_v48  ;;  %v3288_v48 = vmul.f32 0.00390625, %v3224_v42  ;;  %v3289_v57 = vmul.f32 0.00390625, %v3225_v54  ;;  %v3274_v54 = vmul.f32 0.00390625, %v3210_v38 }
 0x234   : > { %v3269_v11 = vmul.f32 0.00390625, %v3205_v41 }
 0x236   : > { %4857 = vmatpush3.bf16.msra.mxu1 %v4856_v59  ;;  %v4866_v59 = vpack.c.bf16 %v3285_v6, %v3284_v47  ;;  %v4868_v1 = vpack.c.bf16 %v3269_v11, %v3268_v50  ;;  %v3209_v47 = vld [vmem:[#allocation2 + $0x68] sm:$0xff]  ;;  %v3226_v6 = vld [vmem:[#allocation2 + $0xf0] sm:$0xff]  ;;  %v3291_v11 = vmul.f32 0.00390625, %v3227_v52 }
 0x237   : > { %4859 = vmatprep.subr.bf16.mxu1 %v4858_v34  ;;  %v3207_v34 = vld [vmem:[#allocation2 + $0x58] sm:$0xff]  ;;  %v3273_v7 = vmul.f32 0.00390625, %v3209_v47  ;;  %v3290_v50 = vmul.f32 0.00390625, %v3226_v6  ;;  %v5260_v47 = vld [vmem:[%s7795_s5 + $0x30] sm:$0xff]   ;;  %v3389_v52 = vld [vmem:[%s7800_s10 + $0x8] sm:$0xff] }
 0x238   : > { %v5261_v6 = vld [vmem:[%s7795_s5 + $0x38] sm:$0xff]  }
 0x239   : > { %2803 = vmatmul.mubr.bf16.gmra.mrb[36].mxu1 %v5255_v60  ;;  %v3271_v60 = vmul.f32 0.00390625, %v3207_v34  ;;  %v5257_v34 = vld [vmem:[%s7795_s5 + $0x18] sm:$0xff]  }
 0x23a   : > { %2812 = vmatprep.mubr.bf16.mxu1 %v7905_v51  ;;  %4861 = vmatpush3.bf16.msra.mxu1 %v4860_v37  ;;  %v4870_v37 = vpack.c.bf16 %v3287_v58, %v3286_v22  ;;  %v3244_v22 = vld [vmem:[#allocation2 + $0x180] sm:$0xff]  ;;  %v3245_v58 = vld [vmem:[#allocation2 + $0x188] sm:$0xff] }
 0x23b   : > { %4863 = vmatprep.subr.bf16.mxu1 %v4862_v2  ;;  %v3208_v2 = vld [vmem:[#allocation2 + $0x60] sm:$0xff]  ;;  %v4872_v41 = vpack.c.bf16 %v3271_v60, %v3270_v26  ;;  %v3308_v26 = vmul.f32 0.00390625, %v3244_v22  ;;  %v3309_v60 = vmul.f32 0.00390625, %v3245_v58  ;;  %v3230_v22 = vld [vmem:[#allocation2 + $0x110] sm:$0xff] }
 0x23c   : > { %v3272_v62 = vmul.f32 0.00390625, %v3208_v2  ;;  %v5259_v2 = vld [vmem:[%s7795_s5 + $0x28] sm:$0xff]   ;;  %v3248_v58 = vld [vmem:[#allocation2 + $0x1a0] sm:$0xff] }
 0x23e   : > { %4865 = vmatpush3.bf16.msra.mxu1 %v4864_v16  ;;  %v4874_v16 = vpack.c.bf16 %v3289_v57, %v3288_v48  ;;  %v4876_v42 = vpack.c.bf16 %v3273_v7, %v3272_v62  ;;  %v4882_v48 = vpack.c.bf16 %v3309_v60, %v3308_v26  ;;  %v5258_v57 = vld [vmem:[%s7795_s5 + $0x20] sm:$0xff]   ;;  %v3229_v62 = vld [vmem:[#allocation2 + $0x108] sm:$0xff]  ;;  %v3246_v7 = vld [vmem:[#allocation2 + $0x190] sm:$0xff]  ;;  %v3312_v60 = vmul.f32 0.00390625, %v3248_v58 }
 0x23f   : > { %4867 = vmatprep.subr.bf16.mxu1 %v4866_v59  ;;  %v3211_v59 = vld [vmem:[#allocation2 + $0x78] sm:$0xff]  ;;  %v3310_v38 = vmul.f32 0.00390625, %v3246_v7  ;;  %v3392_v7 = vld [vmem:[%s7800_s10 + $0x20] sm:$0xff]  ;;  %v3253_v58 = vld [vmem:[#allocation2 + $0x1c8] sm:$0xff] }
 0x241   : > { %2813 = vmatmul.mubr.bf16.gmra.mrb[40].mxu1 %v5256_v4  ;;  %v3275_v4 = vmul.f32 0.00390625, %v3211_v59 }
 0x242   : > { %2822 = vmatprep.mubr.bf16.mxu1 %v7905_v51  ;;  %4869 = vmatpush3.bf16.msra.mxu1 %v4868_v1  ;;  %v4878_v1 = vpack.c.bf16 %v3291_v11, %v3290_v50  ;;  %v3293_v11 = vmul.f32 0.00390625, %v3229_v62 }
 0x243   : > { %4871 = vmatprep.subr.bf16.mxu1 %v4870_v37  ;;  %v4880_v37 = vpack.c.bf16 %v3275_v4, %v3274_v54  ;;  %v3294_v4 = vmul.f32 0.00390625, %v3230_v22  ;;  %v3397_v22 = vld [vmem:[%s7800_s10 + $0x48] sm:$0xff] }
 0x246   : > { %4873 = vmatpush3.bf16.msra.mxu1 %v4872_v41  ;;  %v3228_v41 = vld [vmem:[#allocation2 + $0x100] sm:$0xff] }
 0x247   : > { %4875 = vmatprep.subr.bf16.mxu1 %v4874_v16  ;;  %v3247_v16 = vld [vmem:[#allocation2 + $0x198] sm:$0xff]  ;;  %v3292_v50 = vmul.f32 0.00390625, %v3228_v41 }
 0x248   : > { %v3311_v59 = vmul.f32 0.00390625, %v3247_v16 }
 0x249   : > { %2823 = vmatmul.mubr.bf16.gmra.mrb[44].mxu1 %v5257_v34  ;;  %v3249_v34 = vld [vmem:[#allocation2 + $0x1a8] sm:$0xff]  ;;  %v4884_v54 = vpack.c.bf16 %v3293_v11, %v3292_v50 }
 0x24a   : > { %2832 = vmatprep.mubr.bf16.mxu1 %v7905_v51  ;;  %4877 = vmatpush3.bf16.msra.mxu1 %v4876_v42  ;;  %v3388_v42 = vld [vmem:[%s7800_s10] sm:$0xff]  ;;  %v4886_v26 = vpack.c.bf16 %v3311_v59, %v3310_v38  ;;  %v3234_v38 = vld [vmem:[#allocation2 + $0x130] sm:$0xff]  ;;  %v3235_v59 = vld [vmem:[#allocation2 + $0x138] sm:$0xff] }
 0x24b   : > { %4879 = vmatprep.subr.bf16.mxu1 %v4878_v1 }
 0x24e   : > { %4881 = vmatpush3.bf16.msra.mxu1 %v4880_v37  ;;  %v3313_v37 = vmul.f32 0.00390625, %v3249_v34 }
 0x24f   : > { %4883 = vmatprep.subr.bf16.mxu1 %v4882_v48  ;;  %v3232_v48 = vld [vmem:[#allocation2 + $0x120] sm:$0xff] }
 0x250   : > { %v3296_v41 = vmul.f32 0.00390625, %v3232_v48  ;;  %v4890_v16 = vpack.c.bf16 %v3313_v37, %v3312_v60  ;;  %v3317_v60 = vmul.f32 0.00390625, %v3253_v58  ;;  %v3236_v37 = vld [vmem:[#allocation2 + $0x140] sm:$0xff]  ;;  %v3237_v48 = vld [vmem:[#allocation2 + $0x148] sm:$0xff] }
 0x251   : > { %2833 = vmatmul.mubr.bf16.gmra.mrb[48].mxu1 %v5258_v57  ;;  %v3233_v57 = vld [vmem:[#allocation2 + $0x128] sm:$0xff] }
 0x252   : > { %2842 = vmatprep.mubr.bf16.mxu1 %v7905_v51  ;;  %v3297_v62 = vmul.f32 0.00390625, %v3233_v57  ;;  %v3401_v57 = vld [vmem:[%s7800_s10 + $0x68] sm:$0xff] }
 0x254   : > { %v4892_v34 = vpack.c.bf16 %v3297_v62, %v3296_v41  ;;  %v3301_v41 = vmul.f32 0.00390625, %v3237_v48  ;;  %v3400_v62 = vld [vmem:[%s7800_s10 + $0x60] sm:$0xff]  ;;  %v3409_v48 = vld [vmem:[%s7800_s10 + $0xa8] sm:$0xff] }
 0x259   : > { %2843 = vmatmul.mubr.bf16.gmra.mrb[52].mxu1 %v5259_v2  ;;  %v3393_v2 = vld [vmem:[%s7800_s10 + $0x28] sm:$0xff] }
 0x25a   : > { %2852 = vmatprep.mubr.bf16.mxu1 %v7905_v51 }
 0x261   : > { %2853 = vmatmul.mubr.bf16.gmra.mrb[56].mxu1 %v5260_v47  ;;  %v3250_v47 = vld [vmem:[#allocation2 + $0x1b0] sm:$0xff] }
 0x262   : > { %2862 = vmatprep.mubr.bf16.mxu1 %v7905_v51  ;;  %v3231_v51 = vld [vmem:[#allocation2 + $0x118] sm:$0xff]  ;;  %v3314_v50 = vmul.f32 0.00390625, %v3250_v47 }
 0x263   : > { %v3295_v1 = vmul.f32 0.00390625, %v3231_v51  ;;  %v3252_v51 = vld [vmem:[#allocation2 + $0x1c0] sm:$0xff]  ;;  %v3255_v47 = vld [vmem:[#allocation2 + $0x1d8] sm:$0xff] }
 0x269   : > { %2863 = vmatmul.mubr.bf16.gmra.mrb[60].mxu1 %v5261_v6  ;;  %v3251_v6 = vld [vmem:[#allocation2 + $0x1b8] sm:$0xff] }
 0x26a   : > { %3516 = vmatprep.mubr.f32.mxu1 %v3389_v52  ;;  %v4888_v52 = vpack.c.bf16 %v3295_v1, %v3294_v4  ;;  %v3315_v11 = vmul.f32 0.00390625, %v3251_v6  ;;  %v3396_v4 = vld [vmem:[%s7800_s10 + $0x40] sm:$0xff] }
 0x26c   : > { %v4894_v1 = vpack.c.bf16 %v3315_v11, %v3314_v50  ;;  %v3319_v50 = vmul.f32 0.00390625, %v3255_v47  ;;  %v3238_v11 = vld [vmem:[#allocation2 + $0x150] sm:$0xff] }
 0x271   : > { %3517 = vmatmul.mubr.f32.vlgmr.msra.gmra.mrb[64].mxu1 %v3388_v42  ;;  %v3298_v42 = vmul.f32 0.00390625, %v3234_v38  ;;  %v3239_v38 = vld [vmem:[#allocation2 + $0x158] sm:$0xff] }
 0x272   : > { %4885 = vmatpush3.bf16.msra.mxu1 %v4884_v54  ;;  %3521 = vmatprep.mubr.f32.mxu1 %v3393_v2  ;;  %v3299_v54 = vmul.f32 0.00390625, %v3235_v59  ;;  %v3254_v2 = vld [vmem:[#allocation2 + $0x1d0] sm:$0xff]  ;;  %v3405_v59 = vld [vmem:[%s7800_s10 + $0x88] sm:$0xff] }
 0x273   : > { %4887 = vmatprep.subr.bf16.mxu1 %v4886_v26  ;;  %v3316_v26 = vmul.f32 0.00390625, %v3252_v51  ;;  %v3257_v51 = vld [vmem:[#allocation2 + $0x1e8] sm:$0xff] }
 0x274   : > { %v4896_v6 = vpack.c.bf16 %v3299_v54, %v3298_v42  ;;  %v3303_v42 = vmul.f32 0.00390625, %v3239_v38  ;;  %v3404_v54 = vld [vmem:[%s7800_s10 + $0x80] sm:$0xff]  ;;  %v3413_v38 = vld [vmem:[%s7800_s10 + $0xc8] sm:$0xff] }
 0x275   : > { %3522 = vmatmul.mubr.f32.gmra.mrb[66].mxu1 %v3392_v7  ;;  %v4898_v7 = vpack.c.bf16 %v3317_v60, %v3316_v26  ;;  %v3321_v26 = vmul.f32 0.00390625, %v3257_v51  ;;  %v3240_v60 = vld [vmem:[#allocation2 + $0x160] sm:$0xff] }
 0x276   : > { %4889 = vmatpush3.bf16.msra.mxu1 %v4888_v52  ;;  %3526 = vmatprep.mubr.f32.mxu1 %v3397_v22  ;;  %v3300_v52 = vmul.f32 0.00390625, %v3236_v37  ;;  %v3256_v22 = vld [vmem:[#allocation2 + $0x1e0] sm:$0xff]  ;;  %v3241_v37 = vld [vmem:[#allocation2 + $0x168] sm:$0xff] }
 0x277   : > { %4891 = vmatprep.subr.bf16.mxu1 %v4890_v16  ;;  %v3318_v16 = vmul.f32 0.00390625, %v3254_v2  ;;  %v3259_v2 = vld [vmem:[#allocation2 + $0x1f8] sm:$0xff] }
 0x278   : > { %v4900_v58 = vpack.c.bf16 %v3301_v41, %v3300_v52  ;;  %v3305_v52 = vmul.f32 0.00390625, %v3241_v37  ;;  %v3408_v41 = vld [vmem:[%s7800_s10 + $0xa0] sm:$0xff]  ;;  %v7068_v37 = vpop.permute.xlu1 %2634 }
 0x279   : > { %3527 = vmatmul.mubr.f32.gmra.mrb[68].mxu1 %v3396_v4  ;;  %v4902_v4 = vpack.c.bf16 %v3319_v50, %v3318_v16  ;;  %v3323_v16 = vmul.f32 0.00390625, %v3259_v2  ;;  %v3242_v50 = vld [vmem:[#allocation2 + $0x170] sm:$0xff]  ;;  %v3428_v2 = vld [vmem:[%s7800_s10 + $0x140] sm:$0xff] }
 0x27a   : > { %4893 = vmatpush3.bf16.msra.mxu1 %v4892_v34  ;;  %3531 = vmatprep.mubr.f32.mxu1 %v3401_v57  ;;  %v3302_v34 = vmul.f32 0.00390625, %v3238_v11  ;;  %v3258_v57 = vld [vmem:[#allocation2 + $0x1f0] sm:$0xff]  ;;  %v3243_v11 = vld [vmem:[#allocation2 + $0x178] sm:$0xff] }
 0x27b   : > { %4895 = vmatprep.subr.bf16.mxu1 %v4894_v1  ;;  %v3320_v1 = vmul.f32 0.00390625, %v3256_v22  ;;  %v3306_v22 = vmul.f32 0.00390625, %v3242_v50  ;;  %v3307_v51 = vmul.f32 0.00390625, %v3243_v11  ;;  %v3440_v50 = vld [vmem:[%s7800_s10 + $0x1a0] sm:$0xff]  ;;  %v3445_v11 = vld [vmem:[%s7800_s10 + $0x1c8] sm:$0xff] }
 0x27c   : > { %v4904_v47 = vpack.c.bf16 %v3303_v42, %v3302_v34  ;;  %v3417_v42 = vld [vmem:[%s7800_s10 + $0xe8] sm:$0xff] }
 0x27d   : > { %3532 = vmatmul.mubr.f32.gmra.mrb[70].mxu1 %v3400_v62  ;;  %v4906_v62 = vpack.c.bf16 %v3321_v26, %v3320_v1  ;;  %v3421_v1 = vld [vmem:[%s7800_s10 + $0x108] sm:$0xff]  ;;  %v3420_v26 = vld [vmem:[%s7800_s10 + $0x100] sm:$0xff] }
 0x27e   : > { %4897 = vmatpush3.bf16.msra.mxu1 %v4896_v6  ;;  %3536 = vmatprep.mubr.f32.mxu1 %v3405_v59  ;;  %v3304_v6 = vmul.f32 0.00390625, %v3240_v60  ;;  %v3425_v60 = vld [vmem:[%s7800_s10 + $0x128] sm:$0xff] }
 0x27f   : > { %4899 = vmatprep.subr.bf16.mxu1 %v4898_v7  ;;  %v3322_v7 = vmul.f32 0.00390625, %v3258_v57  ;;  %v3429_v57 = vld [vmem:[%s7800_s10 + $0x148] sm:$0xff] }
 0x280   : > { %v4908_v59 = vpack.c.bf16 %v3305_v52, %v3304_v6  ;;  %v7082_v6 = vpop.permute.xlu1 %2329  ;;  %v3432_v52 = vld [vmem:[%s7800_s10 + $0x160] sm:$0xff] }
 0x281   : > { %3537 = vmatmul.mubr.f32.gmra.mrb[72].mxu1 %v3404_v54  ;;  %v4910_v34 = vpack.c.bf16 %v3323_v16, %v3322_v7  ;;  %v4912_v54 = vpack.c.bf16 %v3307_v51, %v3306_v22  ;;  %v3436_v7 = vld [vmem:[%s7800_s10 + $0x180] sm:$0xff]  ;;  %v3441_v16 = vld [vmem:[%s7800_s10 + $0x1a8] sm:$0xff] }
 0x282   : > { %4901 = vmatpush3.bf16.msra.mxu1 %v4900_v58  ;;  %3541 = vmatprep.mubr.f32.mxu1 %v3409_v48  ;;  %v3412_v58 = vld [vmem:[%s7800_s10 + $0xc0] sm:$0xff]  ;;  %v3449_v22 = vld [vmem:[%s7800_s10 + $0x1e8] sm:$0xff] }
 0x283   : > { %4903 = vmatprep.subr.bf16.mxu1 %v4902_v4  ;;  %v3416_v4 = vld [vmem:[%s7800_s10 + $0xe0] sm:$0xff] }
 0x284   : > { %v3424_v48 = vld [vmem:[%s7800_s10 + $0x120] sm:$0xff] }
 0x285   : > { %3542 = vmatmul.mubr.f32.gmra.mrb[74].mxu1 %v3408_v41  ;;  %v3437_v41 = vld [vmem:[%s7800_s10 + $0x188] sm:$0xff] }
 0x286   : > { %4905 = vmatpush3.bf16.msra.mxu1 %v4904_v47  ;;  %3546 = vmatprep.mubr.f32.mxu1 %v3413_v38  ;;  %v3433_v47 = vld [vmem:[%s7800_s10 + $0x168] sm:$0xff] }
 0x287   : > { %4907 = vmatprep.subr.bf16.mxu1 %v4906_v62  ;;  %v7090_v62 = vpop.permute.xlu1 %2334 }
 0x289   : > { %3547 = vmatmul.mubr.f32.gmra.mrb[76].mxu1 %v3412_v58  ;;  %v3448_v58 = vld [vmem:[%s7800_s10 + $0x1e0] sm:$0xff] }
 0x28a   : > { %4909 = vmatpush3.bf16.msra.mxu1 %v4908_v59  ;;  %3551 = vmatprep.mubr.f32.mxu1 %v3417_v42  ;;  %v3444_v59 = vld [vmem:[%s7800_s10 + $0x1c0] sm:$0xff] }
 0x28b   : > { %4911 = vmatprep.subr.bf16.mxu1 %v4910_v34  ;;  %v7104_v38 = vpop.permute.xlu1 %2644  ;;  %v3391_v34 = vld [vmem:[%s7800_s10 + $0x18] sm:$0xff]  ;;  %v3340_v42 = vld [vmem:[%s7121_s26 + $0x80] sm:$0xff] }
 0x28d   : > { %3552 = vmatmul.mubr.f32.gmra.mrb[78].mxu1 %v3416_v4 }
 0x28e   : > { %4913 = vmatpush3.bf16.msra.mxu1 %v4912_v54  ;;  %3556 = vmatprep.mubr.f32.mxu1 %v3421_v1  ;;  %v3341_v54 = vld [vmem:[%s7121_s26 + $0x88] sm:$0xff]  ;;  %v3324_v1 = vld [vmem:[%s7121_s26] sm:$0xff] }
 0x28f   : > { %v7113_v51 = vpop.permute.xlu1 %2339  ;;  %v4914_v4 = vpack.c.bf16 %v3341_v54, %v3340_v42  ;;  %v3328_v54 = vld [vmem:[%s7121_s26 + $0x20] sm:$0xff] }
 0x291   : > { %3557 = vmatmul.mubr.f32.gmra.mrb[80].mxu1 %v3420_v26  ;;  %v3325_v26 = vld [vmem:[%s7121_s26 + $0x8] sm:$0xff]  ;;  %4915 = vmatprep.subr.bf16.mxu1 %v4914_v4 }
 0x292   : > { %3561 = vmatprep.mubr.f32.mxu1 %v3425_v60  ;;  %v3390_v60 = vld [vmem:[%s7800_s10 + $0x10] sm:$0xff]  ;;  %v3329_v4 = vld [vmem:[%s7121_s26 + $0x28] sm:$0xff] }
 0x295   : > { %3562 = vmatmul.mubr.f32.gmra.mrb[82].mxu1 %v3424_v48  ;;  %v4916_v48 = vpack.c.bf16 %v3325_v26, %v3324_v1  ;;  %v3398_v26 = vld [vmem:[%s7800_s10 + $0x50] sm:$0xff] }
 0x296   : > { %3566 = vmatprep.mubr.f32.mxu1 %v3429_v57  ;;  %v3395_v57 = vld [vmem:[%s7800_s10 + $0x38] sm:$0xff] }
 0x299   : > { %3567 = vmatmul.mubr.f32.gmra.mrb[84].mxu1 %v3428_v2  ;;  %v3342_v2 = vld [vmem:[%s7121_s26 + $0x90] sm:$0xff] }
 0x29a   : > { %3571 = vmatprep.mubr.f32.mxu1 %v3433_v47  ;;  %v3343_v47 = vld [vmem:[%s7121_s26 + $0x98] sm:$0xff] }
 0x29d   : > { %3572 = vmatmul.mubr.f32.gmra.mrb[86].mxu1 %v3432_v52  ;;  %v7138_v52 = vpop.permute.xlu1 %2344 }
 0x29e   : > { %3576 = vmatprep.mubr.f32.mxu1 %v3437_v41  ;;  %v4918_v41 = vpack.c.bf16 %v3343_v47, %v3342_v2  ;;  %v3347_v2 = vld [vmem:[%s7121_s26 + $0xb8] sm:$0xff] }
 0x2a1   : > { %3577 = vmatmul.mubr.f32.gmra.mrb[88].mxu1 %v3436_v7  ;;  %v3326_v7 = vld [vmem:[%s7121_s26 + $0x10] sm:$0xff]  ;;  %v7154_v1 = vpop.permute.xlu1 %2654 }
 0x2a2   : > { %3581 = vmatprep.mubr.f32.mxu1 %v3441_v16  ;;  %v3327_v16 = vld [vmem:[%s7121_s26 + $0x18] sm:$0xff]  ;;  %7934 = vst [vmem:[#allocation34_spill] sm:$0xff] %v7154_v1 }
 0x2a5   : > { %3582 = vmatmul.mubr.f32.gmra.mrb[90].mxu1 %v3440_v50  ;;  %v3394_v50 = vld [vmem:[%s7800_s10 + $0x30] sm:$0xff] }
 0x2a6   : > { %3586 = vmatprep.mubr.f32.mxu1 %v3445_v11  ;;  %v4920_v11 = vpack.c.bf16 %v3327_v16, %v3326_v7  ;;  %v3331_v7 = vld [vmem:[%s7121_s26 + $0x38] sm:$0xff] }
 0x2a9   : > { %3587 = vmatmul.mubr.f32.gmra.mrb[92].mxu1 %v3444_v59  ;;  %v3399_v59 = vld [vmem:[%s7800_s10 + $0x58] sm:$0xff] }
 0x2aa   : > { %3591 = vmatprep.mubr.f32.mxu1 %v3449_v22  ;;  %v3344_v22 = vld [vmem:[%s7121_s26 + $0xa0] sm:$0xff] }
 0x2ad   : > { %3592 = vmatmul.mubr.f32.gmra.mrb[94].mxu1 %v3448_v58  ;;  %v3345_v58 = vld [vmem:[%s7121_s26 + $0xa8] sm:$0xff] }
 0x2ae   : > { %3661 = vmatprep.mubr.f32.mxu1 %v3391_v34  ;;  %v7150_v34 = vpop.permute.xlu0 %2639  ;;  %v4922_v42 = vpack.c.bf16 %v3345_v58, %v3344_v22  ;;  %v3348_v22 = vld [vmem:[%s7121_s26 + $0xc0] sm:$0xff]  ;;  %v3349_v58 = vld [vmem:[%s7121_s26 + $0xc8] sm:$0xff] }
 0x2b1   : > { %3662 = vmatmul.mubr.f32.vlgmr.msra.gmra.mrb[96].mxu1 %v3390_v60  ;;  %v4924_v60 = vpack.c.bf16 %v3329_v4, %v3328_v54  ;;  %v4930_v54 = vpack.c.bf16 %v3349_v58, %v3348_v22  ;;  %v3332_v4 = vld [vmem:[%s7121_s26 + $0x40] sm:$0xff] }
 0x2b2   : > { %3666 = vmatprep.mubr.f32.mxu1 %v3395_v57  ;;  %4917 = vmatpush3.bf16.msra.mxu1 %v4916_v48  ;;  %v3403_v48 = vld [vmem:[%s7800_s10 + $0x78] sm:$0xff]  ;;  %v3346_v57 = vld [vmem:[%s7121_s26 + $0xb0] sm:$0xff]  ;;  %v7166_v16 = vpop.permute.xlu0 %2649 }
 0x2b3   : > { %4919 = vmatprep.subr.bf16.mxu1 %v4918_v41  ;;  %v4926_v47 = vpack.c.bf16 %v3347_v2, %v3346_v57  ;;  %v3330_v41 = vld [vmem:[%s7121_s26 + $0x30] sm:$0xff]  ;;  %v3411_v57 = vld [vmem:[%s7800_s10 + $0xb8] sm:$0xff] }
 0x2b4   : > { %v3350_v2 = vld [vmem:[%s7121_s26 + $0xd0] sm:$0xff] }
 0x2b5   : > { %3667 = vmatmul.mubr.f32.gmra.mrb[98].mxu1 %v3394_v50  ;;  %v3402_v50 = vld [vmem:[%s7800_s10 + $0x70] sm:$0xff] }
 0x2b6   : > { %3671 = vmatprep.mubr.f32.mxu1 %v3399_v59  ;;  %4921 = vmatpush3.bf16.msra.mxu1 %v4920_v11  ;;  %v4928_v11 = vpack.c.bf16 %v3331_v7, %v3330_v41  ;;  %v3407_v59 = vld [vmem:[%s7800_s10 + $0x98] sm:$0xff]  ;;  %v7188_v41 = vpop.permute.xlu0 %2659 }
 0x2b7   : > { %4923 = vmatprep.subr.bf16.mxu1 %v4922_v42  ;;  %v7176_v42 = vpop.permute.xlu1 %2349  ;;  %7935 = vst [vmem:[#allocation35_spill] sm:$0xff] %v7188_v41 }
 0x2b9   : > { %3672 = vmatmul.mubr.f32.gmra.mrb[100].mxu1 %v3398_v26  ;;  %v3333_v26 = vld [vmem:[%s7121_s26 + $0x48] sm:$0xff] }
 0x2ba   : > { %3676 = vmatprep.mubr.f32.mxu1 %v3403_v48  ;;  %4925 = vmatpush3.bf16.msra.mxu1 %v4924_v60  ;;  %v3406_v60 = vld [vmem:[%s7800_s10 + $0x90] sm:$0xff]  ;;  %v4932_v48 = vpack.c.bf16 %v3333_v26, %v3332_v4  ;;  %v3352_v4 = vld [vmem:[%s7121_s26 + $0xe0] sm:$0xff]  ;;  %v3353_v26 = vld [vmem:[%s7121_s26 + $0xe8] sm:$0xff]  ;;  %v7205_v61 = vpop.permute.xlu0 %2664 }
 0x2bb   : > { %4927 = vmatprep.subr.bf16.mxu1 %v4926_v47  ;;  %v3351_v47 = vld [vmem:[%s7121_s26 + $0xd8] sm:$0xff]  ;;  %v7192_v22 = vpop.permute.xlu1 %2354  ;;  %7936 = vst [vmem:[#allocation36_spill] sm:$0xff] %v7205_v61 }
 0x2bc   : > { %v4934_v7 = vpack.c.bf16 %v3351_v47, %v3350_v2  ;;  %v4938_v47 = vpack.c.bf16 %v3353_v26, %v3352_v4 }
 0x2bd   : > { %3677 = vmatmul.mubr.f32.gmra.mrb[102].mxu1 %v3402_v50  ;;  %v3334_v50 = vld [vmem:[%s7121_s26 + $0x50] sm:$0xff] }
 0x2be   : > { %3681 = vmatprep.mubr.f32.mxu1 %v3407_v59  ;;  %4929 = vmatpush3.bf16.msra.mxu1 %v4928_v11  ;;  %v3335_v59 = vld [vmem:[%s7121_s26 + $0x58] sm:$0xff]  ;;  %v3410_v11 = vld [vmem:[%s7800_s10 + $0xb0] sm:$0xff] }
 0x2bf   : > { %4931 = vmatprep.subr.bf16.mxu1 %v4930_v54  ;;  %v4936_v58 = vpack.c.bf16 %v3335_v59, %v3334_v50  ;;  %v3415_v54 = vld [vmem:[%s7800_s10 + $0xd8] sm:$0xff]  ;;  %v7217_v61 = vpop.permute.xlu1 %2669 }
 0x2c0   : > { %7937 = vst [vmem:[#allocation37_spill] sm:$0xff] %v7217_v61 }
 0x2c1   : > { %3682 = vmatmul.mubr.f32.gmra.mrb[104].mxu1 %v3406_v60  ;;  %v3337_v60 = vld [vmem:[%s7121_s26 + $0x68] sm:$0xff] }
 0x2c2   : > { %3686 = vmatprep.mubr.f32.mxu1 %v3411_v57  ;;  %4933 = vmatpush3.bf16.msra.mxu1 %v4932_v48  ;;  %v4940_v59 = vpack.c.bf16 %v3337_v60, %v3336_v32 }
 0x2c3   : > { %4935 = vmatprep.subr.bf16.mxu1 %v4934_v7  ;;  %v3414_v7 = vld [vmem:[%s7800_s10 + $0xd0] sm:$0xff] }
 0x2c4   : > { %v2489_v2 = vpop.f32.mrb[0].mxu1 }
 0x2c5   : > { %v2490_v57 = vadd.f32 %v2489_v2, %v7082_v6  ;;  %v2491_v14 = vpop.f32.mrb[1].mxu1  ;;  %3687 = vmatmul.mubr.f32.gmra.mrb[106].mxu1 %v3410_v11  ;;  %v3419_v11 = vld [vmem:[%s7800_s10 + $0xf8] sm:$0xff] }
 0x2c6   : > { %v2492_v48 = vadd.f32 %v2491_v14, %v7082_v6  ;;  %v2493_v50 = vpop.f32.mrb[2].mxu1  ;;  %3691 = vmatprep.mubr.f32.mxu1 %v3415_v54  ;;  %4937 = vmatpush3.bf16.msra.mxu1 %v4936_v58  ;;  %v3354_v14 = vld [vmem:[%s7121_s26 + $0xf0] sm:$0xff]  ;;  %v3355_v6 = vld [vmem:[%s7121_s26 + $0xf8] sm:$0xff] }
 0x2c7   : > { %v2568_v4 = vmax.f32 %v2490_v57, 0.0  ;;  %v2494_v26 = vadd.f32 %v2493_v50, %v7090_v62  ;;  %v2495_v2 = vpop.f32.mrb[3].mxu1  ;;  %4939 = vmatprep.subr.bf16.mxu1 %v4938_v47  ;;  %v4942_v1 = vpack.c.bf16 %v3355_v6, %v3354_v14  ;;  %v3339_v58 = vld [vmem:[%s7121_s26 + $0x78] sm:$0xff]  ;;  %v3418_v47 = vld [vmem:[%s7800_s10 + $0xf0] sm:$0xff] }
 0x2c8   : > { %v2569_v54 = vmax.f32 %v2492_v48, 0.0  ;;  %v2496_v41 = vadd.f32 %v2495_v2, %v7090_v62  ;;  %v4944_v8 = vpack.c.bf16 %v3339_v58, %v3338_v29  ;;  %v3423_v62 = vld [vmem:[%s7800_s10 + $0x118] sm:$0xff]  ;;  %v7234_v29 = vpop.permute.xlu1 %2364 }
 0x2c9   : > { %v2600_v32 = vmin.f32 %v2568_v4, 6.0  ;;  %v2570_v60 = vmax.f32 %v2494_v26, 0.0  ;;  %3692 = vmatmul.mubr.f32.gmra.mrb[108].mxu1 %v3414_v7  ;;  %v7229_v4 = vpop.permute.xlu0 %2359 }
 0x2ca   : > { %v2601_v57 = vmin.f32 %v2569_v54, 6.0  ;;  %v2571_v50 = vmax.f32 %v2496_v41, 0.0  ;;  %3696 = vmatprep.mubr.f32.mxu1 %v3419_v11  ;;  %4941 = vmatpush3.bf16.msra.mxu1 %v4940_v59 }
 0x2cb   : > { %v2937_v61 = vadd.f32 %v2600_v32, %v6702_v44  ;;  %v2602_v48 = vmin.f32 %v2570_v60, 6.0  ;;  %4943 = vmatprep.subr.bf16.mxu1 %v4942_v1  ;;  %v3427_v32 = vld [vmem:[%s7800_s10 + $0x138] sm:$0xff] }
 0x2cc   : > { %v2938_v7 = vadd.f32 %v2601_v57, %v6698_v56  ;;  %v2603_v41 = vmin.f32 %v2571_v50, 6.0  ;;  %v2499_v26 = vpop.f32.mrb[4].mxu1  ;;  %v3422_v56 = vld [vmem:[%s7800_s10 + $0x110] sm:$0xff] }
 0x2cd   : > { %v2939_v2 = vadd.f32 %v2602_v48, %v6696_v0  ;;  %v2500_v11 = vadd.f32 %v2499_v26, %v7113_v51  ;;  %v2501_v59 = vpop.f32.mrb[5].mxu1  ;;  %3697 = vmatmul.mubr.f32.gmra.mrb[110].mxu1 %v3418_v47  ;;  %v7246_v50 = vpop.permute.xlu0 %2674  ;;  %v3426_v48 = vld [vmem:[%s7800_s10 + $0x130] sm:$0xff] }
 0x2ce   : > { %v2940_v44 = vadd.f32 %v2603_v41, %v6700_v13  ;;  %v2502_v14 = vadd.f32 %v2501_v59, %v7113_v51  ;;  %v2503_v6 = vpop.f32.mrb[6].mxu1  ;;  %v3017_v1 = vadd.f32 %v2938_v7, %v2937_v61  ;;  %3701 = vmatprep.mubr.f32.mxu1 %v3423_v62  ;;  %4945 = vmatpush3.bf16.msra.mxu1 %v4944_v8  ;;  %v7255_v41 = vpop.permute.xlu1 %2679 }
 0x2cf   : > { %v2572_v54 = vmax.f32 %v2500_v11, 0.0  ;;  %v2504_v0 = vadd.f32 %v2503_v6, %v7138_v52  ;;  %v2505_v58 = vpop.f32.mrb[7].mxu1 }
 0x2d0   : > { %v2573_v60 = vmax.f32 %v2502_v14, 0.0  ;;  %v2506_v13 = vadd.f32 %v2505_v58, %v7138_v52  ;;  %3018 = vadd.xlane.f32.xlu0 %v3017_v1  ;;  %v3020_v51 = vadd.f32 %v2940_v44, %v2939_v2  ;;  %v3431_v52 = vld [vmem:[%s7800_s10 + $0x158] sm:$0xff] }
 0x2d1   : > { %v2604_v61 = vmin.f32 %v2572_v54, 6.0  ;;  %v2574_v57 = vmax.f32 %v2504_v0, 0.0  ;;  %3702 = vmatmul.mubr.f32.gmra.mrb[112].mxu1 %v3422_v56 }
 0x2d2   : > { %v2605_v47 = vmin.f32 %v2573_v60, 6.0  ;;  %v2575_v8 = vmax.f32 %v2506_v13, 0.0  ;;  %3706 = vmatprep.mubr.f32.mxu1 %v3427_v32  ;;  %v2370_v32 = vpop.permute.xlu0 %2369 }
 0x2d3   : > { %v2941_v62 = vadd.f32 %v2604_v61, %v6718_v45  ;;  %v2606_v7 = vmin.f32 %v2574_v57, 6.0  ;;  %v7270_v61 = vpop.permute.xlu1 %2374 }
 0x2d4   : > { %v2942_v26 = vadd.f32 %v2605_v47, %v6714_v31  ;;  %v2607_v2 = vmin.f32 %v2575_v8, 6.0  ;;  %v2509_v11 = vpop.f32.mrb[8].mxu1  ;;  %3021 = vadd.xlane.f32.xlu0 %v3020_v51  ;;  %v3430_v31 = vld [vmem:[%s7800_s10 + $0x150] sm:$0xff] }
 0x2d5   : > { %v2943_v59 = vadd.f32 %v2606_v7, %v6712_v53  ;;  %v2510_v44 = vadd.f32 %v2509_v11, %v7176_v42  ;;  %v2511_v14 = vpop.f32.mrb[9].mxu1  ;;  %3707 = vmatmul.mubr.f32.gmra.mrb[114].mxu1 %v3426_v48  ;;  %v3435_v53 = vld [vmem:[%s7800_s10 + $0x178] sm:$0xff]  ;;  %v3434_v8 = vld [vmem:[%s7800_s10 + $0x170] sm:$0xff] }
 0x2d6   : > { %v2944_v45 = vadd.f32 %v2607_v2, %v6716_v30  ;;  %v2512_v6 = vadd.f32 %v2511_v14, %v7176_v42  ;;  %v2513_v1 = vpop.f32.mrb[10].mxu1  ;;  %v3023_v56 = vadd.f32 %v2942_v26, %v2941_v62  ;;  %3711 = vmatprep.mubr.f32.mxu1 %v3431_v52 }
 0x2d7   : > { %v2576_v54 = vmax.f32 %v2510_v44, 0.0  ;;  %v2514_v0 = vadd.f32 %v2513_v1, %v7192_v22  ;;  %v2515_v58 = vpop.f32.mrb[11].mxu1  ;;  %v7282_v44 = vpop.permute.xlu0 %2684 }
 0x2d8   : > { %v2577_v60 = vmax.f32 %v2512_v6, 0.0  ;;  %v2516_v30 = vadd.f32 %v2515_v58, %v7192_v22  ;;  %3024 = vadd.xlane.f32.xlu1 %v3023_v56  ;;  %v3026_v42 = vadd.f32 %v2944_v45, %v2943_v59  ;;  %v3439_v22 = vld [vmem:[%s7800_s10 + $0x198] sm:$0xff] }
 0x2d9   : > { %v2608_v13 = vmin.f32 %v2576_v54, 6.0  ;;  %v2578_v51 = vmax.f32 %v2514_v0, 0.0  ;;  %3712 = vmatmul.mubr.f32.gmra.mrb[116].mxu1 %v3430_v31  ;;  %v3443_v31 = vld [vmem:[%s7800_s10 + $0x1b8] sm:$0xff]  ;;  %v7293_v54 = vpop.permute.xlu1 %2689 }
 0x2da   : > { %v2609_v57 = vmin.f32 %v2577_v60, 6.0  ;;  %v2579_v47 = vmax.f32 %v2516_v30, 0.0  ;;  %3027 = vadd.xlane.f32.xlu0 %v3026_v42  ;;  %3716 = vmatprep.mubr.f32.mxu1 %v3435_v53  ;;  %v3442_v42 = vld [vmem:[%s7800_s10 + $0x1b0] sm:$0xff] }
 0x2db   : > { %v2945_v48 = vadd.f32 %v2608_v13, %v6734_v5  ;;  %v2610_v62 = vmin.f32 %v2578_v51, 6.0 }
 0x2dc   : > { %v2946_v7 = vadd.f32 %v2609_v57, %v6730_v17  ;;  %v2611_v52 = vmin.f32 %v2579_v47, 6.0  ;;  %v2519_v26 = vpop.f32.mrb[12].mxu1  ;;  %v3438_v17 = vld [vmem:[%s7800_s10 + $0x190] sm:$0xff]  ;;  %v2380_v57 = vpop.permute.xlu0 %2379 }
 0x2dd   : > { %v2947_v2 = vadd.f32 %v2610_v62, %v6728_v36  ;;  %v2520_v11 = vadd.f32 %v2519_v26, %v7229_v4  ;;  %v2521_v59 = vpop.f32.mrb[13].mxu1  ;;  %3717 = vmatmul.mubr.f32.gmra.mrb[118].mxu1 %v3434_v8 }
 0x2de   : > { %v2948_v14 = vadd.f32 %v2611_v52, %v6732_v55  ;;  %v2522_v5 = vadd.f32 %v2521_v59, %v7229_v4  ;;  %v2523_v45 = vpop.f32.mrb[14].mxu1  ;;  %v3029_v6 = vadd.f32 %v2946_v7, %v2945_v48  ;;  %3721 = vmatprep.mubr.f32.mxu1 %v3439_v22  ;;  %v2385_v52 = vpop.permute.xlu1 %2384  ;;  %v3446_v59 = vld [vmem:[%s7800_s10 + $0x1d0] sm:$0xff] }
 0x2df   : > { %v2580_v1 = vmax.f32 %v2520_v11, 0.0  ;;  %v2524_v36 = vadd.f32 %v2523_v45, %v7234_v29  ;;  %v2525_v56 = vpop.f32.mrb[15].mxu1 }
 0x2e0   : > { %v2581_v55 = vmax.f32 %v2522_v5, 0.0  ;;  %v2526_v4 = vadd.f32 %v2525_v56, %v7234_v29  ;;  %3030 = vadd.xlane.f32.xlu1 %v3029_v6  ;;  %v3032_v0 = vadd.f32 %v2948_v14, %v2947_v2  ;;  %v3447_v29 = vld [vmem:[%s7800_s10 + $0x1d8] sm:$0xff] }
 0x2e1   : > { %v2612_v58 = vmin.f32 %v2580_v1, 6.0  ;;  %v2582_v53 = vmax.f32 %v2524_v36, 0.0  ;;  %3722 = vmatmul.mubr.f32.gmra.mrb[120].mxu1 %v3438_v17  ;;  %v7314_v1 = vpop.permute.xlu0 %2694 }
 0x2e2   : > { %v2613_v60 = vmin.f32 %v2581_v55, 6.0  ;;  %v2583_v30 = vmax.f32 %v2526_v4, 0.0  ;;  %3033 = vadd.xlane.f32.xlu0 %v3032_v0  ;;  %3726 = vmatprep.mubr.f32.mxu1 %v3443_v31  ;;  %v3450_v31 = vld [vmem:[%s7800_s10 + $0x1f0] sm:$0xff]  ;;  %v7323_v0 = vpop.permute.xlu1 %2699 }
 0x2e3   : > { %v2949_v13 = vadd.f32 %v2612_v58, %v6750_v20  ;;  %v2614_v51 = vmin.f32 %v2582_v53, 6.0 }
 0x2e4   : > { %v2950_v47 = vadd.f32 %v2613_v60, %v6746_v40  ;;  %v2615_v8 = vmin.f32 %v2583_v30, 6.0  ;;  %v2529_v48 = vpop.f32.mrb[16].mxu1 }
 0x2e5   : > { %v2951_v62 = vadd.f32 %v2614_v51, %v6744_v3  ;;  %v2530_v22 = vadd.f32 %v2529_v48, %v2370_v32  ;;  %v2531_v7 = vpop.f32.mrb[17].mxu1  ;;  %3727 = vmatmul.mubr.f32.gmra.mrb[122].mxu1 %v3442_v42  ;;  %v3451_v3 = vld [vmem:[%s7800_s10 + $0x1f8] sm:$0xff] }
 0x2e6   : > { %v2952_v26 = vadd.f32 %v2615_v8, %v6748_v21  ;;  %v2532_v2 = vadd.f32 %v2531_v7, %v2370_v32  ;;  %v2533_v20 = vpop.f32.mrb[18].mxu1  ;;  %v3035_v11 = vadd.f32 %v2950_v47, %v2949_v13  ;;  %3731 = vmatprep.mubr.f32.mxu1 %v3447_v29  ;;  %v3356_v8 = vld [vmem:[%s7799_s9] sm:$0xff] }
 0x2e7   : > { %v2584_v14 = vmax.f32 %v2530_v22, 0.0  ;;  %v2534_v40 = vadd.f32 %v2533_v20, %v7270_v61  ;;  %v2535_v5 = vpop.f32.mrb[19].mxu1  ;;  %v2390_v22 = vpop.permute.xlu0 %2389 }
 0x2e8   : > { %v2585_v45 = vmax.f32 %v2532_v2, 0.0  ;;  %v2536_v6 = vadd.f32 %v2535_v5, %v7270_v61  ;;  %3036 = vadd.xlane.f32.xlu1 %v3035_v11  ;;  %v3038_v21 = vadd.f32 %v2952_v26, %v2951_v62  ;;  %v3357_v61 = vld [vmem:[%s7799_s9 + $0x8] sm:$0xff]  ;;  %v2395_v20 = vpop.permute.xlu1 %2394 }
 0x2e9   : > { %v2616_v32 = vmin.f32 %v2584_v14, 6.0  ;;  %v2586_v17 = vmax.f32 %v2534_v40, 0.0  ;;  %3732 = vmatmul.mubr.f32.gmra.mrb[124].mxu1 %v3446_v59  ;;  %v3358_v14 = vld [vmem:[%s7799_s9 + $0x10] sm:$0xff] }
 0x2ea   : > { %v2617_v36 = vmin.f32 %v2585_v45, 6.0  ;;  %v2587_v56 = vmax.f32 %v2536_v6, 0.0  ;;  %3039 = vadd.xlane.f32.xlu0 %v3038_v21  ;;  %3736 = vmatprep.mubr.f32.mxu1 %v3451_v3 }
 0x2eb   : > { %v2953_v55 = vadd.f32 %v2616_v32, %v6766_v46  ;;  %v2618_v4 = vmin.f32 %v2586_v17, 6.0 }
 0x2ec   : > { %v2954_v58 = vadd.f32 %v2617_v36, %v6762_v27  ;;  %v2619_v53 = vmin.f32 %v2587_v56, 6.0  ;;  %v2539_v60 = vpop.f32.mrb[20].mxu1  ;;  %v7343_v36 = vpop.permute.xlu0 %2704 }
 0x2ed   : > { %v2955_v30 = vadd.f32 %v2618_v4, %v6760_v35  ;;  %v2540_v42 = vadd.f32 %v2539_v60, %v2380_v57  ;;  %v2541_v13 = vpop.f32.mrb[21].mxu1  ;;  %3737 = vmatmul.mubr.f32.gmra.mrb[126].mxu1 %v3450_v31  ;;  %v3359_v35 = vld [vmem:[%s7799_s9 + $0x18] sm:$0xff]  ;;  %v3360_v4 = vld [vmem:[%s7799_s9 + $0x20] sm:$0xff] }
 0x2ee   : > { %v2956_v51 = vadd.f32 %v2619_v53, %v6764_v39  ;;  %v2542_v29 = vadd.f32 %v2541_v13, %v2380_v57  ;;  %v2543_v46 = vpop.f32.mrb[22].mxu1  ;;  %v3041_v47 = vadd.f32 %v2954_v58, %v2953_v55  ;;  %3806 = vmatprep.mubr.f32.mxu1 %v3357_v61  ;;  %v7352_v53 = vpop.permute.xlu1 %2709 }
 0x2ef   : > { %v2588_v48 = vmax.f32 %v2540_v42, 0.0  ;;  %v2544_v62 = vadd.f32 %v2543_v46, %v2385_v52  ;;  %v2545_v27 = vpop.f32.mrb[23].mxu1  ;;  %v3362_v46 = vld [vmem:[%s7799_s9 + $0x30] sm:$0xff] }
 0x2f0   : > { %v2589_v7 = vmax.f32 %v2542_v29, 0.0  ;;  %v2546_v26 = vadd.f32 %v2545_v27, %v2385_v52  ;;  %3042 = vadd.xlane.f32.xlu1 %v3041_v47  ;;  %v3044_v39 = vadd.f32 %v2956_v51, %v2955_v30  ;;  %v3361_v52 = vld [vmem:[%s7799_s9 + $0x28] sm:$0xff] }
 0x2f1   : > { %v2620_v57 = vmin.f32 %v2588_v48, 6.0  ;;  %v2590_v2 = vmax.f32 %v2544_v62, 0.0  ;;  %3807 = vmatmul.mubr.f32.vlgmr.msra.gmra.mrb[128].mxu1 %v3356_v8  ;;  %v3365_v48 = vld [vmem:[%s7799_s9 + $0x48] sm:$0xff]  ;;  %v2400_v62 = vpop.permute.xlu0 %2399 }
 0x2f2   : > { %v2621_v11 = vmin.f32 %v2589_v7, 6.0  ;;  %v2591_v59 = vmax.f32 %v2546_v26, 0.0  ;;  %3045 = vadd.xlane.f32.xlu0 %v3044_v39  ;;  %3811 = vmatprep.mubr.f32.mxu1 %v3359_v35 }
 0x2f3   : > { %v2957_v40 = vadd.f32 %v2620_v57, %v6782_v19  ;;  %v2622_v5 = vmin.f32 %v2590_v2, 6.0  ;;  %v2405_v57 = vpop.permute.xlu1 %2404 }
 0x2f4   : > { %v2958_v3 = vadd.f32 %v2621_v11, %v6778_v12  ;;  %v2623_v45 = vmin.f32 %v2591_v59, 6.0  ;;  %v2549_v6 = vpop.f32.mrb[24].mxu1  ;;  %v3364_v59 = vld [vmem:[%s7799_s9 + $0x40] sm:$0xff] }
 0x2f5   : > { %v2959_v21 = vadd.f32 %v2622_v5, %v6776_v33  ;;  %v2550_v32 = vadd.f32 %v2549_v6, %v2390_v22  ;;  %v2551_v17 = vpop.f32.mrb[25].mxu1  ;;  %3812 = vmatmul.mubr.f32.gmra.mrb[130].mxu1 %v3358_v14  ;;  %v3363_v33 = vld [vmem:[%s7799_s9 + $0x38] sm:$0xff] }
 0x2f6   : > { %v2960_v56 = vadd.f32 %v2623_v45, %v6780_v23  ;;  %v2552_v31 = vadd.f32 %v2551_v17, %v2390_v22  ;;  %v2553_v19 = vpop.f32.mrb[26].mxu1  ;;  %v3047_v55 = vadd.f32 %v2958_v3, %v2957_v40  ;;  %3816 = vmatprep.mubr.f32.mxu1 %v3361_v52 }
 0x2f7   : > { %v2592_v12 = vmax.f32 %v2550_v32, 0.0  ;;  %v2554_v61 = vadd.f32 %v2553_v19, %v2395_v20  ;;  %v2555_v58 = vpop.f32.mrb[27].mxu1  ;;  %v3366_v32 = vld [vmem:[%s7799_s9 + $0x50] sm:$0xff] }
 0x2f8   : > { %v2593_v60 = vmax.f32 %v2552_v31, 0.0  ;;  %v2556_v30 = vadd.f32 %v2555_v58, %v2395_v20  ;;  %3048 = vadd.xlane.f32.xlu1 %v3047_v55  ;;  %v3050_v23 = vadd.f32 %v2960_v56, %v2959_v21 }
 0x2f9   : > { %v2624_v42 = vmin.f32 %v2592_v12, 6.0  ;;  %v2594_v13 = vmax.f32 %v2554_v61, 0.0  ;;  %3817 = vmatmul.mubr.f32.gmra.mrb[132].mxu1 %v3360_v4 }
 0x2fa   : > { %v2625_v51 = vmin.f32 %v2593_v60, 6.0  ;;  %v2595_v29 = vmax.f32 %v2556_v30, 0.0  ;;  %3051 = vadd.xlane.f32.xlu0 %v3050_v23  ;;  %3821 = vmatprep.mubr.f32.mxu1 %v3363_v33 }
 0x2fb   : > { %v2961_v47 = vadd.f32 %v2624_v42, %v6798_v63  ;;  %v2626_v8 = vmin.f32 %v2594_v13, 6.0 }
 0x2fc   : > { %v2962_v27 = vadd.f32 %v2625_v51, %v6794_v25  ;;  %v2627_v35 = vmin.f32 %v2595_v29, 6.0  ;;  %v2559_v22 = vpop.f32.mrb[28].mxu1 }
 0x2fd   : > { %v2963_v7 = vadd.f32 %v2626_v8, %v6792_v18  ;;  %v2560_v26 = vadd.f32 %v2559_v22, %v2400_v62  ;;  %v2561_v39 = vpop.f32.mrb[29].mxu1  ;;  %3822 = vmatmul.mubr.f32.gmra.mrb[134].mxu1 %v3362_v46  ;;  %v3367_v18 = vld [vmem:[%s7799_s9 + $0x58] sm:$0xff] }
 0x2fe   : > { %v2964_v2 = vadd.f32 %v2627_v35, %v6796_v24  ;;  %v2562_v20 = vadd.f32 %v2561_v39, %v2400_v62  ;;  %v2563_v63 = vpop.f32.mrb[30].mxu1  ;;  %v3053_v11 = vadd.f32 %v2962_v27, %v2961_v47  ;;  %3826 = vmatprep.mubr.f32.mxu1 %v3365_v48  ;;  %v7938_v27 = vld [vmem:[#allocation4_spill] sm:$0xff] }
 0x2ff   : > { %v2596_v14 = vmax.f32 %v2560_v26, 0.0  ;;  %v2564_v25 = vadd.f32 %v2563_v63, %v2405_v57  ;;  %v2565_v40 = vpop.f32.mrb[31].mxu1  ;;  %v7939_v26 = vld [vmem:[#allocation5_spill] sm:$0xff] }
 0x300   : > { %v2597_v5 = vmax.f32 %v2562_v20, 0.0  ;;  %v2566_v52 = vadd.f32 %v2565_v40, %v2405_v57  ;;  %3054 = vadd.xlane.f32.xlu1 %v3053_v11  ;;  %v3056_v3 = vadd.f32 %v2964_v2, %v2963_v7 }
 0x301   : > { %v2628_v24 = vmin.f32 %v2596_v14, 6.0  ;;  %v2598_v45 = vmax.f32 %v2564_v25, 0.0  ;;  %3827 = vmatmul.mubr.f32.gmra.mrb[136].mxu1 %v3364_v59 }
 0x302   : > { %v2629_v6 = vmin.f32 %v2597_v5, 6.0  ;;  %v2599_v21 = vmax.f32 %v2566_v52, 0.0  ;;  %3057 = vadd.xlane.f32.xlu0 %v3056_v3  ;;  %3831 = vmatprep.mubr.f32.mxu1 %v3367_v18  ;;  %v7940_v5 = vld [vmem:[#allocation9_spill] sm:$0xff] }
 0x303   : > { %v2965_v17 = vadd.f32 %v2628_v24, %v6814_v28  ;;  %v2630_v56 = vmin.f32 %v2598_v45, 6.0 }
 0x304   : > { %v2966_v31 = vadd.f32 %v2629_v6, %v6810_v15  ;;  %v2631_v19 = vmin.f32 %v2599_v21, 6.0  ;;  %v2794_v55 = vpop.f32.mrb[32].mxu1  ;;  %v7942_v21 = vld [vmem:[#allocation6_spill] sm:$0xff] }
 0x305   : > { %v2967_v4 = vadd.f32 %v2630_v56, %v6808_v9  ;;  %v2795_v12 = vadd.f32 %v2794_v55, %v7068_v37  ;;  %v2796_v61 = vpop.f32.mrb[33].mxu1  ;;  %3832 = vmatmul.mubr.f32.gmra.mrb[138].mxu1 %v3366_v32 }
 0x306   : > { %v2968_v58 = vadd.f32 %v2631_v19, %v6812_v10  ;;  %v2797_v33 = vadd.f32 %v2796_v61, %v7068_v37  ;;  %v2798_v60 = vpop.f32.mrb[34].mxu1  ;;  %v7379_v30 = vadd.f32 %v2966_v31, %v2965_v17  ;;  %v7943_v17 = vld [vmem:[#allocation34_spill] sm:$0xff] }
 0x307   : > { %v2873_v23 = vmax.f32 %v2795_v12, 0.0  ;;  %v2799_v28 = vadd.f32 %v2798_v60, %v7150_v34  ;;  %v2800_v42 = vpop.f32.mrb[35].mxu1 }
 0x308   : > { %v2874_v15 = vmax.f32 %v2797_v33, 0.0  ;;  %v2801_v13 = vadd.f32 %v2800_v42, %v7150_v34  ;;  %v7383_v51 = vadd.f32 %v2968_v58, %v2967_v4  ;;  %v7945_v58 = vld [vmem:[#allocation35_spill] sm:$0xff] }
 0x309   : > { %v2905_v9 = vmin.f32 %v2873_v23, 6.0  ;;  %v2875_v29 = vmax.f32 %v2799_v28, 0.0 }
 0x30a   : > { %v2906_v46 = vmin.f32 %v2874_v15, 6.0  ;;  %v2876_v47 = vmax.f32 %v2801_v13, 0.0 }
 0x30b   : > { %v2969_v10 = vadd.f32 %v2905_v9, %v6833_v43  ;;  %v2907_v8 = vmin.f32 %v2875_v29, 6.0 }
 0x30c   : > { %v2970_v37 = vadd.f32 %v2906_v46, %v6829_v49  ;;  %v2908_v48 = vmin.f32 %v2876_v47, 6.0  ;;  %v2804_v62 = vpop.f32.mrb[36].mxu1  ;;  %v7946_v46 = vld [vmem:[#allocation13_spill] sm:$0xff] }
 0x30d   : > { %v2971_v35 = vadd.f32 %v2907_v8, %v7938_v27  ;;  %v2805_v22 = vadd.f32 %v2804_v62, %v7104_v38  ;;  %v2806_v7 = vpop.f32.mrb[37].mxu1  ;;  %v7947_v8 = vld [vmem:[#allocation11_spill] sm:$0xff]  ;;  %v7948_v27 = vld [vmem:[#allocation10_spill] sm:$0xff] }
 0x30e   : > { %v2972_v34 = vadd.f32 %v2908_v48, %v7939_v26  ;;  %v2807_v39 = vadd.f32 %v2806_v7, %v7104_v38  ;;  %v2808_v57 = vpop.f32.mrb[38].mxu1  ;;  %v3113_v2 = vadd.f32 %v2970_v37, %v2969_v10  ;;  %v7941_v38 = vld [vmem:[#allocation7_spill] sm:$0xff] }
 0x30f   : > { %v2877_v20 = vmax.f32 %v2805_v22, 0.0  ;;  %v2809_v63 = vadd.f32 %v2808_v57, %v7166_v16  ;;  %v2810_v43 = vpop.f32.mrb[39].mxu1  ;;  %v7949_v22 = vld [vmem:[#allocation36_spill] sm:$0xff] }
 0x310   : > { %v2878_v11 = vmax.f32 %v2807_v39, 0.0  ;;  %v2811_v49 = vadd.f32 %v2810_v43, %v7166_v16  ;;  %3114 = vadd.xlane.f32.xlu0 %v3113_v2  ;;  %v3116_v59 = vadd.f32 %v2972_v34, %v2971_v35  ;;  %v7944_v16 = vld [vmem:[#allocation8_spill] sm:$0xff]  ;;  %v7951_v43 = vld [vmem:[#allocation37_spill] sm:$0xff] }
 0x311   : > { %v2909_v14 = vmin.f32 %v2877_v20, 6.0  ;;  %v2879_v25 = vmax.f32 %v2809_v63, 0.0  ;;  %v7950_v34 = vld [vmem:[#allocation12_spill] sm:$0xff] }
 0x312   : > { %v2910_v40 = vmin.f32 %v2878_v11, 6.0  ;;  %v2880_v18 = vmax.f32 %v2811_v49, 0.0  ;;  %3117 = vadd.xlane.f32.xlu1 %v3116_v59 }
 0x313   : > { %v2973_v52 = vadd.f32 %v2909_v14, %v7940_v5  ;;  %v2911_v3 = vmin.f32 %v2879_v25, 6.0 }
 0x314   : > { %v2974_v24 = vadd.f32 %v2910_v40, %v7941_v38  ;;  %v2912_v45 = vmin.f32 %v2880_v18, 6.0  ;;  %v2814_v6 = vpop.f32.mrb[40].mxu1 }
 0x315   : > { %v2975_v32 = vadd.f32 %v2911_v3, %v7942_v21  ;;  %v2815_v56 = vadd.f32 %v2814_v6, %v7943_v17  ;;  %v2816_v31 = vpop.f32.mrb[41].mxu1  ;;  %v7952_v3 = vld [vmem:[#allocation17_spill] sm:$0xff] }
 0x316   : > { %v2976_v19 = vadd.f32 %v2912_v45, %v7944_v16  ;;  %v2817_v55 = vadd.f32 %v2816_v31, %v7943_v17  ;;  %v2818_v4 = vpop.f32.mrb[42].mxu1  ;;  %v3119_v12 = vadd.f32 %v2974_v24, %v2973_v52  ;;  %v7953_v45 = vld [vmem:[#allocation15_spill] sm:$0xff]  ;;  %v7954_v17 = vld [vmem:[#allocation14_spill] sm:$0xff] }
 0x317   : > { %v2881_v61 = vmax.f32 %v2815_v56, 0.0  ;;  %v2819_v33 = vadd.f32 %v2818_v4, %v7945_v58  ;;  %v2820_v60 = vpop.f32.mrb[43].mxu1 }
 0x318   : > { %v2882_v23 = vmax.f32 %v2817_v55, 0.0  ;;  %v2821_v28 = vadd.f32 %v2820_v60, %v7945_v58  ;;  %3120 = vadd.xlane.f32.xlu1 %v3119_v12  ;;  %v3122_v42 = vadd.f32 %v2976_v19, %v2975_v32  ;;  %v7955_v19 = vld [vmem:[#allocation16_spill] sm:$0xff] }
 0x319   : > { %v2913_v15 = vmin.f32 %v2881_v61, 6.0  ;;  %v2883_v13 = vmax.f32 %v2819_v33, 0.0 }
 0x31a   : > { %v2914_v9 = vmin.f32 %v2882_v23, 6.0  ;;  %v2884_v29 = vmax.f32 %v2821_v28, 0.0  ;;  %3123 = vadd.xlane.f32.xlu0 %v3122_v42 }
 0x31b   : > { %v2977_v47 = vadd.f32 %v2913_v15, %v7946_v46  ;;  %v2915_v10 = vmin.f32 %v2883_v13, 6.0  ;;  %v7956_v46 = vld [vmem:[#allocation21_spill] sm:$0xff] }
 0x31c   : > { %v2978_v37 = vadd.f32 %v2914_v9, %v7947_v8  ;;  %v2916_v48 = vmin.f32 %v2884_v29, 6.0  ;;  %v2824_v62 = vpop.f32.mrb[44].mxu1 }
 0x31d   : > { %v2979_v35 = vadd.f32 %v2915_v10, %v7948_v27  ;;  %v2825_v7 = vadd.f32 %v2824_v62, %v7949_v22  ;;  %v2826_v26 = vpop.f32.mrb[45].mxu1  ;;  %v7958_v62 = vld [vmem:[#allocation18_spill] sm:$0xff] }
 0x31e   : > { %v2980_v39 = vadd.f32 %v2916_v48, %v7950_v34  ;;  %v2827_v57 = vadd.f32 %v2826_v26, %v7949_v22  ;;  %v2828_v2 = vpop.f32.mrb[46].mxu1  ;;  %v3125_v20 = vadd.f32 %v2978_v37, %v2977_v47 }
 0x31f   : > { %v2885_v63 = vmax.f32 %v2825_v7, 0.0  ;;  %v2829_v11 = vadd.f32 %v2828_v2, %v7951_v43  ;;  %v2830_v49 = vpop.f32.mrb[47].mxu1 }
 0x320   : > { %v2886_v59 = vmax.f32 %v2827_v57, 0.0  ;;  %v2831_v14 = vadd.f32 %v2830_v49, %v7951_v43  ;;  %3126 = vadd.xlane.f32.xlu1 %v3125_v20  ;;  %v3128_v25 = vadd.f32 %v2980_v39, %v2979_v35 }
 0x321   : > { %v2917_v40 = vmin.f32 %v2885_v63, 6.0  ;;  %v2887_v18 = vmax.f32 %v2829_v11, 0.0 }
 0x322   : > { %v2918_v5 = vmin.f32 %v2886_v59, 6.0  ;;  %v2888_v52 = vmax.f32 %v2831_v14, 0.0  ;;  %3129 = vadd.xlane.f32.xlu0 %v3128_v25 }
 0x323   : > { %v2981_v38 = vadd.f32 %v2917_v40, %v7952_v3  ;;  %v2919_v24 = vmin.f32 %v2887_v18, 6.0  ;;  %v7960_v40 = vld [vmem:[#allocation25_spill] sm:$0xff] }
 0x324   : > { %v2982_v6 = vadd.f32 %v2918_v5, %v7953_v45  ;;  %v2920_v21 = vmin.f32 %v2888_v52, 6.0  ;;  %v2834_v32 = vpop.f32.mrb[48].mxu1 }
 0x325   : > { %v2983_v56 = vadd.f32 %v2919_v24, %v7954_v17  ;;  %v2835_v31 = vadd.f32 %v2834_v32, %v7246_v50  ;;  %v2836_v16 = vpop.f32.mrb[49].mxu1  ;;  %v7962_v24 = vld [vmem:[#allocation22_spill] sm:$0xff] }
 0x326   : > { %v2984_v55 = vadd.f32 %v2920_v21, %v7955_v19  ;;  %v2837_v4 = vadd.f32 %v2836_v16, %v7246_v50  ;;  %v2838_v12 = vpop.f32.mrb[50].mxu1  ;;  %v3131_v61 = vadd.f32 %v2982_v6, %v2981_v38  ;;  %v7957_v50 = vld [vmem:[#allocation19_spill] sm:$0xff] }
 0x327   : > { %v2889_v58 = vmax.f32 %v2835_v31, 0.0  ;;  %v2839_v33 = vadd.f32 %v2838_v12, %v7255_v41  ;;  %v2840_v60 = vpop.f32.mrb[51].mxu1 }
 0x328   : > { %v2890_v23 = vmax.f32 %v2837_v4, 0.0  ;;  %v2841_v28 = vadd.f32 %v2840_v60, %v7255_v41  ;;  %3132 = vadd.xlane.f32.xlu1 %v3131_v61  ;;  %v3134_v42 = vadd.f32 %v2984_v55, %v2983_v56  ;;  %v7959_v41 = vld [vmem:[#allocation20_spill] sm:$0xff] }
 0x329   : > { %v2921_v15 = vmin.f32 %v2889_v58, 6.0  ;;  %v2891_v13 = vmax.f32 %v2839_v33, 0.0 }
 0x32a   : > { %v2922_v9 = vmin.f32 %v2890_v23, 6.0  ;;  %v2892_v29 = vmax.f32 %v2841_v28, 0.0  ;;  %3135 = vadd.xlane.f32.xlu0 %v3134_v42  ;;  %v7964_v28 = vld [vmem:[#allocation29_spill] sm:$0xff] }
 0x32b   : > { %v2985_v47 = vadd.f32 %v2921_v15, %v7956_v46  ;;  %v2923_v10 = vmin.f32 %v2891_v13, 6.0  ;;  %v7966_v46 = vld [vmem:[#allocation26_spill] sm:$0xff] }
 0x32c   : > { %v2986_v8 = vadd.f32 %v2922_v9, %v7957_v50  ;;  %v2924_v37 = vmin.f32 %v2892_v29, 6.0  ;;  %v2844_v48 = vpop.f32.mrb[52].mxu1 }
 0x32d   : > { %v2987_v27 = vadd.f32 %v2923_v10, %v7958_v62  ;;  %v2845_v35 = vadd.f32 %v2844_v48, %v7282_v44  ;;  %v2846_v22 = vpop.f32.mrb[53].mxu1 }
 0x32e   : > { %v2988_v7 = vadd.f32 %v2924_v37, %v7959_v41  ;;  %v2847_v26 = vadd.f32 %v2846_v22, %v7282_v44  ;;  %v2848_v34 = vpop.f32.mrb[54].mxu1  ;;  %v3137_v39 = vadd.f32 %v2986_v8, %v2985_v47  ;;  %v7961_v44 = vld [vmem:[#allocation23_spill] sm:$0xff] }
 0x32f   : > { %v2893_v57 = vmax.f32 %v2845_v35, 0.0  ;;  %v2849_v2 = vadd.f32 %v2848_v34, %v7293_v54  ;;  %v2850_v20 = vpop.f32.mrb[55].mxu1 }
 0x330   : > { %v2894_v63 = vmax.f32 %v2847_v26, 0.0  ;;  %v2851_v43 = vadd.f32 %v2850_v20, %v7293_v54  ;;  %3138 = vadd.xlane.f32.xlu1 %v3137_v39  ;;  %v3140_v11 = vadd.f32 %v2988_v7, %v2987_v27  ;;  %v7963_v54 = vld [vmem:[#allocation24_spill] sm:$0xff]  ;;  %v7968_v20 = vld [vmem:[#allocation33_spill] sm:$0xff] }
 0x331   : > { %v2925_v49 = vmin.f32 %v2893_v57, 6.0  ;;  %v2895_v59 = vmax.f32 %v2849_v2, 0.0 }
 0x332   : > { %v2926_v14 = vmin.f32 %v2894_v63, 6.0  ;;  %v2896_v25 = vmax.f32 %v2851_v43, 0.0  ;;  %3141 = vadd.xlane.f32.xlu0 %v3140_v11 }
 0x333   : > { %v2989_v18 = vadd.f32 %v2925_v49, %v7960_v40  ;;  %v2927_v5 = vmin.f32 %v2895_v59, 6.0  ;;  %v7970_v59 = vld [vmem:[#allocation30_spill] sm:$0xff] }
 0x334   : > { %v2990_v52 = vadd.f32 %v2926_v14, %v7961_v44  ;;  %v2928_v3 = vmin.f32 %v2896_v25, 6.0  ;;  %v2854_v38 = vpop.f32.mrb[56].mxu1  ;;  %v7971_v25 = vld [vmem:[#allocation32_spill] sm:$0xff] }
 0x335   : > { %v2991_v45 = vadd.f32 %v2927_v5, %v7962_v24  ;;  %v2855_v6 = vadd.f32 %v2854_v38, %v7314_v1  ;;  %v2856_v21 = vpop.f32.mrb[57].mxu1  ;;  %v3001_v5 = vld [vmem:[#allocation3] sm:$0xff] }
 0x336   : > { %v2992_v32 = vadd.f32 %v2928_v3, %v7963_v54  ;;  %v2857_v17 = vadd.f32 %v2856_v21, %v7314_v1  ;;  %v2858_v56 = vpop.f32.mrb[58].mxu1  ;;  %v3143_v31 = vadd.f32 %v2990_v52, %v2989_v18  ;;  %v7965_v1 = vld [vmem:[#allocation27_spill] sm:$0xff]  ;;  %v3002_v3 = vld [vmem:[#allocation3 + $0x8] sm:$0xff]  ;;  %v3003_v54 = vld [vmem:[#allocation3 + $0x10] sm:$0xff] }
 0x337   : > { %v2897_v16 = vmax.f32 %v2855_v6, 0.0  ;;  %v2859_v19 = vadd.f32 %v2858_v56, %v7323_v0  ;;  %v2860_v55 = vpop.f32.mrb[59].mxu1  ;;  %v3369_v21 = vld [vmem:[%s7799_s9 + $0x68] sm:$0xff]  ;;  %v3004_v56 = vld [vmem:[#allocation3 + $0x18] sm:$0xff] }
 0x338   : > { %v2898_v4 = vmax.f32 %v2857_v17, 0.0  ;;  %v2861_v12 = vadd.f32 %v2860_v55, %v7323_v0  ;;  %3144 = vadd.xlane.f32.xlu1 %v3143_v31  ;;  %v3146_v61 = vadd.f32 %v2992_v32, %v2991_v45  ;;  %v7967_v0 = vld [vmem:[#allocation28_spill] sm:$0xff]  ;;  %3836 = vmatprep.mubr.f32.mxu1 %v3369_v21  ;;  %v3371_v55 = vld [vmem:[%s7799_s9 + $0x78] sm:$0xff] }
 0x339   : > { %v2929_v58 = vmin.f32 %v2897_v16, 6.0  ;;  %v2899_v33 = vmax.f32 %v2859_v19, 0.0 }
 0x33a   : > { %v2930_v60 = vmin.f32 %v2898_v4, 6.0  ;;  %v2900_v23 = vmax.f32 %v2861_v12, 0.0  ;;  %3147 = vadd.xlane.f32.xlu0 %v3146_v61  ;;  %v3370_v61 = vld [vmem:[%s7799_s9 + $0x70] sm:$0xff] }
 0x33b   : > { %v2993_v42 = vadd.f32 %v2929_v58, %v7964_v28  ;;  %v2931_v15 = vmin.f32 %v2899_v33, 6.0 }
 0x33c   : > { %v2994_v13 = vadd.f32 %v2930_v60, %v7965_v1  ;;  %v2932_v9 = vmin.f32 %v2900_v23, 6.0  ;;  %v2864_v29 = vpop.f32.mrb[60].mxu1  ;;  %v4064_v23 = vld [vmem:[%s7797_s7 + $0x8] sm:$0xff] }
 0x33d   : > { %v2995_v47 = vadd.f32 %v2931_v15, %v7966_v46  ;;  %v2865_v10 = vadd.f32 %v2864_v29, %v7343_v36  ;;  %v2866_v50 = vpop.f32.mrb[61].mxu1  ;;  %v3005_v15 = vld [vmem:[#allocation3 + $0x20] sm:$0xff]  ;;  %4175 = vmatprep.mubr.f32.mxu0 %v4064_v23  ;;  %v3006_v46 = vld [vmem:[#allocation3 + $0x28] sm:$0xff] }
 0x33e   : > { %v2996_v8 = vadd.f32 %v2932_v9, %v7967_v0  ;;  %v2867_v37 = vadd.f32 %v2866_v50, %v7343_v36  ;;  %v2868_v48 = vpop.f32.mrb[62].mxu1  ;;  %v3149_v62 = vadd.f32 %v2994_v13, %v2993_v42  ;;  %v7969_v36 = vld [vmem:[#allocation31_spill] sm:$0xff]  ;;  %v3373_v42 = vld [vmem:[%s7799_s9 + $0x88] sm:$0xff]  ;;  %v3372_v13 = vld [vmem:[%s7799_s9 + $0x80] sm:$0xff] }
 0x33f   : > { %v2901_v27 = vmax.f32 %v2865_v10, 0.0  ;;  %v2869_v35 = vadd.f32 %v2868_v48, %v7352_v53  ;;  %v2870_v22 = vpop.f32.mrb[63].mxu1  ;;  %v3375_v0 = vld [vmem:[%s7799_s9 + $0x98] sm:$0xff]  ;;  %v3374_v48 = vld [vmem:[%s7799_s9 + $0x90] sm:$0xff] }
 0x340   : > { %v2902_v41 = vmax.f32 %v2867_v37, 0.0  ;;  %v2871_v7 = vadd.f32 %v2870_v22, %v7352_v53  ;;  %3150 = vadd.xlane.f32.xlu1 %v3149_v62  ;;  %v3152_v26 = vadd.f32 %v2996_v8, %v2995_v47 }
 0x341   : > { %v2933_v34 = vmin.f32 %v2901_v27, 6.0  ;;  %v2903_v39 = vmax.f32 %v2869_v35, 0.0 }
 0x342   : > { %v2934_v57 = vmin.f32 %v2902_v41, 6.0  ;;  %v2904_v2 = vmax.f32 %v2871_v7, 0.0  ;;  %3153 = vadd.xlane.f32.xlu0 %v3152_v26  ;;  %v3377_v41 = vld [vmem:[%s7799_s9 + $0xa8] sm:$0xff]  ;;  %v3007_v7 = vld [vmem:[#allocation3 + $0x30] sm:$0xff] }
 0x343   : > { %v2997_v63 = vadd.f32 %v2933_v34, %v7968_v20  ;;  %v2935_v43 = vmin.f32 %v2903_v39, 6.0  ;;  %v3376_v34 = vld [vmem:[%s7799_s9 + $0xa0] sm:$0xff] }
 0x344   : > { %v2998_v11 = vadd.f32 %v2934_v57, %v7969_v36  ;;  %v2936_v49 = vmin.f32 %v2904_v2, 6.0  ;;  %v7448_v24 = vpop.f32.mrb[64].mxu1  ;;  %v3008_v2 = vld [vmem:[#allocation3 + $0x38] sm:$0xff] }
 0x345   : > { %v2999_v14 = vadd.f32 %v2935_v43, %v7970_v59  ;;  %v7450_v6 = vpop.f32.mrb[65].mxu1  ;;  %v3379_v36 = vld [vmem:[%s7799_s9 + $0xb8] sm:$0xff]  ;;  %v3378_v59 = vld [vmem:[%s7799_s9 + $0xb0] sm:$0xff] }
 0x346   : > { %v3000_v40 = vadd.f32 %v2936_v49, %v7971_v25  ;;  %v3155_v18 = vadd.f32 %v2998_v11, %v2997_v63 }
 0x348   : > { %3156 = vadd.xlane.f32.xlu1 %v3155_v18  ;;  %v3158_v53 = vadd.f32 %v3000_v40, %v2999_v14 }
 0x34a   : > { %3159 = vadd.xlane.f32.xlu0 %v3158_v53  ;;  %v3381_v53 = vld [vmem:[%s7799_s9 + $0xc8] sm:$0xff] }
 0x34c   : > { %3060 = vadd.xlane.f32.xlu1 %v7379_v30  ;;  %v7455_v30 = vpop.f32.mrb[66].mxu1 }
 0x34d   : > { %v7461_v32 = vpop.f32.mrb[67].mxu1 }
 0x34e   : > { %3063 = vadd.xlane.f32.xlu0 %v7383_v51  ;;  %v3368_v51 = vld [vmem:[%s7799_s9 + $0x60] sm:$0xff]  ;;  %v7463_v31 = vpop.f32.mrb[68].mxu1 }
 0x34f   : > { %3837 = vmatmul.mubr.f32.gmra.mrb[140].mxu1 %v3368_v51  ;;  %v7465_v19 = vpop.f32.mrb[69].mxu1 }
 0x350   : > { %v7470_v12 = vpop.f32.mrb[70].mxu1  ;;  %3841 = vmatprep.mubr.f32.mxu1 %v3371_v55  ;;  %v4570_v23 = vadd.f32 %v7465_v19, %v7463_v31  ;;  %v3012_v19 = vld [vmem:[#allocation3 + $0x58] sm:$0xff] }
 0x351   : > { %v7476_v33 = vpop.f32.mrb[71].mxu1 }
 0x353   : > { %3842 = vmatmul.mubr.f32.gmra.mrb[142].mxu1 %v3370_v61  ;;  %v4564_v61 = vadd.f32 %v7450_v6, %v7448_v24  ;;  %v3384_v6 = vld [vmem:[%s7799_s9 + $0xe0] sm:$0xff] }
 0x354   : > { %v7478_v60 = vpop.f32.mrb[72].mxu1  ;;  %3846 = vmatprep.mubr.f32.mxu1 %v3373_v42  ;;  %v4573_v42 = vadd.f32 %v7476_v33, %v7470_v12  ;;  %v3387_v33 = vld [vmem:[%s7799_s9 + $0xf8] sm:$0xff] }
 0x355   : > { %v7484_v28 = vpop.f32.mrb[73].mxu1 }
 0x357   : > { %3847 = vmatmul.mubr.f32.gmra.mrb[144].mxu1 %v3372_v13  ;;  %v3385_v13 = vld [vmem:[%s7799_s9 + $0xe8] sm:$0xff] }
 0x358   : > { %v7489_v1 = vpop.f32.mrb[74].mxu1  ;;  %3851 = vmatprep.mubr.f32.mxu1 %v3375_v0 }
 0x359   : > { %v7494_v9 = vpop.f32.mrb[75].mxu1 }
 0x35a   : > { %v4579_v24 = vadd.f32 %v7494_v9, %v7489_v1 }
 0x35b   : > { %3852 = vmatmul.mubr.f32.gmra.mrb[146].mxu1 %v3374_v48 }
 0x35c   : > { %v4580_v47 = vpop.f32.mrb[76].mxu1  ;;  %3856 = vmatprep.mubr.f32.mxu1 %v3377_v41 }
 0x35d   : > { %v3019_v44 = vpop.xlane.xlu0 %3018  ;;  %v4581_v50 = vpop.f32.mrb[77].mxu1 }
 0x35e   : > { %v3065_v52 = vadd.f32 %v3019_v44, %v3001_v5  ;;  %v3009_v5 = vld [vmem:[#allocation3 + $0x40] sm:$0xff] }
 0x35f   : > { %3857 = vmatmul.mubr.f32.gmra.mrb[148].mxu1 %v3376_v34 }
 0x360   : > { %3081 = vst.msk [vmem:[#allocation3] sm:$0xff] %vm467_vm0, %v3065_v52  ;;  %v4583_v37 = vpop.f32.mrb[78].mxu1  ;;  %3861 = vmatprep.mubr.f32.mxu1 %v3379_v36  ;;  %v3380_v52 = vld [vmem:[%s7799_s9 + $0xc0] sm:$0xff] }
 0x361   : > { %v3022_v38 = vpop.xlane.xlu0 %3021  ;;  %v4584_v27 = vpop.f32.mrb[79].mxu1  ;;  %v3013_v37 = vld [vmem:[#allocation3 + $0x60] sm:$0xff] }
 0x362   : > { %v3066_v45 = vadd.f32 %v3022_v38, %v3002_v3 }
 0x363   : > { %3862 = vmatmul.mubr.f32.gmra.mrb[150].mxu1 %v3378_v59 }
 0x364   : > { %3082 = vst.msk [vmem:[#allocation3 + $0x8] sm:$0xff] %vm467_vm0, %v3066_v45  ;;  %v4586_v35 = vpop.f32.mrb[80].mxu1  ;;  %3866 = vmatprep.mubr.f32.mxu1 %v3381_v53  ;;  %v3010_v45 = vld [vmem:[#allocation3 + $0x48] sm:$0xff] }
 0x365   : > { %v3025_v17 = vpop.xlane.xlu1 %3024  ;;  %v4587_v22 = vpop.f32.mrb[81].mxu1  ;;  %v3014_v35 = vld [vmem:[#allocation3 + $0x68] sm:$0xff] }
 0x366   : > { %v3067_v16 = vadd.f32 %v3025_v17, %v3003_v54  ;;  %v3383_v17 = vld [vmem:[%s7799_s9 + $0xd8] sm:$0xff] }
 0x367   : > { %v3028_v4 = vpop.xlane.xlu0 %3027  ;;  %3867 = vmatmul.mubr.f32.gmra.mrb[152].mxu1 %v3380_v52 }
 0x368   : > { %3083 = vst.msk [vmem:[#allocation3 + $0x10] sm:$0xff] %vm467_vm0, %v3067_v16  ;;  %v3068_v58 = vadd.f32 %v3028_v4, %v3004_v56  ;;  %v4589_v26 = vpop.f32.mrb[82].mxu1  ;;  %3871 = vmatprep.mubr.f32.mxu1 %v3383_v17  ;;  %v3382_v16 = vld [vmem:[%s7799_s9 + $0xd0] sm:$0xff] }
 0x369   : > { %v4590_v39 = vpop.f32.mrb[83].mxu1 }
 0x36a   : > { %3084 = vst.msk [vmem:[#allocation3 + $0x18] sm:$0xff] %vm467_vm0, %v3068_v58  ;;  %v4567_v58 = vadd.f32 %v7461_v32, %v7455_v30  ;;  %v3011_v30 = vld [vmem:[#allocation3 + $0x50] sm:$0xff] }
 0x36b   : > { %3872 = vmatmul.mubr.f32.gmra.mrb[154].mxu1 %v3382_v16  ;;  %v3100_v16 = vld [vmem:[#allocation3 + $0x98] sm:$0xff] }
 0x36c   : > { %v4592_v20 = vpop.f32.mrb[84].mxu1  ;;  %3876 = vmatprep.mubr.f32.mxu1 %v3385_v13 }
 0x36d   : > { %v3031_v29 = vpop.xlane.xlu1 %3030  ;;  %v4593_v43 = vpop.f32.mrb[85].mxu1 }
 0x36e   : > { %v3069_v10 = vadd.f32 %v3031_v29, %v3005_v15  ;;  %v4576_v29 = vadd.f32 %v7484_v28, %v7478_v60  ;;  %v3386_v28 = vld [vmem:[%s7799_s9 + $0xf0] sm:$0xff] }
 0x36f   : > { %v3034_v8 = vpop.xlane.xlu0 %3033  ;;  %3877 = vmatmul.mubr.f32.gmra.mrb[156].mxu1 %v3384_v6 }
 0x370   : > { %3085 = vst.msk [vmem:[#allocation3 + $0x20] sm:$0xff] %vm467_vm0, %v3069_v10  ;;  %v3070_v62 = vadd.f32 %v3034_v8, %v3006_v46  ;;  %v4595_v49 = vpop.f32.mrb[86].mxu1  ;;  %3881 = vmatprep.mubr.f32.mxu1 %v3387_v33  ;;  %v4088_v8 = vld [vmem:[%s7797_s7 + $0xc8] sm:$0xff] }
 0x371   : > { %v4596_v25 = vpop.f32.mrb[87].mxu1 }
 0x372   : > { %3086 = vst.msk [vmem:[#allocation3 + $0x28] sm:$0xff] %vm467_vm0, %v3070_v62 }
 0x373   : > { %3882 = vmatmul.mubr.f32.gmra.mrb[158].mxu1 %v3386_v28  ;;  %v3102_v28 = vld [vmem:[#allocation3 + $0xa8] sm:$0xff] }
 0x374   : > { %v4598_v40 = vpop.f32.mrb[88].mxu1  ;;  %4235 = vmatprep.mubr.f32.mxu1 %v4088_v8 }
 0x375   : > { %v3037_v57 = vpop.xlane.xlu1 %3036  ;;  %v4599_v18 = vpop.f32.mrb[89].mxu1  ;;  %v3097_v40 = vld [vmem:[#allocation3 + $0x80] sm:$0xff] }
 0x376   : > { %v3071_v63 = vadd.f32 %v3037_v57, %v3007_v7 }
 0x377   : > { %v3040_v11 = vpop.xlane.xlu0 %3039 }
 0x378   : > { %3087 = vst.msk [vmem:[#allocation3 + $0x30] sm:$0xff] %vm467_vm0, %v3071_v63  ;;  %v3072_v14 = vadd.f32 %v3040_v11, %v3008_v2  ;;  %v4601_v44 = vpop.f32.mrb[90].mxu1 }
 0x379   : > { %v4602_v3 = vpop.f32.mrb[91].mxu1  ;;  %v3098_v44 = vld [vmem:[#allocation3 + $0x88] sm:$0xff] }
 0x37a   : > { %3088 = vst.msk [vmem:[#allocation3 + $0x38] sm:$0xff] %vm467_vm0, %v3072_v14 }
 0x37c   : > { %v4604_v21 = vpop.f32.mrb[92].mxu1 }
 0x37d   : > { %v3043_v38 = vpop.xlane.xlu1 %3042  ;;  %v4605_v51 = vpop.f32.mrb[93].mxu1 }
 0x37e   : > { %v3073_v54 = vadd.f32 %v3043_v38, %v3009_v5  ;;  %v3099_v51 = vld [vmem:[#allocation3 + $0x90] sm:$0xff] }
 0x37f   : > { %v3046_v56 = vpop.xlane.xlu0 %3045 }
 0x380   : > { %3089 = vst.msk [vmem:[#allocation3 + $0x40] sm:$0xff] %vm467_vm0, %v3073_v54  ;;  %v3074_v55 = vadd.f32 %v3046_v56, %v3010_v45  ;;  %v4607_v4 = vpop.f32.mrb[94].mxu1 }
 0x381   : > { %v4608_v15 = vpop.f32.mrb[95].mxu1 }
 0x382   : > { %3090 = vst.msk [vmem:[#allocation3 + $0x48] sm:$0xff] %vm467_vm0, %v3074_v55  ;;  %v3999_v15 = vld [vmem:[#allocation3] sm:$0xff] }
 0x384   : > { %v4642_v32 = vpop.f32.mrb[96].mxu1 }
 0x385   : > { %v3049_v31 = vpop.xlane.xlu1 %3048  ;;  %v4643_v12 = vpop.f32.mrb[97].mxu1 }
 0x386   : > { %v3075_v46 = vadd.f32 %v3049_v31, %v3011_v30  ;;  %v4644_v60 = vadd.f32 %v4643_v12, %v4642_v32  ;;  %v3101_v31 = vld [vmem:[#allocation3 + $0xa0] sm:$0xff] }
 0x387   : > { %v3052_v1 = vpop.xlane.xlu0 %3051 }
 0x388   : > { %3091 = vst.msk [vmem:[#allocation3 + $0x50] sm:$0xff] %vm467_vm0, %v3075_v46  ;;  %v3076_v9 = vadd.f32 %v3052_v1, %v3012_v19  ;;  %v7557_v47 = vadd.f32 %v4644_v60, %v4564_v61  ;;  %v4645_v10 = vpop.f32.mrb[98].mxu1  ;;  %v4000_v61 = vld [vmem:[#allocation3 + $0x8] sm:$0xff]  ;;  %v4031_v19 = vmul.f32 0.00390625, %v3999_v15 }
 0x389   : > { %v4646_v50 = vpop.f32.mrb[99].mxu1 }
 0x38a   : > { %3092 = vst.msk [vmem:[#allocation3 + $0x58] sm:$0xff] %vm467_vm0, %v3076_v9  ;;  %v4647_v0 = vadd.f32 %v4646_v50, %v4645_v10  ;;  %v4002_v10 = vld [vmem:[#allocation3 + $0x18] sm:$0xff] }
 0x38c   : > { %v7563_v48 = vadd.f32 %v4647_v0, %v4567_v58  ;;  %v4648_v62 = vpop.f32.mrb[100].mxu1 }
 0x38d   : > { %v3055_v27 = vpop.xlane.xlu1 %3054  ;;  %v4649_v22 = vpop.f32.mrb[101].mxu1 }
 0x38e   : > { %v3077_v41 = vadd.f32 %v3055_v27, %v3013_v37  ;;  %v4650_v7 = vadd.f32 %v4649_v22, %v4648_v62  ;;  %v4001_v37 = vld [vmem:[#allocation3 + $0x10] sm:$0xff] }
 0x38f   : > { %v3058_v26 = vpop.xlane.xlu0 %3057 }
 0x390   : > { %3093 = vst.msk [vmem:[#allocation3 + $0x60] sm:$0xff] %vm467_vm0, %v3077_v41  ;;  %v3078_v34 = vadd.f32 %v3058_v26, %v3014_v35  ;;  %v7566_v39 = vadd.f32 %v4650_v7, %v4570_v23  ;;  %v4651_v57 = vpop.f32.mrb[102].mxu1  ;;  %v4034_v35 = vmul.f32 0.00390625, %v4002_v10  ;;  %v3103_v26 = vld [vmem:[#allocation3 + $0xb0] sm:$0xff] }
 0x391   : > { %v4652_v2 = vpop.f32.mrb[103].mxu1 }
 0x392   : > { %3094 = vst.msk [vmem:[#allocation3 + $0x68] sm:$0xff] %vm467_vm0, %v3078_v34  ;;  %v4653_v20 = vadd.f32 %v4652_v2, %v4651_v57  ;;  %v4033_v34 = vmul.f32 0.00390625, %v4001_v37 }
 0x394   : > { %v7569_v63 = vadd.f32 %v4653_v20, %v4573_v42  ;;  %v4654_v43 = vpop.f32.mrb[104].mxu1 }
 0x395   : > { %v4655_v36 = vpop.f32.mrb[105].mxu1 }
 0x396   : > { %v4656_v11 = vadd.f32 %v4655_v36, %v4654_v43  ;;  %v4952_v43 = vpack.c.bf16 %v4034_v35, %v4033_v34  ;;  %v3104_v36 = vld [vmem:[#allocation3 + $0xb8] sm:$0xff] }
 0x398   : > { %v7571_v49 = vadd.f32 %v4656_v11, %v4576_v29  ;;  %v4657_v59 = vpop.f32.mrb[106].mxu1 }
 0x399   : > { %v4658_v14 = vpop.f32.mrb[107].mxu1 }
 0x39a   : > { %v4659_v25 = vadd.f32 %v4658_v14, %v4657_v59  ;;  %v4004_v14 = vld [vmem:[#allocation3 + $0x28] sm:$0xff] }
 0x39c   : > { %v7573_v18 = vadd.f32 %v4659_v25, %v4579_v24  ;;  %v4660_v53 = vpop.f32.mrb[108].mxu1  ;;  %v4032_v24 = vmul.f32 0.00390625, %v4000_v61 }
 0x39d   : > { %v3115_v5 = vpop.xlane.xlu0 %3114  ;;  %v4661_v52 = vpop.f32.mrb[109].mxu1 }
 0x39e   : > { %v3161_v3 = vadd.f32 %v3115_v5, %v3097_v40  ;;  %v4948_v60 = vpack.c.bf16 %v4032_v24, %v4031_v19  ;;  %v4003_v5 = vld [vmem:[#allocation3 + $0x20] sm:$0xff] }
 0x39f   : > { %v3118_v38 = vpop.xlane.xlu1 %3117 }
 0x3a0   : > { %3177 = vst.msk [vmem:[#allocation3 + $0x80] sm:$0xff] %vm467_vm0, %v3161_v3  ;;  %v3162_v45 = vadd.f32 %v3118_v38, %v3098_v44  ;;  %v4663_v21 = vpop.f32.mrb[110].mxu1  ;;  %v4036_v3 = vmul.f32 0.00390625, %v4004_v14  ;;  %v3888_v14 = vld [vmem:[%s7801_s11 + $0x8] sm:$0xff] }
 0x3a1   : > { %v4664_v54 = vpop.f32.mrb[111].mxu1 }
 0x3a2   : > { %3178 = vst.msk [vmem:[#allocation3 + $0x88] sm:$0xff] %vm467_vm0, %v3162_v45  ;;  %v3105_v54 = vld [vmem:[#allocation3 + $0xc0] sm:$0xff] }
 0x3a4   : > { %v4666_v17 = vpop.f32.mrb[112].mxu1 }
 0x3a5   : > { %v3121_v56 = vpop.xlane.xlu1 %3120  ;;  %v4667_v55 = vpop.f32.mrb[113].mxu1 }
 0x3a6   : > { %v3163_v4 = vadd.f32 %v3121_v56, %v3099_v51  ;;  %v4035_v51 = vmul.f32 0.00390625, %v4003_v5 }
 0x3a7   : > { %v3124_v58 = vpop.xlane.xlu0 %3123  ;;  %v4015_v23 = vld [vmem:[#allocation3 + $0x80] sm:$0xff] }
 0x3a8   : > { %3179 = vst.msk [vmem:[#allocation3 + $0x90] sm:$0xff] %vm467_vm0, %v3163_v4  ;;  %v3164_v42 = vadd.f32 %v3124_v58, %v3100_v16  ;;  %v4669_v13 = vpop.f32.mrb[114].mxu1  ;;  %v4047_v30 = vmul.f32 0.00390625, %v4015_v23  ;;  %v4956_v55 = vpack.c.bf16 %v4036_v3, %v4035_v51  ;;  %v3106_v4 = vld [vmem:[#allocation3 + $0xc8] sm:$0xff]  ;;  %v4006_v23 = vld [vmem:[#allocation3 + $0x38] sm:$0xff] }
 0x3a9   : > { %v4016_v29 = vld [vmem:[#allocation3 + $0x88] sm:$0xff]  ;;  %v4670_v6 = vpop.f32.mrb[115].mxu1 }
 0x3aa   : > { %3180 = vst.msk [vmem:[#allocation3 + $0x98] sm:$0xff] %vm467_vm0, %v3164_v42  ;;  %v4048_v32 = vmul.f32 0.00390625, %v4016_v29  ;;  %v4005_v29 = vld [vmem:[#allocation3 + $0x30] sm:$0xff] }
 0x3ac   : > { %v4946_v12 = vpack.c.bf16 %v4048_v32, %v4047_v30  ;;  %v4672_v33 = vpop.f32.mrb[116].mxu1  ;;  %v4038_v30 = vmul.f32 0.00390625, %v4006_v23 }
 0x3ad   : > { %v3127_v46 = vpop.xlane.xlu1 %3126  ;;  %v4673_v1 = vpop.f32.mrb[117].mxu1  ;;  %v4037_v33 = vmul.f32 0.00390625, %v4005_v29 }
 0x3ae   : > { %v3165_v9 = vadd.f32 %v3127_v46, %v3101_v31  ;;  %4947 = vmatprep.subr.bf16.mxu0 %v4946_v12  ;;  %4978 = vmatprep.subr.bf16.mxu1 %v4946_v12  ;;  %v3107_v12 = vld [vmem:[#allocation3 + $0xd0] sm:$0xff] }
 0x3af   : > { %4949 = vmatpush3.bf16.msra.mxu0 %v4948_v60  ;;  %v3130_v50 = vpop.xlane.xlu0 %3129  ;;  %4986 = vmatpush3.bf16.msra.mxu1 %v4948_v60  ;;  %v4017_v0 = vld [vmem:[#allocation3 + $0x90] sm:$0xff]  ;;  %v4960_v1 = vpack.c.bf16 %v4038_v30, %v4037_v33 }
 0x3b0   : > { %3181 = vst.msk [vmem:[#allocation3 + $0xa0] sm:$0xff] %vm467_vm0, %v3165_v9  ;;  %v3166_v8 = vadd.f32 %v3130_v50, %v3102_v28  ;;  %v4675_v62 = vpop.f32.mrb[118].mxu1  ;;  %v4049_v41 = vmul.f32 0.00390625, %v4017_v0  ;;  %v3108_v9 = vld [vmem:[#allocation3 + $0xd8] sm:$0xff]  ;;  %v4008_v0 = vld [vmem:[#allocation3 + $0x48] sm:$0xff]  ;;  %v3111_v30 = vld [vmem:[#allocation3 + $0xf0] sm:$0xff] }
 0x3b1   : > { %v4018_v27 = vld [vmem:[#allocation3 + $0x98] sm:$0xff]  ;;  %v4676_v22 = vpop.f32.mrb[119].mxu1  ;;  %v4040_v34 = vmul.f32 0.00390625, %v4008_v0 }
 0x3b2   : > { %3182 = vst.msk [vmem:[#allocation3 + $0xa8] sm:$0xff] %vm467_vm0, %v3166_v8  ;;  %v4050_v7 = vmul.f32 0.00390625, %v4018_v27  ;;  %v3887_v27 = vld [vmem:[%s7801_s11] sm:$0xff] }
 0x3b3   : > { %v4007_v22 = vld [vmem:[#allocation3 + $0x40] sm:$0xff] }
 0x3b4   : > { %v4950_v57 = vpack.c.bf16 %v4050_v7, %v4049_v41  ;;  %v4678_v2 = vpop.f32.mrb[120].mxu1 }
 0x3b5   : > { %v3133_v20 = vpop.xlane.xlu1 %3132  ;;  %v4679_v11 = vpop.f32.mrb[121].mxu1 }
 0x3b6   : > { %v3167_v59 = vadd.f32 %v3133_v20, %v3103_v26  ;;  %4951 = vmatprep.subr.bf16.mxu0 %v4950_v57  ;;  %4979 = vmatprep.subr.bf16.mxu1 %v4950_v57  ;;  %v3109_v11 = vld [vmem:[#allocation3 + $0xe0] sm:$0xff] }
 0x3b7   : > { %4953 = vmatpush3.bf16.msra.mxu0 %v4952_v43  ;;  %v3136_v25 = vpop.xlane.xlu0 %3135  ;;  %4987 = vmatpush3.bf16.msra.mxu1 %v4952_v43  ;;  %v4019_v40 = vld [vmem:[#allocation3 + $0xa0] sm:$0xff] }
 0x3b8   : > { %3183 = vst.msk [vmem:[#allocation3 + $0xb0] sm:$0xff] %vm467_vm0, %v3167_v59  ;;  %v3168_v53 = vadd.f32 %v3136_v25, %v3104_v36  ;;  %v4681_v44 = vpop.f32.mrb[122].mxu1  ;;  %v4051_v45 = vmul.f32 0.00390625, %v4019_v40  ;;  %v4039_v59 = vmul.f32 0.00390625, %v4007_v22 }
 0x3b9   : > { %v4020_v52 = vld [vmem:[#allocation3 + $0xa8] sm:$0xff]  ;;  %v4682_v38 = vpop.f32.mrb[123].mxu1 }
 0x3ba   : > { %3184 = vst.msk [vmem:[#allocation3 + $0xb8] sm:$0xff] %vm467_vm0, %v3168_v53  ;;  %v4052_v21 = vmul.f32 0.00390625, %v4020_v52  ;;  %v4964_v44 = vpack.c.bf16 %v4040_v34, %v4039_v59  ;;  %v3110_v52 = vld [vmem:[#allocation3 + $0xe8] sm:$0xff] }
 0x3bc   : > { %v4954_v17 = vpack.c.bf16 %v4052_v21, %v4051_v45  ;;  %v4684_v56 = vpop.f32.mrb[124].mxu1  ;;  %v4010_v45 = vld [vmem:[#allocation3 + $0x58] sm:$0xff] }
 0x3bd   : > { %v3139_v16 = vpop.xlane.xlu1 %3138  ;;  %v4685_v61 = vpop.f32.mrb[125].mxu1  ;;  %v4042_v23 = vmul.f32 0.00390625, %v4010_v45 }
 0x3be   : > { %v3169_v58 = vadd.f32 %v3139_v16, %v3105_v54  ;;  %4955 = vmatprep.subr.bf16.mxu0 %v4954_v17  ;;  %4980 = vmatprep.subr.bf16.mxu1 %v4954_v17 }
 0x3bf   : > { %4957 = vmatpush3.bf16.msra.mxu0 %v4956_v55  ;;  %v3142_v42 = vpop.xlane.xlu0 %3141  ;;  %4988 = vmatpush3.bf16.msra.mxu1 %v4956_v55  ;;  %v4021_v15 = vld [vmem:[#allocation3 + $0xb0] sm:$0xff] }
 0x3c0   : > { %3185 = vst.msk [vmem:[#allocation3 + $0xc0] sm:$0xff] %vm467_vm0, %v3169_v58  ;;  %v3170_v13 = vadd.f32 %v3142_v42, %v3106_v4  ;;  %v4687_v24 = vpop.f32.mrb[126].mxu1  ;;  %v4053_v31 = vmul.f32 0.00390625, %v4021_v15  ;;  %v3889_v4 = vld [vmem:[%s7801_s11 + $0x10] sm:$0xff] }
 0x3c1   : > { %v4022_v6 = vld [vmem:[#allocation3 + $0xb8] sm:$0xff]  ;;  %v4688_v32 = vpop.f32.mrb[127].mxu1 }
 0x3c2   : > { %3186 = vst.msk [vmem:[#allocation3 + $0xc8] sm:$0xff] %vm467_vm0, %v3170_v13  ;;  %v4054_v19 = vmul.f32 0.00390625, %v4022_v6 }
 0x3c4   : > { %v4958_v46 = vpack.c.bf16 %v4054_v19, %v4053_v31  ;;  %v4722_v60 = vpop.f32.mrb[128].mxu1  ;;  %v3890_v19 = vld [vmem:[%s7801_s11 + $0x18] sm:$0xff] }
 0x3c5   : > { %v3145_v28 = vpop.xlane.xlu1 %3144  ;;  %v4723_v10 = vpop.f32.mrb[129].mxu1 }
 0x3c6   : > { %v3171_v50 = vadd.f32 %v3145_v28, %v3107_v12  ;;  %4959 = vmatprep.subr.bf16.mxu0 %v4958_v46  ;;  %4981 = vmatprep.subr.bf16.mxu1 %v4958_v46  ;;  %v4724_v8 = vadd.f32 %v4723_v10, %v4722_v60  ;;  %v3112_v28 = vld [vmem:[#allocation3 + $0xf8] sm:$0xff] }
 0x3c7   : > { %4961 = vmatpush3.bf16.msra.mxu0 %v4960_v1  ;;  %v3148_v37 = vpop.xlane.xlu0 %3147  ;;  %4989 = vmatpush3.bf16.msra.mxu1 %v4960_v1  ;;  %v4023_v62 = vld [vmem:[#allocation3 + $0xc0] sm:$0xff] }
 0x3c8   : > { %3187 = vst.msk [vmem:[#allocation3 + $0xd0] sm:$0xff] %vm467_vm0, %v3171_v50  ;;  %v3172_v35 = vadd.f32 %v3148_v37, %v3108_v9  ;;  %v3809_v41 = vadd.f32 %v4724_v8, %v7557_v47  ;;  %v4725_v7 = vpop.f32.mrb[130].mxu1  ;;  %v4055_v2 = vmul.f32 0.00390625, %v4023_v62  ;;  %v4012_v50 = vld [vmem:[#allocation3 + $0x68] sm:$0xff]  ;;  %v3015_v62 = vld [vmem:[#allocation3 + $0x70] sm:$0xff] }
 0x3c9   : > { %v4024_v26 = vld [vmem:[#allocation3 + $0xc8] sm:$0xff]  ;;  %v4726_v57 = vpop.f32.mrb[131].mxu1 }
 0x3ca   : > { %3188 = vst.msk [vmem:[#allocation3 + $0xd8] sm:$0xff] %vm467_vm0, %v3172_v35  ;;  %v4056_v20 = vmul.f32 0.00390625, %v4024_v26  ;;  %v3903_v43 = vadd.f32 %v3887_v27, %v3809_v41  ;;  %v4727_v36 = vadd.f32 %v4726_v57, %v4725_v7  ;;  %v4011_v41 = vld [vmem:[#allocation3 + $0x60] sm:$0xff] }
 0x3cc   : > { %v4962_v25 = vpack.c.bf16 %v4056_v20, %v4055_v2  ;;  %v3919_v40 = vsub.f32 0.0, %v3903_v43  ;;  %v3814_v47 = vadd.f32 %v4727_v36, %v7563_v48  ;;  %v4728_v53 = vpop.f32.mrb[132].mxu1  ;;  %v4009_v48 = vld [vmem:[#allocation3 + $0x50] sm:$0xff]  ;;  %v3016_v2 = vld [vmem:[#allocation3 + $0x78] sm:$0xff]  ;;  %v4044_v36 = vmul.f32 0.00390625, %v4012_v50  ;;  %v4091_v50 = vld [vmem:[%s7797_s7 + $0xe0] sm:$0xff] }
 0x3cd   : > { %v3151_v5 = vpop.xlane.xlu1 %3150  ;;  %v4729_v3 = vpop.f32.mrb[133].mxu1  ;;  %v4041_v32 = vmul.f32 0.00390625, %v4009_v48 }
 0x3ce   : > { %v3173_v38 = vadd.f32 %v3151_v5, %v3109_v11  ;;  %4963 = vmatprep.subr.bf16.mxu0 %v4962_v25  ;;  %4982 = vmatprep.subr.bf16.mxu1 %v4962_v25  ;;  %v3935_v21 = vmul.f32 1.442695, %v3919_v40  ;;  %v3904_v54 = vadd.f32 %v3888_v14, %v3814_v47  ;;  %v4730_v51 = vadd.f32 %v4729_v3, %v4728_v53 }
 0x3cf   : > { %4965 = vmatpush3.bf16.msra.mxu0 %v4964_v44  ;;  %v3154_v17 = vpop.xlane.xlu0 %3153  ;;  %4990 = vmatpush3.bf16.msra.mxu1 %v4964_v44  ;;  %v4025_v56 = vld [vmem:[#allocation3 + $0xd0] sm:$0xff]  ;;  %v4968_v60 = vpack.c.bf16 %v4042_v23, %v4041_v32  ;;  %v4043_v5 = vmul.f32 0.00390625, %v4011_v41  ;;  %v4063_v32 = vld [vmem:[%s7797_s7] sm:$0xff]  ;;  %v4074_v41 = vld [vmem:[%s7797_s7 + $0x58] sm:$0xff] }
 0x3d0   : > { %3189 = vst.msk [vmem:[#allocation3 + $0xe0] sm:$0xff] %vm467_vm0, %v3173_v38  ;;  %v3174_v16 = vadd.f32 %v3154_v17, %v3110_v52  ;;  %5262 = vpow2.f32 %v3935_v21  ;;  %v3920_v55 = vsub.f32 0.0, %v3904_v54  ;;  %v4731_v61 = vpop.f32.mrb[134].mxu1  ;;  %v3819_v42 = vadd.f32 %v4730_v51, %v7566_v39 }
 0x3d1   : > { %v4026_v58 = vld [vmem:[#allocation3 + $0xd8] sm:$0xff]  ;;  %v4732_v15 = vpop.f32.mrb[135].mxu1  ;;  %v4057_v13 = vmul.f32 0.00390625, %v4025_v56  ;;  %v4972_v45 = vpack.c.bf16 %v4044_v36, %v4043_v5 }
 0x3d2   : > { %3190 = vst.msk [vmem:[#allocation3 + $0xe8] sm:$0xff] %vm467_vm0, %v3174_v16  ;;  %v4058_v29 = vmul.f32 0.00390625, %v4026_v58  ;;  %v3937_v24 = vmul.f32 1.442695, %v3920_v55  ;;  %v4733_v6 = vadd.f32 %v4732_v15, %v4731_v61  ;;  %v3905_v31 = vadd.f32 %v3889_v4, %v3819_v42  ;;  %v4082_v36 = vld [vmem:[%s7797_s7 + $0x98] sm:$0xff] }
 0x3d4   : > { %v4966_v12 = vpack.c.bf16 %v4058_v29, %v4057_v13  ;;  %5264 = vpow2.f32 %v3937_v24  ;;  %v3824_v33 = vadd.f32 %v4733_v6, %v7569_v63  ;;  %v4734_v46 = vpop.f32.mrb[136].mxu1  ;;  %v3921_v1 = vsub.f32 0.0, %v3905_v31  ;;  %v3891_v63 = vld [vmem:[%s7801_s11 + $0x20] sm:$0xff] }
 0x3d5   : > { %v3157_v39 = vpop.xlane.xlu1 %3156  ;;  %v4735_v9 = vpop.f32.mrb[137].mxu1  ;;  %v4087_v31 = vld [vmem:[%s7797_s7 + $0xc0] sm:$0xff] }
 0x3d6   : > { %v3175_v10 = vadd.f32 %v3157_v39, %v3111_v30  ;;  %4967 = vmatprep.subr.bf16.mxu0 %v4966_v12  ;;  %4983 = vmatprep.subr.bf16.mxu1 %v4966_v12  ;;  %v3906_v0 = vadd.f32 %v3890_v19, %v3824_v33  ;;  %v4736_v8 = vadd.f32 %v4735_v9, %v4734_v46  ;;  %v3939_v35 = vmul.f32 1.442695, %v3921_v1  ;;  %v4066_v12 = vld [vmem:[%s7797_s7 + $0x18] sm:$0xff]  ;;  %v4065_v39 = vld [vmem:[%s7797_s7 + $0x10] sm:$0xff]  ;;  %v4092_v1 = vld [vmem:[%s7797_s7 + $0xe8] sm:$0xff] }
 0x3d7   : > { %4969 = vmatpush3.bf16.msra.mxu0 %v4968_v60  ;;  %v3160_v37 = vpop.xlane.xlu0 %3159  ;;  %4991 = vmatpush3.bf16.msra.mxu1 %v4968_v60  ;;  %v4027_v27 = vld [vmem:[#allocation3 + $0xe0] sm:$0xff]  ;;  %v4090_v33 = vld [vmem:[%s7797_s7 + $0xd8] sm:$0xff]  ;;  %v4089_v60 = vld [vmem:[%s7797_s7 + $0xd0] sm:$0xff] }
 0x3d8   : > { %3191 = vst.msk [vmem:[#allocation3 + $0xf0] sm:$0xff] %vm467_vm0, %v3175_v10  ;;  %v3176_v22 = vadd.f32 %v3160_v37, %v3112_v28  ;;  %v3922_v7 = vsub.f32 0.0, %v3906_v0  ;;  %v3829_v26 = vadd.f32 %v4736_v8, %v7571_v49  ;;  %v4737_v34 = vpop.f32.mrb[138].mxu1  ;;  %v4059_v43 = vmul.f32 0.00390625, %v4027_v27  ;;  %v4068_v28 = vld [vmem:[%s7797_s7 + $0x28] sm:$0xff]  ;;  %v4067_v10 = vld [vmem:[%s7797_s7 + $0x20] sm:$0xff] }
 0x3d9   : > { %v3061_v57 = vpop.xlane.xlu1 %3060  ;;  %v4028_v20 = vld [vmem:[#allocation3 + $0xe8] sm:$0xff]  ;;  %5266 = vpow2.f32 %v3939_v35  ;;  %v4738_v11 = vpop.f32.mrb[139].mxu1  ;;  %v4070_v8 = vld [vmem:[%s7797_s7 + $0x38] sm:$0xff]  ;;  %v4093_v27 = vld [vmem:[%s7797_s7 + $0xf0] sm:$0xff] }
 0x3da   : > { %v5263_v59 = vpop.eup %5262  ;;  %3192 = vst.msk [vmem:[#allocation3 + $0xf8] sm:$0xff] %vm467_vm0, %v3176_v22  ;;  %v3079_v14 = vadd.f32 %v3061_v57, %v3015_v62  ;;  %v4060_v25 = vmul.f32 0.00390625, %v4028_v20  ;;  %v3941_v40 = vmul.f32 1.442695, %v3922_v7  ;;  %v3907_v47 = vadd.f32 %v3891_v63, %v3829_v26  ;;  %v4094_v37 = vld [vmem:[%s7797_s7 + $0xf8] sm:$0xff]  ;;  %v4069_v62 = vld [vmem:[%s7797_s7 + $0x30] sm:$0xff] }
 0x3db   : > { %v3064_v53 = vpop.xlane.xlu0 %3063  ;;  %v3967_v44 = vadd.f32 1.0, %v5263_v59  ;;  %v4739_v52 = vadd.f32 %v4738_v11, %v4737_v34  ;;  %v4072_v63 = vld [vmem:[%s7797_s7 + $0x48] sm:$0xff]  ;;  %v4071_v22 = vld [vmem:[%s7797_s7 + $0x40] sm:$0xff]  ;;  %v4073_v7 = vld [vmem:[%s7797_s7 + $0x50] sm:$0xff] }
 0x3dc   : > { %3095 = vst.msk [vmem:[#allocation3 + $0x70] sm:$0xff] %vm467_vm0, %v3079_v14  ;;  %v3080_v49 = vadd.f32 %v3064_v53, %v3016_v2  ;;  %v4970_v3 = vpack.c.bf16 %v4060_v25, %v4059_v43  ;;  %5268 = vpow2.f32 %v3941_v40  ;;  %v3923_v38 = vsub.f32 0.0, %v3907_v47  ;;  %v4076_v26 = vld [vmem:[%s7797_s7 + $0x68] sm:$0xff]  ;;  %v4075_v34 = vld [vmem:[%s7797_s7 + $0x60] sm:$0xff]  ;;  %v4078_v57 = vld [vmem:[%s7797_s7 + $0x78] sm:$0xff] }
 0x3dd   : > { %5270 = vrcp.f32 %v3967_v44  ;;  %v7613_v21 = vadd.f32 %v4739_v52, %v7573_v18  ;;  %v4077_v2 = vld [vmem:[%s7797_s7 + $0x70] sm:$0xff]  ;;  %v4080_v20 = vld [vmem:[%s7797_s7 + $0x88] sm:$0xff]  ;;  %v4079_v43 = vld [vmem:[%s7797_s7 + $0x80] sm:$0xff] }
 0x3de   : > { %v5265_v54 = vpop.eup %5264  ;;  %3096 = vst.msk [vmem:[#allocation3 + $0x78] sm:$0xff] %vm467_vm0, %v3080_v49  ;;  %4971 = vmatprep.subr.bf16.mxu0 %v4970_v3  ;;  %4984 = vmatprep.subr.bf16.mxu1 %v4970_v3  ;;  %v3943_v51 = vmul.f32 1.442695, %v3923_v38  ;;  %v4081_v11 = vld [vmem:[%s7797_s7 + $0x90] sm:$0xff]  ;;  %v4084_v59 = vld [vmem:[%s7797_s7 + $0xa8] sm:$0xff]  ;;  %v4083_v14 = vld [vmem:[%s7797_s7 + $0xa0] sm:$0xff] }
 0x3df   : > { %4973 = vmatpush3.bf16.msra.mxu0 %v4972_v45  ;;  %4992 = vmatpush3.bf16.msra.mxu1 %v4972_v45  ;;  %v4029_v17 = vld [vmem:[#allocation3 + $0xf0] sm:$0xff]  ;;  %v3968_v56 = vadd.f32 1.0, %v5265_v54  ;;  %v4086_v25 = vld [vmem:[%s7797_s7 + $0xb8] sm:$0xff] }
 0x3e0   : > { %5272 = vpow2.f32 %v3943_v51  ;;  %v4061_v48 = vmul.f32 0.00390625, %v4029_v17  ;;  %v4085_v40 = vld [vmem:[%s7797_s7 + $0xb0] sm:$0xff] }
 0x3e1   : > { %v4030_v16 = vld [vmem:[#allocation3 + $0xf8] sm:$0xff]  ;;  %5274 = vrcp.f32 %v3968_v56 }
 0x3e2   : > { %v4062_v55 = vmul.f32 0.00390625, %v4030_v16 }
 0x3e3   : > { %v5267_v4 = vpop.eup %5266  ;;  %v4013_v61 = vld [vmem:[#allocation3 + $0x70] sm:$0xff] }
 0x3e4   : > { %v4974_v18 = vpack.c.bf16 %v4062_v55, %v4061_v48  ;;  %v3969_v58 = vadd.f32 1.0, %v5267_v4  ;;  %v4045_v15 = vmul.f32 0.00390625, %v4013_v61 }
 0x3e5   : > { %v4014_v23 = vld [vmem:[#allocation3 + $0x78] sm:$0xff] }
 0x3e6   : > { %v5269_v42 = vpop.eup %5268  ;;  %4975 = vmatprep.subr.bf16.mxu0 %v4974_v18  ;;  %4985 = vmatprep.subr.bf16.mxu1 %v4974_v18  ;;  %v4046_v13 = vmul.f32 0.00390625, %v4014_v23  ;;  %5276 = vrcp.f32 %v3969_v58  ;;  %v3892_v23 = vld [vmem:[%s7801_s11 + $0x28] sm:$0xff] }
 0x3e7   : > { %v5271_v29 = vpop.eup %5270  ;;  %v3970_v24 = vadd.f32 1.0, %v5269_v42  ;;  %v3908_v42 = vadd.f32 %v3892_v23, %v7613_v21  ;;  %v4108_v21 = vld [vmem:[%s7798_s8 + $0x68] sm:$0xff] }
 0x3e8   : > { %v4976_v6 = vpack.c.bf16 %v4046_v13, %v4045_v15  ;;  %4337 = vst.msk [vmem:[%s7620_s15] sm:$0xff] %vm467_vm0, %v5271_v29 }
 0x3e9   : > { %5278 = vrcp.f32 %v3970_v24  ;;  %v3924_v15 = vsub.f32 0.0, %v3908_v42 }
 0x3ea   : > { %v5273_v30 = vpop.eup %5272  ;;  %4977 = vmatpush3.bf16.msra.mxu0 %v4976_v6  ;;  %4993 = vmatpush3.bf16.msra.mxu1 %v4976_v6 }
 0x3eb   : > { %v5275_v19 = vpop.eup %5274  ;;  %v3971_v46 = vadd.f32 1.0, %v5273_v30  ;;  %v3945_v13 = vmul.f32 1.442695, %v3924_v15  ;;  %v4107_v30 = vld [vmem:[%s7798_s8 + $0x60] sm:$0xff] }
 0x3ec   : > { %4338 = vst.msk [vmem:[%s7620_s15 + $0x8] sm:$0xff] %vm467_vm0, %v5275_v19 }
 0x3ed   : > { %4176 = vmatmul.mubr.f32.vlgmr.msra.gmra.mrb[64].mxu0 %v4063_v32  ;;  %4236 = vmatmul.mubr.f32.vlgmr.msra.gmra.mrb[160].mxu1 %v4087_v31  ;;  %5280 = vrcp.f32 %v3971_v46 }
 0x3ee   : > { %4180 = vmatprep.mubr.f32.mxu0 %v4066_v12  ;;  %4240 = vmatprep.mubr.f32.mxu1 %v4090_v33  ;;  %5282 = vpow2.f32 %v3945_v13 }
 0x3f0   : > { %v5277_v9 = vpop.eup %5276 }
 0x3f1   : > { %4181 = vmatmul.mubr.f32.gmra.mrb[66].mxu0 %v4065_v39  ;;  %4241 = vmatmul.mubr.f32.gmra.mrb[162].mxu1 %v4089_v60  ;;  %4339 = vst.msk [vmem:[%s7620_s15 + $0x10] sm:$0xff] %vm467_vm0, %v5277_v9 }
 0x3f2   : > { %4185 = vmatprep.mubr.f32.mxu0 %v4068_v28  ;;  %4245 = vmatprep.mubr.f32.mxu1 %v4092_v1 }
 0x3f3   : > { %v5279_v0 = vpop.eup %5278 }
 0x3f4   : > { %4340 = vst.msk [vmem:[%s7620_s15 + $0x18] sm:$0xff] %vm467_vm0, %v5279_v0 }
 0x3f5   : > { %4186 = vmatmul.mubr.f32.gmra.mrb[68].mxu0 %v4067_v10  ;;  %4246 = vmatmul.mubr.f32.gmra.mrb[164].mxu1 %v4091_v50 }
 0x3f6   : > { %4190 = vmatprep.mubr.f32.mxu0 %v4070_v8  ;;  %4250 = vmatprep.mubr.f32.mxu1 %v4094_v37  ;;  %v4109_v8 = vld [vmem:[%s7798_s8 + $0x70] sm:$0xff] }
 0x3f7   : > { %v5281_v35 = vpop.eup %5280 }
 0x3f8   : > { %4341 = vst.msk [vmem:[%s7620_s15 + $0x20] sm:$0xff] %vm467_vm0, %v5281_v35  ;;  %v5283_v35 = vpop.eup %5282 }
 0x3f9   : > { %4191 = vmatmul.mubr.f32.gmra.mrb[70].mxu0 %v4069_v62  ;;  %4251 = vmatmul.mubr.f32.gmra.mrb[166].mxu1 %v4093_v27 }
 0x3fa   : > { %4195 = vmatprep.mubr.f32.mxu0 %v4072_v63 }
 0x3fd   : > { %4196 = vmatmul.mubr.f32.gmra.mrb[72].mxu0 %v4071_v22 }
 0x3fe   : > { %4200 = vmatprep.mubr.f32.mxu0 %v4074_v41 }
 0x401   : > { %4201 = vmatmul.mubr.f32.gmra.mrb[74].mxu0 %v4073_v7 }
 0x402   : > { %4205 = vmatprep.mubr.f32.mxu0 %v4076_v26 }
 0x405   : > { %4206 = vmatmul.mubr.f32.gmra.mrb[76].mxu0 %v4075_v34  ;;  %v4110_v34 = vld [vmem:[%s7798_s8 + $0x78] sm:$0xff] }
 0x406   : > { %4210 = vmatprep.mubr.f32.mxu0 %v4078_v57 }
 0x409   : > { %4211 = vmatmul.mubr.f32.gmra.mrb[78].mxu0 %v4077_v2 }
 0x40a   : > { %4215 = vmatprep.mubr.f32.mxu0 %v4080_v20 }
 0x40d   : > { %4216 = vmatmul.mubr.f32.gmra.mrb[80].mxu0 %v4079_v43  ;;  %v3972_v43 = vadd.f32 1.0, %v5283_v35 }
 0x40e   : > { %4220 = vmatprep.mubr.f32.mxu0 %v4082_v36  ;;  %v4288_v36 = vlaneseq }
 0x40f   : > { %5284 = vrcp.f32 %v3972_v43 }
 0x411   : > { %4221 = vmatmul.mubr.f32.gmra.mrb[82].mxu0 %v4081_v11 }
 0x412   : > { %4225 = vmatprep.mubr.f32.mxu0 %v4084_v59 }
 0x415   : > { %4226 = vmatmul.mubr.f32.gmra.mrb[84].mxu0 %v4083_v14 }
 0x416   : > { %4230 = vmatprep.mubr.f32.mxu0 %v4086_v25 }
 0x419   : > { %4231 = vmatmul.mubr.f32.gmra.mrb[86].mxu0 %v4085_v40 }
 0x422   : > { %v4740_v47 = vpop.f32.mrb[140].mxu1 }
 0x423   : > { %v4741_v53 = vpop.f32.mrb[141].mxu1  ;;  %v4289_v47 = vshrl.u32 %v4288_v36, 7 }
 0x426   : > { %v4743_v5 = vpop.f32.mrb[142].mxu1 }
 0x427   : > { %v4744_v44 = vpop.f32.mrb[143].mxu1 }
 0x428   : > { %v4100_v44 = vld [vmem:[%s7798_s8 + $0x28] sm:$0xff] }
 0x42a   : > { %v4746_v52 = vpop.f32.mrb[144].mxu1 }
 0x42b   : > { %v4747_v49 = vpop.f32.mrb[145].mxu1 }
 0x42e   : > { %v4749_v3 = vpop.f32.mrb[146].mxu1 }
 0x42f   : > { %v4750_v38 = vpop.f32.mrb[147].mxu1  ;;  %v4294_v3 = vadd.s32 40, %v4289_v47 }
 0x431   : > { %vm4310_vm1 = vcmp.lt.s32.totalorder %v4294_v3, 42 }
 0x432   : > { %v4752_v45 = vpop.f32.mrb[148].mxu1 }
 0x433   : > { %v4753_v54 = vpop.f32.mrb[149].mxu1 }
 0x434   : > { %v4101_v54 = vld [vmem:[%s7798_s8 + $0x30] sm:$0xff] }
 0x436   : > { %v4755_v51 = vpop.f32.mrb[150].mxu1 }
 0x437   : > { %v4756_v17 = vpop.f32.mrb[151].mxu1 }
 0x43a   : > { %v4758_v56 = vpop.f32.mrb[152].mxu1 }
 0x43b   : > { %v4759_v16 = vpop.f32.mrb[153].mxu1 }
 0x43e   : > { %v4761_v48 = vpop.f32.mrb[154].mxu1 }
 0x43f   : > { %v4762_v55 = vpop.f32.mrb[155].mxu1 }
 0x442   : > { %v4764_v4 = vpop.f32.mrb[156].mxu1 }
 0x443   : > { %v4765_v61 = vpop.f32.mrb[157].mxu1  ;;  %v5285_v4 = vpop.eup %5284 }
 0x444   : > { %v4102_v61 = vld [vmem:[%s7798_s8 + $0x38] sm:$0xff] }
 0x446   : > { %v4767_v18 = vpop.f32.mrb[158].mxu1 }
 0x447   : > { %v4768_v58 = vpop.f32.mrb[159].mxu1 }
 0x4c0   : > { %v4802_v29 = vpop.f32.mrb[64].mxu0  ;;  %v4838_v24 = vpop.f32.mrb[160].mxu1 }
 0x4c1   : > { %v4803_v6 = vpop.f32.mrb[65].mxu0  ;;  %v4839_v32 = vpop.f32.mrb[161].mxu1 }
 0x4c2   : > { %v4840_v31 = vadd.f32 %v4839_v32, %v4838_v24  ;;  %v4103_v24 = vld [vmem:[%s7798_s8 + $0x40] sm:$0xff] }
 0x4c4   : > { %v4805_v19 = vpop.f32.mrb[66].mxu0  ;;  %v4238_v12 = vadd.f32 %v4840_v31, %v4107_v30  ;;  %v4841_v33 = vpop.f32.mrb[162].mxu1 }
 0x4c5   : > { %v4806_v46 = vpop.f32.mrb[67].mxu0  ;;  %v4842_v39 = vpop.f32.mrb[163].mxu1 }
 0x4c6   : > { %v4268_v60 = vmax.f32 %v4238_v12, 0.0  ;;  %v4843_v28 = vadd.f32 %v4842_v39, %v4841_v33  ;;  %v4104_v33 = vld [vmem:[%s7798_s8 + $0x48] sm:$0xff] }
 0x4c8   : > { %v4808_v1 = vpop.f32.mrb[68].mxu0  ;;  %v4284_v9 = vmin.f32 %v4268_v60, 6.0  ;;  %v4243_v10 = vadd.f32 %v4843_v28, %v4108_v21  ;;  %v4844_v50 = vpop.f32.mrb[164].mxu1 }
 0x4c9   : > { %v4809_v0 = vpop.f32.mrb[69].mxu0  ;;  %v4845_v37 = vpop.f32.mrb[165].mxu1 }
 0x4ca   : > { %4349 = vst.msk [vmem:[%s7620_s15 + $0x60] sm:$0xff] %vm467_vm0, %v4284_v9  ;;  %v4269_v62 = vmax.f32 %v4243_v10, 0.0  ;;  %v4846_v27 = vadd.f32 %v4845_v37, %v4844_v50  ;;  %v4105_v9 = vld [vmem:[%s7798_s8 + $0x50] sm:$0xff] }
 0x4cc   : > { %v4811_v63 = vpop.f32.mrb[70].mxu0  ;;  %v4285_v22 = vmin.f32 %v4269_v62, 6.0  ;;  %v4248_v41 = vadd.f32 %v4846_v27, %v4109_v8  ;;  %v4847_v7 = vpop.f32.mrb[166].mxu1  ;;  %v4106_v27 = vld [vmem:[%s7798_s8 + $0x58] sm:$0xff] }
 0x4cd   : > { %v4812_v26 = vpop.f32.mrb[71].mxu0  ;;  %v4848_v57 = vpop.f32.mrb[167].mxu1 }
 0x4ce   : > { %4350 = vst.msk [vmem:[%s7620_s15 + $0x68] sm:$0xff] %vm467_vm0, %v4285_v22  ;;  %v4270_v2 = vmax.f32 %v4248_v41, 0.0  ;;  %v4849_v20 = vadd.f32 %v4848_v57, %v4847_v7 }
 0x4d0   : > { %v4814_v11 = vpop.f32.mrb[72].mxu0  ;;  %v4286_v59 = vmin.f32 %v4270_v2, 6.0  ;;  %v4253_v14 = vadd.f32 %v4849_v20, %v4110_v34 }
 0x4d1   : > { %v4815_v25 = vpop.f32.mrb[73].mxu0 }
 0x4d2   : > { %4351 = vst.msk [vmem:[%s7620_s15 + $0x70] sm:$0xff] %vm467_vm0, %v4286_v59  ;;  %v4271_v40 = vmax.f32 %v4253_v14, 0.0 }
 0x4d4   : > { %v4817_v53 = vpop.f32.mrb[74].mxu0  ;;  %v4287_v5 = vmin.f32 %v4271_v40, 6.0 }
 0x4d5   : > { %v4818_v52 = vpop.f32.mrb[75].mxu0 }
 0x4d6   : > { %v4819_v49 = vadd.f32 %v4818_v52, %v4817_v53  ;;  %4352 = vst.msk [vmem:[%s7620_s15 + $0x78] sm:$0xff] %vm467_vm0, %v4287_v5 }
 0x4d8   : > { %v4203_v38 = vadd.f32 %v4819_v49, %v4100_v44  ;;  %v4820_v45 = vpop.f32.mrb[76].mxu0 }
 0x4d9   : > { %v4821_v51 = vpop.f32.mrb[77].mxu0 }
 0x4da   : > { %v4261_v17 = vmax.f32 %v4203_v38, 0.0  ;;  %v4822_v56 = vadd.f32 %v4821_v51, %v4820_v45 }
 0x4dc   : > { %v4277_v16 = vmin.f32 %v4261_v17, 6.0  ;;  %v4208_v48 = vadd.f32 %v4822_v56, %v4101_v54  ;;  %v4823_v55 = vpop.f32.mrb[78].mxu0 }
 0x4dd   : > { %v4824_v18 = vpop.f32.mrb[79].mxu0 }
 0x4de   : > { %v4326_v58 = vsel %vm4310_vm1, %v5285_v4, %v4277_v16  ;;  %v4262_v23 = vmax.f32 %v4208_v48, 0.0  ;;  %v4825_v42 = vadd.f32 %v4824_v18, %v4823_v55 }
 0x4df   : > { %4342 = vst.msk [vmem:[%s7620_s15 + $0x28] sm:$0xff] %vm467_vm0, %v4326_v58 }
 0x4e0   : > { %v4278_v15 = vmin.f32 %v4262_v23, 6.0  ;;  %v4213_v13 = vadd.f32 %v4825_v42, %v4102_v61  ;;  %v4826_v29 = vpop.f32.mrb[80].mxu0 }
 0x4e1   : > { %v4827_v6 = vpop.f32.mrb[81].mxu0 }
 0x4e2   : > { %4343 = vst.msk [vmem:[%s7620_s15 + $0x30] sm:$0xff] %vm467_vm0, %v4278_v15  ;;  %v4263_v30 = vmax.f32 %v4213_v13, 0.0  ;;  %v4828_v32 = vadd.f32 %v4827_v6, %v4826_v29 }
 0x4e4   : > { %v4279_v31 = vmin.f32 %v4263_v30, 6.0  ;;  %v4218_v19 = vadd.f32 %v4828_v32, %v4103_v24  ;;  %v4829_v12 = vpop.f32.mrb[82].mxu0 }
 0x4e5   : > { %v4830_v46 = vpop.f32.mrb[83].mxu0 }
 0x4e6   : > { %4344 = vst.msk [vmem:[%s7620_s15 + $0x38] sm:$0xff] %vm467_vm0, %v4279_v31  ;;  %v4264_v21 = vmax.f32 %v4218_v19, 0.0  ;;  %v4831_v39 = vadd.f32 %v4830_v46, %v4829_v12 }
 0x4e8   : > { %v4280_v60 = vmin.f32 %v4264_v21, 6.0  ;;  %v4223_v28 = vadd.f32 %v4831_v39, %v4104_v33  ;;  %v4832_v1 = vpop.f32.mrb[84].mxu0 }
 0x4e9   : > { %v4833_v10 = vpop.f32.mrb[85].mxu0 }
 0x4ea   : > { %4345 = vst.msk [vmem:[%s7620_s15 + $0x40] sm:$0xff] %vm467_vm0, %v4280_v60  ;;  %v4265_v50 = vmax.f32 %v4223_v28, 0.0  ;;  %v4834_v0 = vadd.f32 %v4833_v10, %v4832_v1 }
 0x4ec   : > { %v4281_v8 = vmin.f32 %v4265_v50, 6.0  ;;  %v4228_v37 = vadd.f32 %v4834_v0, %v4105_v9  ;;  %v4835_v62 = vpop.f32.mrb[86].mxu0 }
 0x4ed   : > { %v4836_v35 = vpop.f32.mrb[87].mxu0 }
 0x4ee   : > { %4346 = vst.msk [vmem:[%s7620_s15 + $0x48] sm:$0xff] %vm467_vm0, %v4281_v8  ;;  %v4266_v63 = vmax.f32 %v4228_v37, 0.0  ;;  %v4837_v22 = vadd.f32 %v4836_v35, %v4835_v62 }
 0x4f0   : > { %v4282_v41 = vmin.f32 %v4266_v63, 6.0  ;;  %v4233_v7 = vadd.f32 %v4837_v22, %v4106_v27 }
 0x4f2   : > { %4347 = vst.msk [vmem:[%s7620_s15 + $0x50] sm:$0xff] %vm467_vm0, %v4282_v41  ;;  %v4267_v26 = vmax.f32 %v4233_v7, 0.0 }
 0x4f4   : > { %v4283_v34 = vmin.f32 %v4267_v26, 6.0 }
 0x4f6   : > { %4348 = vst.msk [vmem:[%s7620_s15 + $0x58] sm:$0xff] %vm467_vm0, %v4283_v34 }
 0x4f7 PF: > { %s22_s23 = sadd.s32 1, %s5308_s23   ;;  %s7972_s21 = smov %s5304_s22 }
 0x4f8   : > { %p19_p5 = scmp.ge.s32.totalorder %s22_s23, 4   ;;  %s7973_s22 = smov %s7975_s24 }
 0x4fa   :  { %21 = sbr.rel (!%p19_p5) target bundleno = 2 (0x2), region = 109 }

</bundles_post_ra>
